<compile_context>
chip_gen: v7x
topology: tpu7x:2x2x1
jax: 0.10.0
libtpu: 0.0.40
codegen_flags: <defaults>
</compile_context>

<pallas_src>
import functools

import jax
import jax.numpy as jnp
from jax import lax
from jax.experimental import pallas as pl
from jax.experimental.pallas import tpu as pltpu

LANE = 128
SUBLANE = 8


def _ru(x, m):
    return ((x + m - 1) // m) * m


@functools.lru_cache(maxsize=1)
def _vmem_limit_bytes():
    # Generation-aware VMEM budget: ~112 MiB on 128 MiB parts (v5e/v6e), ~56 MiB on v7x.
    try:
        cap = int(pltpu.get_tpu_info().vmem_capacity_bytes)
    except Exception:
        cap = 0
    if cap <= 0:
        cap = 64 * 1024 * 1024
    return int(min(max(cap * 7 // 8, 32 * 1024 * 1024), 112 * 1024 * 1024))


# ----------------------------- in-kernel math helpers -----------------------------

def _sigmoid(x):
    return 1.0 / (1.0 + jnp.exp(-x))


def _masked_softmax(scores, mask, approx=False):
    # torch: softmax(scores, dim=1) * mask, renormalized with +1e-13.
    # max-subtraction keeps exp() <= 1 so masked/padded positions can never overflow.
    m = jnp.max(scores, axis=1, keepdims=True)
    e = jnp.exp(scores - m)
    if approx:
        sm = e * pl.reciprocal(jnp.sum(e, axis=1, keepdims=True), approx=True)
        sm = sm * mask
        return sm * pl.reciprocal(jnp.sum(sm, axis=1, keepdims=True) + 1e-13, approx=True)
    sm = e / jnp.sum(e, axis=1, keepdims=True)
    sm = sm * mask
    return sm / (jnp.sum(sm, axis=1, keepdims=True) + 1e-13)


def _lstm_cell(gates, c_prev, hp):
    i = _sigmoid(gates[:, 0 * hp:1 * hp])
    f = _sigmoid(gates[:, 1 * hp:2 * hp])
    g = jnp.tanh(gates[:, 2 * hp:3 * hp])
    o = _sigmoid(gates[:, 3 * hp:4 * hp])
    c_new = f * c_prev + i * g
    h_new = o * jnp.tanh(c_new)
    return h_new, c_new


def _bmv(q, mem):
    # (B,H) x (B,L,H) -> (B,L): batched matvec on the MXU.
    return jnp.einsum('bqh,bkh->bqk', q[:, None, :], mem,
                      preferred_element_type=jnp.float32)[:, 0, :]


def _bvm(w, mem):
    # (B,L) x (B,L,H) -> (B,H): batched matvec on the MXU.
    return jnp.einsum('bqk,bkh->bqh', w[:, None, :], mem,
                      preferred_element_type=jnp.float32)[:, 0, :]


# ----------------------------- pallas_call plumbing -----------------------------

def _vmem_spec():
    return pl.BlockSpec(memory_space=pltpu.MemorySpace.VMEM)


def _vmem_call(kernel, out_shape, scratch_shapes=()):
    def call(*args):
        return pl.pallas_call(
            kernel,
            out_shape=out_shape,
            in_specs=[_vmem_spec() for _ in args],
            out_specs=jax.tree_util.tree_map(lambda _: _vmem_spec(), out_shape),
            scratch_shapes=list(scratch_shapes),
            compiler_params=pltpu.CompilerParams(vmem_limit_bytes=_vmem_limit_bytes()),
        )(*args)
    return call


# ----------------------------- fused bidirectional sentence encoder -----------------------------

def _bilstm_encoder_kernel(x_ref, m_ref,
                           wihf_ref, whhf_ref, bf_ref,
                           wihb_ref, whhb_ref, bb_ref,
                           wpf_ref, wpb_ref, pb_ref,
                           mem_ref, last_ref,
                           gxf_sc, gxb_sc, hsf_sc, hsb_sc):
    T, B, Din = x_ref.shape
    Hp = whhf_ref.shape[0]
    Lp = mem_ref.shape[1]

    # Hoisted input projections: one big MXU matmul per direction for ALL timesteps.
    x2 = x_ref[...].reshape(T * B, Din)
    gxf_sc[...] = (jnp.dot(x2, wihf_ref[...], preferred_element_type=jnp.float32)
                   + bf_ref[...]).reshape(T, B, 4 * Hp)
    gxb_sc[...] = (jnp.dot(x2, wihb_ref[...], preferred_element_type=jnp.float32)
                   + bb_ref[...]).reshape(T, B, 4 * Hp)

    # Fused fwd + bwd recurrence with bounded live ranges (fori_loop).  The backward
    # direction walks time in reverse with the per-step length mask -> packed semantics.
    def step(t, carry):
        hf, cf, hb, cb = carry
        mf = m_ref[t]
        gf = gxf_sc[t] + jnp.dot(hf, whhf_ref[...], preferred_element_type=jnp.float32)
        hfn, cfn = _lstm_cell(gf, cf, Hp)
        hsf_sc[t] = mf * hfn                                 # unpack() pads with zeros
        hf = mf * hfn + (1.0 - mf) * hf
        cf = mf * cfn + (1.0 - mf) * cf

        rt = T - 1 - t
        mb = m_ref[rt]
        gb = gxb_sc[rt] + jnp.dot(hb, whhb_ref[...], preferred_element_type=jnp.float32)
        hbn, cbn = _lstm_cell(gb, cb, Hp)
        hsb_sc[rt] = mb * hbn
        hb = mb * hbn + (1.0 - mb) * hb
        cb = mb * cbn + (1.0 - mb) * cb
        return hf, cf, hb, cb

    z = jnp.zeros((B, Hp), jnp.float32)
    hf, _, hb, _ = lax.fori_loop(0, T, step, (z, z, z, z))

    # Fused encoder_proj epilogue; batch-major, lane-padded attention-memory store.
    hsf = hsf_sc[...].reshape(T * B, Hp)
    hsb = hsb_sc[...].reshape(T * B, Hp)
    proj = (jnp.dot(hsf, wpf_ref[...], preferred_element_type=jnp.float32)
            + jnp.dot(hsb, wpb_ref[...], preferred_element_type=jnp.float32)
            + pb_ref[...]).reshape(T, B, Hp)
    if Lp > T:
        mem_ref[:, T:, :] = jnp.zeros((B, Lp - T, Hp), jnp.float32)
    for b in range(B):                                        # dense per-page stores
        mem_ref[b, 0:T, :] = proj[:, b, :]
    last_ref[...] = (jnp.dot(hf, wpf_ref[...], preferred_element_type=jnp.float32)
                     + jnp.dot(hb, wpb_ref[...], preferred_element_type=jnp.float32)
                     + pb_ref[...])


def bilstm_encode(x_tm, m_tm, wih_f, whh_f, b_f, wih_b, whh_b, b_b, wpf, wpb, pb, mem_width):
    T, B, _ = x_tm.shape
    Hp = whh_f.shape[0]
    out_shape = (jax.ShapeDtypeStruct((B, mem_width, Hp), jnp.float32),
                 jax.ShapeDtypeStruct((B, Hp), jnp.float32))
    # TODO(synk): for v7x (64 MiB VMEM) at production T/B, keep the gate-precompute
    #             scratches in bf16 or chunk the hoisted preamble matmul over time.
    scratch = [pltpu.VMEM((T, B, 4 * Hp), jnp.float32),
               pltpu.VMEM((T, B, 4 * Hp), jnp.float32),
               pltpu.VMEM((T, B, Hp), jnp.float32),
               pltpu.VMEM((T, B, Hp), jnp.float32)]
    return _vmem_call(_bilstm_encoder_kernel, out_shape, scratch)(
        x_tm, m_tm, wih_f, whh_f, b_f, wih_b, whh_b, b_b, wpf, wpb, pb)


# ----------------------------- fused dual transformation encoder -----------------------------

def _dual_trans_encoder_kernel(x1_ref, m1_ref, x2_ref, m2_ref,
                               wih1_ref, whh1_ref, b1_ref, pw1_ref, pb1_ref,
                               wih2_ref, whh2_ref, b2_ref, pw2_ref, pb2_ref,
                               mem1_ref, mem2_ref,
                               gx1_sc, gx2_sc, hs1_sc, hs2_sc):
    T, B, D1 = x1_ref.shape
    D2 = x2_ref.shape[2]
    H1 = whh1_ref.shape[0]
    H2 = whh2_ref.shape[0]
    Hp = pw1_ref.shape[1]
    Tp = mem1_ref.shape[1]

    # Hoisted input projections across all timesteps for BOTH encoders.
    gx1_sc[...] = (jnp.dot(x1_ref[...].reshape(T * B, D1), wih1_ref[...],
                           preferred_element_type=jnp.float32)
                   + b1_ref[...]).reshape(T, B, 4 * H1)
    gx2_sc[...] = (jnp.dot(x2_ref[...].reshape(T * B, D2), wih2_ref[...],
                           preferred_element_type=jnp.float32)
                   + b2_ref[...]).reshape(T, B, 4 * H2)

    # Interleaved recurrences: two independent chains fill each other's latency bubbles.
    def step(t, carry):
        h1, c1, h2, c2 = carry
        m1 = m1_ref[t]
        g1 = gx1_sc[t] + jnp.dot(h1, whh1_ref[...], preferred_element_type=jnp.float32)
        h1n, c1n = _lstm_cell(g1, c1, H1)
        hs1_sc[t] = m1 * h1n
        h1 = m1 * h1n + (1.0 - m1) * h1
        c1 = m1 * c1n + (1.0 - m1) * c1

        m2 = m2_ref[t]
        g2 = gx2_sc[t] + jnp.dot(h2, whh2_ref[...], preferred_element_type=jnp.float32)
        h2n, c2n = _lstm_cell(g2, c2, H2)
        hs2_sc[t] = m2 * h2n
        h2 = m2 * h2n + (1.0 - m2) * h2
        c2 = m2 * c2n + (1.0 - m2) * c2
        return h1, c1, h2, c2

    init = (jnp.zeros((B, H1), jnp.float32), jnp.zeros((B, H1), jnp.float32),
            jnp.zeros((B, H2), jnp.float32), jnp.zeros((B, H2), jnp.float32))
    lax.fori_loop(0, T, step, init)

    # Fused att_parse_proj epilogues; batch-major, lane-padded memory stores.
    proj1 = (jnp.dot(hs1_sc[...].reshape(T * B, H1), pw1_ref[...],
                     preferred_element_type=jnp.float32) + pb1_ref[...]).reshape(T, B, Hp)
    proj2 = (jnp.dot(hs2_sc[...].reshape(T * B, H2), pw2_ref[...],
                     preferred_element_type=jnp.float32) + pb2_ref[...]).reshape(T, B, Hp)
    if Tp > T:
        mem1_ref[:, T:, :] = jnp.zeros((B, Tp - T, Hp), jnp.float32)
        mem2_ref[:, T:, :] = jnp.zeros((B, Tp - T, Hp), jnp.float32)
    for b in range(B):
        mem1_ref[b, 0:T, :] = proj1[:, b, :]
        mem2_ref[b, 0:T, :] = proj2[:, b, :]


def dual_trans_encode(x1_tm, m1_tm, x2_tm, m2_tm, pp, mem_width):
    T, B, _ = x1_tm.shape
    H1 = pp['t1_whh'].shape[0]
    H2 = pp['t2_whh'].shape[0]
    Hp = pp['att_parse_proj_1_w'].shape[1]
    out_shape = (jax.ShapeDtypeStruct((B, mem_width, Hp), jnp.float32),
                 jax.ShapeDtypeStruct((B, mem_width, Hp), jnp.float32))
    scratch = [pltpu.VMEM((T, B, 4 * H1), jnp.float32),
               pltpu.VMEM((T, B, 4 * H2), jnp.float32),
               pltpu.VMEM((T, B, H1), jnp.float32),
               pltpu.VMEM((T, B, H2), jnp.float32)]
    return _vmem_call(_dual_trans_encoder_kernel, out_shape, scratch)(
        x1_tm, m1_tm, x2_tm, m2_tm,
        pp['t1_wih'], pp['t1_whh'], pp['t1_b'],
        pp['att_parse_proj_1_w'], pp['att_parse_proj_1_b'],
        pp['t2_wih'], pp['t2_whh'], pp['t2_b'],
        pp['att_parse_proj_2_w'], pp['att_parse_proj_2_b'])


# ----------------------------- decoder kernel (whole decode loop) -----------------------------

def _decoder_kernel(win_ref, enc_ref, emask_ref, tr1_ref, m1_ref, tr2_ref, m2_ref, h0_ref,
                    w0w_ref, w0c1_ref, w0c2_ref, whh0_ref, b0_ref,
                    wih1_ref, whh1_ref, b1_ref,
                    attwT_ref, attpwT_ref,
                    vword_ref, vc1_ref, vc2_ref, vatt_ref, vhid_ref,
                    sh_ref, sc_ref, aw_ref, pc_ref,
                    g0pre_sc, pcw_sc, encp_sc, tr1p_sc, tr2p_sc):
    Td, B, Dwp = win_ref.shape
    Lp, Hp = enc_ref.shape[1], enc_ref.shape[2]
    Tp = tr1_ref.shape[1]

    # ---- hoisted, loop-invariant preamble (single big MXU matmuls) ----
    win = win_ref[...]
    g0pre_sc[...] = (jnp.dot(win.reshape(Td * B, Dwp), w0w_ref[...],
                             preferred_element_type=jnp.float32)
                     + b0_ref[...]).reshape(Td, B, 4 * Hp)
    pcw = jnp.sum(win * vword_ref[...][None], axis=-1, keepdims=True)      # (Td, B, 1)
    pcw_sc[...] = jnp.broadcast_to(pcw, pcw_sc.shape)                       # lane-dense

    # Attention-memory projections mem @ W^T: per-step scores become pure batched matvecs.
    encp_sc[...] = jnp.dot(enc_ref[...].reshape(B * Lp, Hp), attwT_ref[...],
                           preferred_element_type=jnp.float32).reshape(B, Lp, Hp)
    tr1p_sc[...] = jnp.dot(tr1_ref[...].reshape(B * Tp, Hp), attpwT_ref[...],
                           preferred_element_type=jnp.float32).reshape(B, Tp, Hp)
    tr2p_sc[...] = jnp.dot(tr2_ref[...].reshape(B * Tp, Hp), attpwT_ref[...],
                           preferred_element_type=jnp.float32).reshape(B, Tp, Hp)

    def step(t, carry):
        h1, c1, h2, c2 = carry
        # transformation attentions (query: previous top-layer hidden)
        w1 = _masked_softmax(_bmv(h2, tr1p_sc[...]), m1_ref[...], approx=True)
        ctx1 = _bvm(w1, tr1_ref[...])
        w2 = _masked_softmax(_bmv(h2, tr2p_sc[...]), m2_ref[...], approx=True)
        ctx2 = _bvm(w2, tr2_ref[...])

        # 2-layer decoder LSTM step (weights split per input block: no concat)
        g0 = (g0pre_sc[t]
              + jnp.dot(ctx1, w0c1_ref[...], preferred_element_type=jnp.float32)
              + jnp.dot(ctx2, w0c2_ref[...], preferred_element_type=jnp.float32)
              + jnp.dot(h1, whh0_ref[...], preferred_element_type=jnp.float32))
        h1, c1 = _lstm_cell(g0, c1, Hp)
        g1 = (jnp.dot(h1, wih1_ref[...], preferred_element_type=jnp.float32)
              + jnp.dot(h2, whh1_ref[...], preferred_element_type=jnp.float32)
              + b1_ref[...])
        h2n, c2 = _lstm_cell(g1, c2, Hp)

        # encoder attention (query: NEW top-layer hidden)
        aw = _masked_softmax(_bmv(h2n, encp_sc[...]), emask_ref[...], approx=True)
        attn_ctx = _bvm(aw, enc_ref[...])

        # copy gate, kept lane-broadcast so the per-step store is lane-dense
        p = _sigmoid(pcw_sc[t]
                     + jnp.sum(ctx1 * vc1_ref[...], axis=1, keepdims=True)
                     + jnp.sum(ctx2 * vc2_ref[...], axis=1, keepdims=True)
                     + jnp.sum(attn_ctx * vatt_ref[...], axis=1, keepdims=True)
                     + jnp.sum(h2n * vhid_ref[...], axis=1, keepdims=True))

        sh_ref[t] = h2n
        sc_ref[t] = attn_ctx
        aw_ref[t] = aw
        pc_ref[t] = p
        return h1, c1, h2n, c2

    h0 = h0_ref[...]
    c0 = jnp.zeros((B, Hp), jnp.float32)
    lax.fori_loop(0, Td, step, (h0, c0, h0, c0))


def decoder_loop(word_in, enc_mem, enc_mask, tr1, m1, tr2, m2, h0, pp):
    # TODO(synk): add a batch-tile grid axis marked "parallel" so v7x's second TensorCore
    #             shares the recurrent work (and halves per-TC VMEM residency).
    Td, B, _ = word_in.shape
    Lp, Hp = enc_mem.shape[1], enc_mem.shape[2]
    Tp = tr1.shape[1]
    out_shape = (jax.ShapeDtypeStruct((Td, B, Hp), jnp.float32),     # h2 states
                 jax.ShapeDtypeStruct((Td, B, Hp), jnp.float32),     # attention contexts
                 jax.ShapeDtypeStruct((Td, B, Lp), jnp.float32),     # encoder attn weights
                 jax.ShapeDtypeStruct((Td, B, LANE), jnp.float32))   # copy gate (lane-dense)
    # TODO(synk): for v7x (64 MiB VMEM) at production shapes, store the projected memories /
    #             gate-precompute scratches in bf16 (written once, read once).
    scratch = [pltpu.VMEM((Td, B, 4 * Hp), jnp.float32),
               pltpu.VMEM((Td, B, LANE), jnp.float32),
               pltpu.VMEM((B, Lp, Hp), jnp.float32),
               pltpu.VMEM((B, Tp, Hp), jnp.float32),
               pltpu.VMEM((B, Tp, Hp), jnp.float32)]
    return _vmem_call(_decoder_kernel, out_shape, scratch)(
        word_in, enc_mem, enc_mask, tr1, m1, tr2, m2, h0,
        pp['dec_w0_word'], pp['dec_w0_ctx1'], pp['dec_w0_ctx2'], pp['dec_whh0'], pp['dec_b0'],
        pp['dec_wih1'], pp['dec_whh1'], pp['dec_b1'],
        pp['att_W_T'], pp['att_parse_W_T'],
        pp['copy_v_word'], pp['copy_v_ctx1'], pp['copy_v_ctx2'],
        pp['copy_v_att'], pp['copy_v_hid'])


# ----------------------------- output head (row-tiled grid) -----------------------------

def _head_kernel(sh_ref, sc_ref, voc_ref, pc_ref,
                 w1h_ref, w1c_ref, b1_ref, w2_ref, b2_ref, o_ref):
    # out_dense_1 weight split over [h | attn_ctx] row blocks -> no feature concat.
    h = (jnp.dot(sh_ref[...], w1h_ref[...], preferred_element_type=jnp.float32)
         + jnp.dot(sc_ref[...], w1c_ref[...], preferred_element_type=jnp.float32)
         + b1_ref[...])
    logits = jnp.dot(h, w2_ref[...], preferred_element_type=jnp.float32) + b2_ref[...]
    m = jnp.max(logits, axis=1, keepdims=True)
    lse = m + jnp.log(jnp.sum(jnp.exp(logits - m), axis=1, keepdims=True))
    logp = logits - lse                                       # LogSoftmax(dim=1)
    copy_dist = jnp.log(voc_ref[...] + 1e-20)
    pc = pc_ref[...]
    o_ref[...] = pc * copy_dist + (1.0 - pc) * logp
    # TODO(synk): tile the vocab axis with an online logsumexp for production vocab sizes.


def output_head(states_h, states_c, vocab, pcopy, w1h, w1c, b1, w2, b2):
    Np, Hp = states_h.shape
    Vp = w2.shape[1]
    tile_n = Np
    for cand in (512, 256, 128, 64, 32, 16, 8):
        if Np % cand == 0:
            tile_n = cand
            break
    grid = (Np // tile_n,)

    def row_spec(cols):
        return pl.BlockSpec((tile_n, cols), lambda i: (i, 0))

    def full_spec(rows, cols):
        return pl.BlockSpec((rows, cols), lambda i: (0, 0))

    return pl.pallas_call(
        _head_kernel,
        out_shape=jax.ShapeDtypeStruct((Np, Vp), jnp.float32),
        grid=grid,
        in_specs=[row_spec(Hp), row_spec(Hp), row_spec(Vp), row_spec(1),
                  full_spec(Hp, Hp), full_spec(Hp, Hp), full_spec(1, Hp),
                  full_spec(Hp, Vp), full_spec(1, Vp)],
        out_specs=row_spec(Vp),
        compiler_params=pltpu.CompilerParams(
            dimension_semantics=("parallel",),
            vmem_limit_bytes=_vmem_limit_bytes()),
    )(states_h, states_c, vocab, pcopy, w1h, w1c, b1, w2, b2)


# ----------------------------- wrapper-level padding of parameters -----------------------------

def pad_params(p, cfg):
    H, Dw = cfg['d_hid'], cfg['d_word']
    dt1, dt2 = cfg['d_trans_1'], cfg['d_trans_2']
    V = cfg['len_voc']
    Hp, Dwp = _ru(H, LANE), _ru(Dw, LANE)
    dt1p, dt2p = _ru(dt1, LANE), _ru(dt2, LANE)
    dn1p = _ru(cfg['d_nt_1'], LANE)
    dn2p = _ru(cfg['d_nt_2'], LANE)
    Vp = _ru(V, LANE)

    def pad2(w, rows, cols):
        return jnp.pad(w, ((0, rows - w.shape[0]), (0, cols - w.shape[1])))

    def pad_gates(w, h, hp, rows):
        # (din, 4h) -> (rows, 4hp): pad every gate block to hp lanes (keeps i|f|g|o layout;
        # zero padding keeps padded hidden lanes exactly zero through the recurrence).
        din = w.shape[0]
        w4 = w.reshape(din, 4, h)
        w4 = jnp.pad(w4, ((0, rows - din), (0, 0), (0, hp - h)))
        return w4.reshape(rows, 4 * hp)

    pp = {
        'word_embs': pad2(p['word_embs'], p['word_embs'].shape[0], Dwp),
        'trans_embs_1': pad2(p['trans_embs_1'], p['trans_embs_1'].shape[0], dn1p),
        'trans_embs_2': pad2(p['trans_embs_2'], p['trans_embs_2'].shape[0], dn2p),
        'enc_wih_f': pad_gates(p['enc_wih_f'], H, Hp, Dwp),
        'enc_whh_f': pad_gates(p['enc_whh_f'], H, Hp, Hp),
        'enc_b_f': pad_gates(p['enc_b_f'], H, Hp, 1),
        'enc_wih_b': pad_gates(p['enc_wih_b'], H, Hp, Dwp),
        'enc_whh_b': pad_gates(p['enc_whh_b'], H, Hp, Hp),
        'enc_b_b': pad_gates(p['enc_b_b'], H, Hp, 1),
        'enc_proj_w_f': pad2(p['enc_proj_w'][:H], Hp, Hp),
        'enc_proj_w_b': pad2(p['enc_proj_w'][H:], Hp, Hp),
        'enc_proj_b': pad2(p['enc_proj_b'], 1, Hp),
        't1_wih': pad_gates(p['t1_wih'], dt1, dt1p, dn1p),
        't1_whh': pad_gates(p['t1_whh'], dt1, dt1p, dt1p),
        't1_b': pad_gates(p['t1_b'], dt1, dt1p, 1),
        'att_parse_proj_1_w': pad2(p['att_parse_proj_1_w'], dt1p, Hp),
        'att_parse_proj_1_b': pad2(p['att_parse_proj_1_b'], 1, Hp),
        't2_wih': pad_gates(p['t2_wih'], dt2, dt2p, dn2p),
        't2_whh': pad_gates(p['t2_whh'], dt2, dt2p, dt2p),
        't2_b': pad_gates(p['t2_b'], dt2, dt2p, 1),
        'att_parse_proj_2_w': pad2(p['att_parse_proj_2_w'], dt2p, Hp),
        'att_parse_proj_2_b': pad2(p['att_parse_proj_2_b'], 1, Hp),
        # decoder layer-0 input weight split into word/ctx1/ctx2 row blocks (removes concat)
        'dec_w0_word': pad_gates(p['dec_wih0'][:Dw], H, Hp, Dwp),
        'dec_w0_ctx1': pad_gates(p['dec_wih0'][Dw:Dw + H], H, Hp, Hp),
        'dec_w0_ctx2': pad_gates(p['dec_wih0'][Dw + H:], H, Hp, Hp),
        'dec_whh0': pad_gates(p['dec_whh0'], H, Hp, Hp),
        'dec_b0': pad_gates(p['dec_b0'], H, Hp, 1),
        'dec_wih1': pad_gates(p['dec_wih1'], H, Hp, Hp),
        'dec_whh1': pad_gates(p['dec_whh1'], H, Hp, Hp),
        'dec_b1': pad_gates(p['dec_b1'], H, Hp, 1),
        # pre-transposed so mem @ W^T is a plain (N,Hp)x(Hp,Hp) matmul in the kernel preamble
        'att_W_T': pad2(p['att_W'], Hp, Hp).T,
        'att_parse_W_T': pad2(p['att_parse_W'], Hp, Hp).T,
        'copy_v_word': pad2(p['copy_inp_v'][:, :Dw], 1, Dwp),
        'copy_v_ctx1': pad2(p['copy_inp_v'][:, Dw:Dw + H], 1, Hp),
        'copy_v_ctx2': pad2(p['copy_inp_v'][:, Dw + H:], 1, Hp),
        'copy_v_att': pad2(p['copy_att_v'], 1, Hp),
        'copy_v_hid': pad2(p['copy_hid_v'], 1, Hp),
        'out_dense_1_w_h': pad2(p['out_dense_1_w'][:H], Hp, Hp),
        'out_dense_1_w_c': pad2(p['out_dense_1_w'][H:], Hp, Hp),
        'out_dense_1_b': pad2(p['out_dense_1_b'], 1, Hp),
        'out_dense_2_w': pad2(p['out_dense_2_w'], Hp, Vp),
        # padded vocab lanes get a huge negative bias so they never enter the logsumexp
        'out_dense_2_b': jnp.pad(p['out_dense_2_b'], ((0, 0), (0, Vp - V)),
                                 constant_values=-1e30),
    }
    return pp


# ----------------------------- JAX glue (embeddings, masks, padding, flatten) -----------------------------

def cpgn_forward(pp, cfg, inputs, outputs, in_trans_1, in_trans_2, out_trans_1, out_trans_2,
                 in_sent_lens, out_sent_lens, in_trans_lens_1, in_trans_lens_2,
                 out_trans_lens_1, out_trans_lens_2, max_decode):
    # use_input_parse=False: in_trans_* / in_trans_lens_* / out_sent_lens unused (as in torch).
    B, L = inputs.shape
    T1, T2 = out_trans_1.shape[1], out_trans_2.shape[1]
    V = cfg['len_voc']
    Vp = _ru(V, LANE)
    Hp = _ru(cfg['d_hid'], LANE)
    Bp = _ru(B, SUBLANE)
    Ls = _ru(L, SUBLANE)              # sentence-encoder step count (sublane aligned)
    Lp = _ru(L, LANE)                 # sentence attention-memory width (lane aligned)
    Tc = _ru(max(T1, T2), SUBLANE)    # fused transformation-encoder step count
    Tp = _ru(max(T1, T2), LANE)       # transformation attention-memory width

    pad_b1 = lambda x: jnp.pad(x, ((0, Bp - B),))
    inputs_p = jnp.pad(inputs, ((0, Bp - B), (0, Ls - L)))
    outputs_p = jnp.pad(outputs, ((0, Bp - B), (0, 0)))
    ot1_p = jnp.pad(out_trans_1, ((0, Bp - B), (0, Tc - T1)))
    ot2_p = jnp.pad(out_trans_2, ((0, Bp - B), (0, Tc - T2)))
    in_lens_p = pad_b1(in_sent_lens)
    l1_p, l2_p = pad_b1(out_trans_lens_1), pad_b1(out_trans_lens_2)

    def step_mask(lens, steps):     # (steps, Bp, 1), 1.0 while t < length (packed semantics)
        return (jnp.arange(steps)[:, None] < lens[None, :]).astype(jnp.float32)[:, :, None]

    def attn_mask(lens, width):     # (Bp, width)
        return (jnp.arange(width)[None, :] < lens[:, None]).astype(jnp.float32)

    # ---- fused transformation encoders (t1 + t2 interleaved, memories emitted batch-major) ----
    t1_embs_tm = pp['trans_embs_1'][ot1_p.T]                  # (Tc, Bp, dn1p) gather (glue)
    t2_embs_tm = pp['trans_embs_2'][ot2_p.T]
    tr1_mem, tr2_mem = dual_trans_encode(
        t1_embs_tm, step_mask(l1_p, Tc), t2_embs_tm, step_mask(l2_p, Tc), pp, Tp)

    # ---- bidirectional sentence encoder (fwd+bwd LSTM + encoder_proj fused) ----
    x_embs_tm = pp['word_embs'][inputs_p.T]                   # (Ls, Bp, Dwp)
    enc_mem, enc_last = bilstm_encode(
        x_embs_tm, step_mask(in_lens_p, Ls),
        pp['enc_wih_f'], pp['enc_whh_f'], pp['enc_b_f'],
        pp['enc_wih_b'], pp['enc_whh_b'], pp['enc_b_b'],
        pp['enc_proj_w_f'], pp['enc_proj_w_b'], pp['enc_proj_b'], Lp)

    # ---- decoder word inputs: zeros at step 0, word_embs(outputs[:, t-1]) afterwards ----
    Dwp = pp['word_embs'].shape[1]
    word_in = jnp.zeros((max_decode, Bp, Dwp), jnp.float32)
    if max_decode > 1:
        prev_tm = pp['word_embs'][outputs_p[:, :max_decode - 1].T]     # (Td-1, Bp, Dwp)
        word_in = word_in.at[1:].set(prev_tm)

    states_h, states_c, attn_w, p_copy = decoder_loop(
        word_in, enc_mem, attn_mask(in_lens_p, Lp),
        tr1_mem, attn_mask(l1_p, Tp), tr2_mem, attn_mask(l2_p, Tp),
        enc_last, pp)

    # ---- copy distribution: scatter-add of attention weights over input token ids ----
    # TODO(synk): fuse this scatter into the head kernel for very large vocabularies.
    aw_real = attn_w[:, :B, :L]                                        # (Td, B, L)
    scatter_one = lambda w_row, idx_row: jnp.zeros((V,), jnp.float32).at[idx_row].add(w_row)
    vocab_scores = jax.vmap(jax.vmap(scatter_one, in_axes=(0, 0)),
                            in_axes=(0, None))(aw_real, inputs)        # (Td, B, V)

    N = B * max_decode
    Np = _ru(N, SUBLANE)
    pad_rows = lambda x: jnp.pad(x, ((0, Np - N), (0, 0)))
    states_h_bt = pad_rows(jnp.transpose(states_h[:, :B], (1, 0, 2)).reshape(N, Hp))
    states_c_bt = pad_rows(jnp.transpose(states_c[:, :B], (1, 0, 2)).reshape(N, Hp))
    vocab_bt = jnp.pad(jnp.transpose(vocab_scores, (1, 0, 2)).reshape(N, V),
                       ((0, Np - N), (0, Vp - V)))
    # copy probs flattened in (time, batch) order: reproduces torch `copy_probs.view(-1)`
    # (the reference applies a time-major copy-prob vector to batch-major state rows).
    copy_flat = pad_rows(p_copy[:, :B, 0].reshape(N, 1))

    out = output_head(states_h_bt, states_c_bt, vocab_bt, copy_flat,
                      pp['out_dense_1_w_h'], pp['out_dense_1_w_c'], pp['out_dense_1_b'],
                      pp['out_dense_2_w'], pp['out_dense_2_b'])
    return out[:N, :V]


# ----------------------------- deterministic parameter init -----------------------------

def init_params(cfg, seed=0):
    keys = iter(jax.random.split(jax.random.PRNGKey(seed), 64))

    def w(*shape):
        return (0.1 * jax.random.normal(next(keys), shape)).astype(jnp.float32)

    H = cfg['d_hid']
    Dw = cfg['d_word']
    Dd = Dw + 2 * H
    dt1, dt2 = cfg['d_trans_1'], cfg['d_trans_2']
    return dict(
        word_embs=w(cfg['len_voc'], Dw),
        trans_embs_1=w(cfg['len_trans_voc_1'], cfg['d_nt_1']),
        trans_embs_2=w(cfg['len_trans_voc_2'], cfg['d_nt_2']),
        enc_wih_f=w(Dw, 4 * H), enc_whh_f=w(H, 4 * H), enc_b_f=w(1, 4 * H),
        enc_wih_b=w(Dw, 4 * H), enc_whh_b=w(H, 4 * H), enc_b_b=w(1, 4 * H),
        enc_proj_w=w(2 * H, H), enc_proj_b=w(1, H),
        t1_wih=w(cfg['d_nt_1'], 4 * dt1), t1_whh=w(dt1, 4 * dt1), t1_b=w(1, 4 * dt1),
        t2_wih=w(cfg['d_nt_2'], 4 * dt2), t2_whh=w(dt2, 4 * dt2), t2_b=w(1, 4 * dt2),
        att_parse_proj_1_w=w(dt1, H), att_parse_proj_1_b=w(1, H),
        att_parse_proj_2_w=w(dt2, H), att_parse_proj_2_b=w(1, H),
        dec_wih0=w(Dd, 4 * H), dec_whh0=w(H, 4 * H), dec_b0=w(1, 4 * H),
        dec_wih1=w(H, 4 * H), dec_whh1=w(H, 4 * H), dec_b1=w(1, 4 * H),
        att_W=w(H, H), att_parse_W=w(H, H),
        copy_inp_v=w(1, Dd), copy_att_v=w(1, H), copy_hid_v=w(1, H),
        out_dense_1_w=w(2 * H, H), out_dense_1_b=w(1, H),
        out_dense_2_w=w(H, cfg['len_voc']), out_dense_2_b=w(1, cfg['len_voc']),
    )


if __name__ == "__main__":
    cfg = dict(d_word=16, d_hid=32, d_nt_1=8, d_nt_2=8, d_trans_1=16, d_trans_2=16,
               len_voc=64, len_trans_voc_1=20, len_trans_voc_2=20, use_input_parse=False)
    params = init_params(cfg, seed=0)
    padded_params = pad_params(params, cfg)

    B, L, T1, T2, max_decode = 2, 8, 6, 6, 5
    k = jax.random.split(jax.random.PRNGKey(0), 8)
    inputs = jax.random.randint(k[0], (B, L), 0, cfg['len_voc'], dtype=jnp.int32)
    outputs = jax.random.randint(k[1], (B, max_decode), 0, cfg['len_voc'], dtype=jnp.int32)
    out_trans_1 = jax.random.randint(k[2], (B, T1), 0, cfg['len_trans_voc_1'], dtype=jnp.int32)
    out_trans_2 = jax.random.randint(k[3], (B, T2), 0, cfg['len_trans_voc_2'], dtype=jnp.int32)
    in_trans_1 = jax.random.randint(k[4], (B, T1), 0, cfg['len_trans_voc_1'], dtype=jnp.int32)
    in_trans_2 = jax.random.randint(k[5], (B, T2), 0, cfg['len_trans_voc_2'], dtype=jnp.int32)
    # NOTE: as in the original code, max(lengths) must equal the padded sequence length.
    in_sent_lens = jnp.array([L, 5], dtype=jnp.int32)
    out_sent_lens = jnp.array([max_decode, max_decode], dtype=jnp.int32)
    out_trans_lens_1 = jnp.array([T1, 4], dtype=jnp.int32)
    out_trans_lens_2 = jnp.array([5, T2], dtype=jnp.int32)
    in_trans_lens_1 = jnp.array([T1, T1], dtype=jnp.int32)
    in_trans_lens_2 = jnp.array([T2, T2], dtype=jnp.int32)

    final_dists = cpgn_forward(padded_params, cfg, inputs, outputs, in_trans_1, in_trans_2,
                               out_trans_1, out_trans_2, in_sent_lens, out_sent_lens,
                               in_trans_lens_1, in_trans_lens_2,
                               out_trans_lens_1, out_trans_lens_2, max_decode)
    final_dists = jax.block_until_ready(final_dists)
    assert final_dists.shape == (B * max_decode, cfg['len_voc'])
    assert bool(jnp.all(jnp.isfinite(final_dists)))
    print("KERNEL_OK")
</pallas_src>

<mosaic_0001>
module attributes {stable_mosaic.version = 11 : i64} {
  func.func @_dual_trans_encoder_kernel(%arg0: memref<8x8x128xf32, #tpu.memory_space<vmem>>, %arg1: memref<8x8x1xf32, #tpu.memory_space<vmem>>, %arg2: memref<8x8x128xf32, #tpu.memory_space<vmem>>, %arg3: memref<8x8x1xf32, #tpu.memory_space<vmem>>, %arg4: memref<128x512xf32, #tpu.memory_space<vmem>>, %arg5: memref<128x512xf32, #tpu.memory_space<vmem>>, %arg6: memref<1x512xf32, #tpu.memory_space<vmem>>, %arg7: memref<128x128xf32, #tpu.memory_space<vmem>>, %arg8: memref<1x128xf32, #tpu.memory_space<vmem>>, %arg9: memref<128x512xf32, #tpu.memory_space<vmem>>, %arg10: memref<128x512xf32, #tpu.memory_space<vmem>>, %arg11: memref<1x512xf32, #tpu.memory_space<vmem>>, %arg12: memref<128x128xf32, #tpu.memory_space<vmem>>, %arg13: memref<1x128xf32, #tpu.memory_space<vmem>>, %arg14: memref<8x128x128xf32, #tpu.memory_space<vmem>>, %arg15: memref<8x128x128xf32, #tpu.memory_space<vmem>>, %arg16: memref<8x8x512xf32, #tpu.memory_space<vmem>>, %arg17: memref<8x8x512xf32, #tpu.memory_space<vmem>>, %arg18: memref<8x8x128xf32, #tpu.memory_space<vmem>>, %arg19: memref<8x8x128xf32, #tpu.memory_space<vmem>>) attributes {dimension_semantics = [], scalar_prefetch = 0 : i64, scratch_operands = 4 : i64, tpu.core_type = #tpu.core_type<tc>} {
    %c0 = arith.constant 0 : index
    %c0_0 = arith.constant 0 : index
    %c0_1 = arith.constant 0 : index
    %0 = vector.load %arg0[%c0, %c0_0, %c0_1] : memref<8x8x128xf32, #tpu.memory_space<vmem>>, vector<8x8x128xf32>
    %1 = vector.shape_cast %0 : vector<8x8x128xf32> to vector<64x128xf32>
    %c0_2 = arith.constant 0 : index
    %c0_3 = arith.constant 0 : index
    %2 = vector.load %arg4[%c0_2, %c0_3] : memref<128x512xf32, #tpu.memory_space<vmem>>, vector<128x512xf32>
    %cst = arith.constant dense<0.000000e+00> : vector<64x512xf32>
    %3 = tpu.matmul %1, %2, %cst {dimension_numbers = #tpu.dot_dimension_numbers<[1], [0], [0], [1], [0, 0, 1, 1], [], []>} : vector<64x128xf32>, vector<128x512xf32>, vector<64x512xf32> -> vector<64x512xf32>
    %c0_4 = arith.constant 0 : index
    %c0_5 = arith.constant 0 : index
    %4 = vector.load %arg6[%c0_4, %c0_5] : memref<1x512xf32, #tpu.memory_space<vmem>>, vector<1x512xf32>
    %5 = vector.broadcast %4 : vector<1x512xf32> to vector<64x512xf32>
    %6 = arith.addf %3, %5 : vector<64x512xf32>
    %7 = vector.shape_cast %6 : vector<64x512xf32> to vector<8x8x512xf32>
    %c0_6 = arith.constant 0 : index
    %c0_7 = arith.constant 0 : index
    %c0_8 = arith.constant 0 : index
    %8 = vector.load %arg16[%c0_6, %c0_7, %c0_8] : memref<8x8x512xf32, #tpu.memory_space<vmem>>, vector<8x8x512xf32>
    tpu.vector_store %arg16[%c0_6, %c0_7, %c0_8], %7 {strides = array<i32>} : memref<8x8x512xf32, #tpu.memory_space<vmem>>, vector<8x8x512xf32>,
    %c0_9 = arith.constant 0 : index
    %c0_10 = arith.constant 0 : index
    %c0_11 = arith.constant 0 : index
    %9 = vector.load %arg2[%c0_9, %c0_10, %c0_11] : memref<8x8x128xf32, #tpu.memory_space<vmem>>, vector<8x8x128xf32>
    %10 = vector.shape_cast %9 : vector<8x8x128xf32> to vector<64x128xf32>
    %c0_12 = arith.constant 0 : index
    %c0_13 = arith.constant 0 : index
    %11 = vector.load %arg9[%c0_12, %c0_13] : memref<128x512xf32, #tpu.memory_space<vmem>>, vector<128x512xf32>
    %cst_14 = arith.constant dense<0.000000e+00> : vector<64x512xf32>
    %12 = tpu.matmul %10, %11, %cst_14 {dimension_numbers = #tpu.dot_dimension_numbers<[1], [0], [0], [1], [0, 0, 1, 1], [], []>} : vector<64x128xf32>, vector<128x512xf32>, vector<64x512xf32> -> vector<64x512xf32>
    %c0_15 = arith.constant 0 : index
    %c0_16 = arith.constant 0 : index
    %13 = vector.load %arg11[%c0_15, %c0_16] : memref<1x512xf32, #tpu.memory_space<vmem>>, vector<1x512xf32>
    %14 = vector.broadcast %13 : vector<1x512xf32> to vector<64x512xf32>
    %15 = arith.addf %12, %14 : vector<64x512xf32>
    %16 = vector.shape_cast %15 : vector<64x512xf32> to vector<8x8x512xf32>
    %c0_17 = arith.constant 0 : index
    %c0_18 = arith.constant 0 : index
    %c0_19 = arith.constant 0 : index
    %17 = vector.load %arg17[%c0_17, %c0_18, %c0_19] : memref<8x8x512xf32, #tpu.memory_space<vmem>>, vector<8x8x512xf32>
    tpu.vector_store %arg17[%c0_17, %c0_18, %c0_19], %16 {strides = array<i32>} : memref<8x8x512xf32, #tpu.memory_space<vmem>>, vector<8x8x512xf32>,
    %cst_20 = arith.constant 0.000000e+00 : f32
    %18 = vector.broadcast %cst_20 : f32 to vector<8x128xf32>
    %cst_21 = arith.constant 0.000000e+00 : f32
    %19 = vector.broadcast %cst_21 : f32 to vector<8x128xf32>
    %cst_22 = arith.constant 0.000000e+00 : f32
    %20 = vector.broadcast %cst_22 : f32 to vector<8x128xf32>
    %cst_23 = arith.constant 0.000000e+00 : f32
    %21 = vector.broadcast %cst_23 : f32 to vector<8x128xf32>
    %c0_i32 = arith.constant 0 : i32
    %c8_i32 = arith.constant 8 : i32
    %22 = arith.addi %c0_i32, %c8_i32 : i32
    %c1_i32 = arith.constant 1 : i32
    %23:4 = scf.for %arg20 = %c0_i32 to %22 step %c1_i32 iter_args(%arg21 = %18, %arg22 = %19, %arg23 = %20, %arg24 = %21) -> (vector<8x128xf32>, vector<8x128xf32>, vector<8x128xf32>, vector<8x128xf32>)  : i32 {
      %124 = arith.index_cast %arg20 : i32 to index
      %c0_89 = arith.constant 0 : index
      %c0_90 = arith.constant 0 : index
      %125 = vector.load %arg1[%124, %c0_89, %c0_90] : memref<8x8x1xf32, #tpu.memory_space<vmem>>, vector<1x8x1xf32>
      %126 = vector.shape_cast %125 : vector<1x8x1xf32> to vector<8x1xf32>
      %127 = arith.index_cast %arg20 : i32 to index
      %c0_91 = arith.constant 0 : index
      %c0_92 = arith.constant 0 : index
      %128 = vector.load %arg16[%127, %c0_91, %c0_92] : memref<8x8x512xf32, #tpu.memory_space<vmem>>, vector<1x8x512xf32>
      %129 = vector.shape_cast %128 : vector<1x8x512xf32> to vector<8x512xf32>
      %c0_93 = arith.constant 0 : index
      %c0_94 = arith.constant 0 : index
      %130 = vector.load %arg5[%c0_93, %c0_94] : memref<128x512xf32, #tpu.memory_space<vmem>>, vector<128x512xf32>
      %cst_95 = arith.constant dense<0.000000e+00> : vector<8x512xf32>
      %131 = tpu.matmul %arg21, %130, %cst_95 {dimension_numbers = #tpu.dot_dimension_numbers<[1], [0], [0], [1], [0, 0, 1, 1], [], []>} : vector<8x128xf32>, vector<128x512xf32>, vector<8x512xf32> -> vector<8x512xf32>
      %132 = arith.addf %129, %131 : vector<8x512xf32>
      %133 = vector.extract_strided_slice %132 {offsets = [0, 0], sizes = [8, 128], strides = [1, 1]} : vector<8x512xf32> to vector<8x128xf32>
      %cst_96 = arith.constant 0.000000e+00 : f32
      %134 = vector.broadcast %cst_96 : f32 to vector<8x128xf32>
      %135 = arith.subf %134, %133 : vector<8x128xf32>
      %136 = math.exp %135 : vector<8x128xf32>
      %cst_97 = arith.constant 1.000000e+00 : f32
      %137 = vector.broadcast %cst_97 : f32 to vector<8x128xf32>
      %138 = arith.addf %137, %136 : vector<8x128xf32>
      %cst_98 = arith.constant 1.000000e+00 : f32
      %139 = vector.broadcast %cst_98 : f32 to vector<8x128xf32>
      %140 = arith.divf %139, %138 : vector<8x128xf32>
      %141 = vector.extract_strided_slice %132 {offsets = [0, 128], sizes = [8, 128], strides = [1, 1]} : vector<8x512xf32> to vector<8x128xf32>
      %cst_99 = arith.constant 0.000000e+00 : f32
      %142 = vector.broadcast %cst_99 : f32 to vector<8x128xf32>
      %143 = arith.subf %142, %141 : vector<8x128xf32>
      %144 = math.exp %143 : vector<8x128xf32>
      %cst_100 = arith.constant 1.000000e+00 : f32
      %145 = vector.broadcast %cst_100 : f32 to vector<8x128xf32>
      %146 = arith.addf %145, %144 : vector<8x128xf32>
      %cst_101 = arith.constant 1.000000e+00 : f32
      %147 = vector.broadcast %cst_101 : f32 to vector<8x128xf32>
      %148 = arith.divf %147, %146 : vector<8x128xf32>
      %149 = vector.extract_strided_slice %132 {offsets = [0, 256], sizes = [8, 128], strides = [1, 1]} : vector<8x512xf32> to vector<8x128xf32>
      %150 = math.tanh %149 : vector<8x128xf32>
      %151 = vector.extract_strided_slice %132 {offsets = [0, 384], sizes = [8, 128], strides = [1, 1]} : vector<8x512xf32> to vector<8x128xf32>
      %cst_102 = arith.constant 0.000000e+00 : f32
      %152 = vector.broadcast %cst_102 : f32 to vector<8x128xf32>
      %153 = arith.subf %152, %151 : vector<8x128xf32>
      %154 = math.exp %153 : vector<8x128xf32>
      %cst_103 = arith.constant 1.000000e+00 : f32
      %155 = vector.broadcast %cst_103 : f32 to vector<8x128xf32>
      %156 = arith.addf %155, %154 : vector<8x128xf32>
      %cst_104 = arith.constant 1.000000e+00 : f32
      %157 = vector.broadcast %cst_104 : f32 to vector<8x128xf32>
      %158 = arith.divf %157, %156 : vector<8x128xf32>
      %159 = arith.mulf %148, %arg22 : vector<8x128xf32>
      %160 = arith.mulf %140, %150 : vector<8x128xf32>
      %161 = arith.addf %159, %160 : vector<8x128xf32>
      %162 = math.tanh %161 : vector<8x128xf32>
      %163 = arith.mulf %158, %162 : vector<8x128xf32>
      %164 = vector.broadcast %126 : vector<8x1xf32> to vector<8x128xf32>
      %165 = arith.mulf %164, %163 : vector<8x128xf32>
      %166 = arith.index_cast %arg20 : i32 to index
      %c0_105 = arith.constant 0 : index
      %c0_106 = arith.constant 0 : index
      %167 = vector.load %arg18[%166, %c0_105, %c0_106] : memref<8x8x128xf32, #tpu.memory_space<vmem>>, vector<1x8x128xf32>
      %168 = vector.shape_cast %167 : vector<1x8x128xf32> to vector<8x128xf32>
      %169 = vector.shape_cast %165 : vector<8x128xf32> to vector<1x8x128xf32>
      tpu.vector_store %arg18[%166, %c0_105, %c0_106], %169 {strides = array<i32>} : memref<8x8x128xf32, #tpu.memory_space<vmem>>, vector<1x8x128xf32>,
      %170 = vector.broadcast %126 : vector<8x1xf32> to vector<8x128xf32>
      %171 = arith.mulf %170, %163 : vector<8x128xf32>
      %cst_107 = arith.constant 1.000000e+00 : f32
      %172 = vector.broadcast %cst_107 : f32 to vector<8x1xf32>
      %173 = arith.subf %172, %126 : vector<8x1xf32>
      %174 = vector.broadcast %173 : vector<8x1xf32> to vector<8x128xf32>
      %175 = arith.mulf %174, %arg21 : vector<8x128xf32>
      %176 = arith.addf %171, %175 : vector<8x128xf32>
      %177 = vector.broadcast %126 : vector<8x1xf32> to vector<8x128xf32>
      %178 = arith.mulf %177, %161 : vector<8x128xf32>
      %cst_108 = arith.constant 1.000000e+00 : f32
      %179 = vector.broadcast %cst_108 : f32 to vector<8x1xf32>
      %180 = arith.subf %179, %126 : vector<8x1xf32>
      %181 = vector.broadcast %180 : vector<8x1xf32> to vector<8x128xf32>
      %182 = arith.mulf %181, %arg22 : vector<8x128xf32>
      %183 = arith.addf %178, %182 : vector<8x128xf32>
      %184 = arith.index_cast %arg20 : i32 to index
      %c0_109 = arith.constant 0 : index
      %c0_110 = arith.constant 0 : index
      %185 = vector.load %arg3[%184, %c0_109, %c0_110] : memref<8x8x1xf32, #tpu.memory_space<vmem>>, vector<1x8x1xf32>
      %186 = vector.shape_cast %185 : vector<1x8x1xf32> to vector<8x1xf32>
      %187 = arith.index_cast %arg20 : i32 to index
      %c0_111 = arith.constant 0 : index
      %c0_112 = arith.constant 0 : index
      %188 = vector.load %arg17[%187, %c0_111, %c0_112] : memref<8x8x512xf32, #tpu.memory_space<vmem>>, vector<1x8x512xf32>
      %189 = vector.shape_cast %188 : vector<1x8x512xf32> to vector<8x512xf32>
      %c0_113 = arith.constant 0 : index
      %c0_114 = arith.constant 0 : index
      %190 = vector.load %arg10[%c0_113, %c0_114] : memref<128x512xf32, #tpu.memory_space<vmem>>, vector<128x512xf32>
      %cst_115 = arith.constant dense<0.000000e+00> : vector<8x512xf32>
      %191 = tpu.matmul %arg23, %190, %cst_115 {dimension_numbers = #tpu.dot_dimension_numbers<[1], [0], [0], [1], [0, 0, 1, 1], [], []>} : vector<8x128xf32>, vector<128x512xf32>, vector<8x512xf32> -> vector<8x512xf32>
      %192 = arith.addf %189, %191 : vector<8x512xf32>
      %193 = vector.extract_strided_slice %192 {offsets = [0, 0], sizes = [8, 128], strides = [1, 1]} : vector<8x512xf32> to vector<8x128xf32>
      %cst_116 = arith.constant 0.000000e+00 : f32
      %194 = vector.broadcast %cst_116 : f32 to vector<8x128xf32>
      %195 = arith.subf %194, %193 : vector<8x128xf32>
      %196 = math.exp %195 : vector<8x128xf32>
      %cst_117 = arith.constant 1.000000e+00 : f32
      %197 = vector.broadcast %cst_117 : f32 to vector<8x128xf32>
      %198 = arith.addf %197, %196 : vector<8x128xf32>
      %cst_118 = arith.constant 1.000000e+00 : f32
      %199 = vector.broadcast %cst_118 : f32 to vector<8x128xf32>
      %200 = arith.divf %199, %198 : vector<8x128xf32>
      %201 = vector.extract_strided_slice %192 {offsets = [0, 128], sizes = [8, 128], strides = [1, 1]} : vector<8x512xf32> to vector<8x128xf32>
      %cst_119 = arith.constant 0.000000e+00 : f32
      %202 = vector.broadcast %cst_119 : f32 to vector<8x128xf32>
      %203 = arith.subf %202, %201 : vector<8x128xf32>
      %204 = math.exp %203 : vector<8x128xf32>
      %cst_120 = arith.constant 1.000000e+00 : f32
      %205 = vector.broadcast %cst_120 : f32 to vector<8x128xf32>
      %206 = arith.addf %205, %204 : vector<8x128xf32>
      %cst_121 = arith.constant 1.000000e+00 : f32
      %207 = vector.broadcast %cst_121 : f32 to vector<8x128xf32>
      %208 = arith.divf %207, %206 : vector<8x128xf32>
      %209 = vector.extract_strided_slice %192 {offsets = [0, 256], sizes = [8, 128], strides = [1, 1]} : vector<8x512xf32> to vector<8x128xf32>
      %210 = math.tanh %209 : vector<8x128xf32>
      %211 = vector.extract_strided_slice %192 {offsets = [0, 384], sizes = [8, 128], strides = [1, 1]} : vector<8x512xf32> to vector<8x128xf32>
      %cst_122 = arith.constant 0.000000e+00 : f32
      %212 = vector.broadcast %cst_122 : f32 to vector<8x128xf32>
      %213 = arith.subf %212, %211 : vector<8x128xf32>
      %214 = math.exp %213 : vector<8x128xf32>
      %cst_123 = arith.constant 1.000000e+00 : f32
      %215 = vector.broadcast %cst_123 : f32 to vector<8x128xf32>
      %216 = arith.addf %215, %214 : vector<8x128xf32>
      %cst_124 = arith.constant 1.000000e+00 : f32
      %217 = vector.broadcast %cst_124 : f32 to vector<8x128xf32>
      %218 = arith.divf %217, %216 : vector<8x128xf32>
      %219 = arith.mulf %208, %arg24 : vector<8x128xf32>
      %220 = arith.mulf %200, %210 : vector<8x128xf32>
      %221 = arith.addf %219, %220 : vector<8x128xf32>
      %222 = math.tanh %221 : vector<8x128xf32>
      %223 = arith.mulf %218, %222 : vector<8x128xf32>
      %224 = vector.broadcast %186 : vector<8x1xf32> to vector<8x128xf32>
      %225 = arith.mulf %224, %223 : vector<8x128xf32>
      %226 = arith.index_cast %arg20 : i32 to index
      %c0_125 = arith.constant 0 : index
      %c0_126 = arith.constant 0 : index
      %227 = vector.load %arg19[%226, %c0_125, %c0_126] : memref<8x8x128xf32, #tpu.memory_space<vmem>>, vector<1x8x128xf32>
      %228 = vector.shape_cast %227 : vector<1x8x128xf32> to vector<8x128xf32>
      %229 = vector.shape_cast %225 : vector<8x128xf32> to vector<1x8x128xf32>
      tpu.vector_store %arg19[%226, %c0_125, %c0_126], %229 {strides = array<i32>} : memref<8x8x128xf32, #tpu.memory_space<vmem>>, vector<1x8x128xf32>,
      %230 = vector.broadcast %186 : vector<8x1xf32> to vector<8x128xf32>
      %231 = arith.mulf %230, %223 : vector<8x128xf32>
      %cst_127 = arith.constant 1.000000e+00 : f32
      %232 = vector.broadcast %cst_127 : f32 to vector<8x1xf32>
      %233 = arith.subf %232, %186 : vector<8x1xf32>
      %234 = vector.broadcast %233 : vector<8x1xf32> to vector<8x128xf32>
      %235 = arith.mulf %234, %arg23 : vector<8x128xf32>
      %236 = arith.addf %231, %235 : vector<8x128xf32>
      %237 = vector.broadcast %186 : vector<8x1xf32> to vector<8x128xf32>
      %238 = arith.mulf %237, %221 : vector<8x128xf32>
      %cst_128 = arith.constant 1.000000e+00 : f32
      %239 = vector.broadcast %cst_128 : f32 to vector<8x1xf32>
      %240 = arith.subf %239, %186 : vector<8x1xf32>
      %241 = vector.broadcast %240 : vector<8x1xf32> to vector<8x128xf32>
      %242 = arith.mulf %241, %arg24 : vector<8x128xf32>
      %243 = arith.addf %238, %242 : vector<8x128xf32>
      scf.yield %176, %183, %236, %243 : vector<8x128xf32>, vector<8x128xf32>, vector<8x128xf32>, vector<8x128xf32>
    }
    %c8_i32_24 = arith.constant 8 : i32
    %c0_25 = arith.constant 0 : index
    %c0_26 = arith.constant 0 : index
    %c0_27 = arith.constant 0 : index
    %24 = vector.load %arg18[%c0_25, %c0_26, %c0_27] : memref<8x8x128xf32, #tpu.memory_space<vmem>>, vector<8x8x128xf32>
    %25 = vector.shape_cast %24 : vector<8x8x128xf32> to vector<64x128xf32>
    %c0_28 = arith.constant 0 : index
    %c0_29 = arith.constant 0 : index
    %26 = vector.load %arg7[%c0_28, %c0_29] : memref<128x128xf32, #tpu.memory_space<vmem>>, vector<128x128xf32>
    %cst_30 = arith.constant dense<0.000000e+00> : vector<64x128xf32>
    %27 = tpu.matmul %25, %26, %cst_30 {dimension_numbers = #tpu.dot_dimension_numbers<[1], [0], [0], [1], [0, 0, 1, 1], [], []>} : vector<64x128xf32>, vector<128x128xf32>, vector<64x128xf32> -> vector<64x128xf32>
    %c0_31 = arith.constant 0 : index
    %c0_32 = arith.constant 0 : index
    %28 = vector.load %arg8[%c0_31, %c0_32] : memref<1x128xf32, #tpu.memory_space<vmem>>, vector<1x128xf32>
    %29 = vector.broadcast %28 : vector<1x128xf32> to vector<64x128xf32>
    %30 = arith.addf %27, %29 : vector<64x128xf32>
    %31 = vector.shape_cast %30 : vector<64x128xf32> to vector<8x8x128xf32>
    %c0_33 = arith.constant 0 : index
    %c0_34 = arith.constant 0 : index
    %c0_35 = arith.constant 0 : index
    %32 = vector.load %arg19[%c0_33, %c0_34, %c0_35] : memref<8x8x128xf32, #tpu.memory_space<vmem>>, vector<8x8x128xf32>
    %33 = vector.shape_cast %32 : vector<8x8x128xf32> to vector<64x128xf32>
    %c0_36 = arith.constant 0 : index
    %c0_37 = arith.constant 0 : index
    %34 = vector.load %arg12[%c0_36, %c0_37] : memref<128x128xf32, #tpu.memory_space<vmem>>, vector<128x128xf32>
    %cst_38 = arith.constant dense<0.000000e+00> : vector<64x128xf32>
    %35 = tpu.matmul %33, %34, %cst_38 {dimension_numbers = #tpu.dot_dimension_numbers<[1], [0], [0], [1], [0, 0, 1, 1], [], []>} : vector<64x128xf32>, vector<128x128xf32>, vector<64x128xf32> -> vector<64x128xf32>
    %c0_39 = arith.constant 0 : index
    %c0_40 = arith.constant 0 : index
    %36 = vector.load %arg13[%c0_39, %c0_40] : memref<1x128xf32, #tpu.memory_space<vmem>>, vector<1x128xf32>
    %37 = vector.broadcast %36 : vector<1x128xf32> to vector<64x128xf32>
    %38 = arith.addf %35, %37 : vector<64x128xf32>
    %39 = vector.shape_cast %38 : vector<64x128xf32> to vector<8x8x128xf32>
    %cst_41 = arith.constant 0.000000e+00 : f32
    %40 = vector.broadcast %cst_41 : f32 to vector<8x120x128xf32>
    %c0_42 = arith.constant 0 : index
    %c8 = arith.constant 8 : index
    %c0_43 = arith.constant 0 : index
    %41 = vector.load %arg14[%c0_42, %c8, %c0_43] : memref<8x128x128xf32, #tpu.memory_space<vmem>>, vector<8x120x128xf32>
    tpu.vector_store %arg14[%c0_42, %c8, %c0_43], %40 {strides = array<i32>} : memref<8x128x128xf32, #tpu.memory_space<vmem>>, vector<8x120x128xf32>,
    %cst_44 = arith.constant 0.000000e+00 : f32
    %42 = vector.broadcast %cst_44 : f32 to vector<8x120x128xf32>
    %c0_45 = arith.constant 0 : index
    %c8_46 = arith.constant 8 : index
    %c0_47 = arith.constant 0 : index
    %43 = vector.load %arg15[%c0_45, %c8_46, %c0_47] : memref<8x128x128xf32, #tpu.memory_space<vmem>>, vector<8x120x128xf32>
    tpu.vector_store %arg15[%c0_45, %c8_46, %c0_47], %42 {strides = array<i32>} : memref<8x128x128xf32, #tpu.memory_space<vmem>>, vector<8x120x128xf32>,
    %44 = vector.extract_strided_slice %31 {offsets = [0, 0, 0], sizes = [8, 1, 128], strides = [1, 1, 1]} : vector<8x8x128xf32> to vector<8x1x128xf32>
    %45 = vector.shape_cast %44 : vector<8x1x128xf32> to vector<8x128xf32>
    %c0_48 = arith.constant 0 : index
    %c0_49 = arith.constant 0 : index
    %c0_50 = arith.constant 0 : index
    %46 = vector.load %arg14[%c0_48, %c0_49, %c0_50] : memref<8x128x128xf32, #tpu.memory_space<vmem>>, vector<1x8x128xf32>
    %47 = vector.shape_cast %46 : vector<1x8x128xf32> to vector<8x128xf32>
    %48 = vector.shape_cast %45 : vector<8x128xf32> to vector<1x8x128xf32>
    tpu.vector_store %arg14[%c0_48, %c0_49, %c0_50], %48 {strides = array<i32>} : memref<8x128x128xf32, #tpu.memory_space<vmem>>, vector<1x8x128xf32>,
    %49 = vector.extract_strided_slice %39 {offsets = [0, 0, 0], sizes = [8, 1, 128], strides = [1, 1, 1]} : vector<8x8x128xf32> to vector<8x1x128xf32>
    %50 = vector.shape_cast %49 : vector<8x1x128xf32> to vector<8x128xf32>
    %c0_51 = arith.constant 0 : index
    %c0_52 = arith.constant 0 : index
    %c0_53 = arith.constant 0 : index
    %51 = vector.load %arg15[%c0_51, %c0_52, %c0_53] : memref<8x128x128xf32, #tpu.memory_space<vmem>>, vector<1x8x128xf32>
    %52 = vector.shape_cast %51 : vector<1x8x128xf32> to vector<8x128xf32>
    %53 = vector.shape_cast %50 : vector<8x128xf32> to vector<1x8x128xf32>
    tpu.vector_store %arg15[%c0_51, %c0_52, %c0_53], %53 {strides = array<i32>} : memref<8x128x128xf32, #tpu.memory_space<vmem>>, vector<1x8x128xf32>,
    %54 = vector.extract_strided_slice %31 {offsets = [0, 1, 0], sizes = [8, 1, 128], strides = [1, 1, 1]} : vector<8x8x128xf32> to vector<8x1x128xf32>
    %55 = vector.shape_cast %54 : vector<8x1x128xf32> to vector<8x128xf32>
    %c1 = arith.constant 1 : index
    %c0_54 = arith.constant 0 : index
    %c0_55 = arith.constant 0 : index
    %56 = vector.load %arg14[%c1, %c0_54, %c0_55] : memref<8x128x128xf32, #tpu.memory_space<vmem>>, vector<1x8x128xf32>
    %57 = vector.shape_cast %56 : vector<1x8x128xf32> to vector<8x128xf32>
    %58 = vector.shape_cast %55 : vector<8x128xf32> to vector<1x8x128xf32>
    tpu.vector_store %arg14[%c1, %c0_54, %c0_55], %58 {strides = array<i32>} : memref<8x128x128xf32, #tpu.memory_space<vmem>>, vector<1x8x128xf32>,
    %59 = vector.extract_strided_slice %39 {offsets = [0, 1, 0], sizes = [8, 1, 128], strides = [1, 1, 1]} : vector<8x8x128xf32> to vector<8x1x128xf32>
    %60 = vector.shape_cast %59 : vector<8x1x128xf32> to vector<8x128xf32>
    %c1_56 = arith.constant 1 : index
    %c0_57 = arith.constant 0 : index
    %c0_58 = arith.constant 0 : index
    %61 = vector.load %arg15[%c1_56, %c0_57, %c0_58] : memref<8x128x128xf32, #tpu.memory_space<vmem>>, vector<1x8x128xf32>
    %62 = vector.shape_cast %61 : vector<1x8x128xf32> to vector<8x128xf32>
    %63 = vector.shape_cast %60 : vector<8x128xf32> to vector<1x8x128xf32>
    tpu.vector_store %arg15[%c1_56, %c0_57, %c0_58], %63 {strides = array<i32>} : memref<8x128x128xf32, #tpu.memory_space<vmem>>, vector<1x8x128xf32>,
    %64 = vector.extract_strided_slice %31 {offsets = [0, 2, 0], sizes = [8, 1, 128], strides = [1, 1, 1]} : vector<8x8x128xf32> to vector<8x1x128xf32>
    %65 = vector.shape_cast %64 : vector<8x1x128xf32> to vector<8x128xf32>
    %c2 = arith.constant 2 : index
    %c0_59 = arith.constant 0 : index
    %c0_60 = arith.constant 0 : index
    %66 = vector.load %arg14[%c2, %c0_59, %c0_60] : memref<8x128x128xf32, #tpu.memory_space<vmem>>, vector<1x8x128xf32>
    %67 = vector.shape_cast %66 : vector<1x8x128xf32> to vector<8x128xf32>
    %68 = vector.shape_cast %65 : vector<8x128xf32> to vector<1x8x128xf32>
    tpu.vector_store %arg14[%c2, %c0_59, %c0_60], %68 {strides = array<i32>} : memref<8x128x128xf32, #tpu.memory_space<vmem>>, vector<1x8x128xf32>,
    %69 = vector.extract_strided_slice %39 {offsets = [0, 2, 0], sizes = [8, 1, 128], strides = [1, 1, 1]} : vector<8x8x128xf32> to vector<8x1x128xf32>
    %70 = vector.shape_cast %69 : vector<8x1x128xf32> to vector<8x128xf32>
    %c2_61 = arith.constant 2 : index
    %c0_62 = arith.constant 0 : index
    %c0_63 = arith.constant 0 : index
    %71 = vector.load %arg15[%c2_61, %c0_62, %c0_63] : memref<8x128x128xf32, #tpu.memory_space<vmem>>, vector<1x8x128xf32>
    %72 = vector.shape_cast %71 : vector<1x8x128xf32> to vector<8x128xf32>
    %73 = vector.shape_cast %70 : vector<8x128xf32> to vector<1x8x128xf32>
    tpu.vector_store %arg15[%c2_61, %c0_62, %c0_63], %73 {strides = array<i32>} : memref<8x128x128xf32, #tpu.memory_space<vmem>>, vector<1x8x128xf32>,
    %74 = vector.extract_strided_slice %31 {offsets = [0, 3, 0], sizes = [8, 1, 128], strides = [1, 1, 1]} : vector<8x8x128xf32> to vector<8x1x128xf32>
    %75 = vector.shape_cast %74 : vector<8x1x128xf32> to vector<8x128xf32>
    %c3 = arith.constant 3 : index
    %c0_64 = arith.constant 0 : index
    %c0_65 = arith.constant 0 : index
    %76 = vector.load %arg14[%c3, %c0_64, %c0_65] : memref<8x128x128xf32, #tpu.memory_space<vmem>>, vector<1x8x128xf32>
    %77 = vector.shape_cast %76 : vector<1x8x128xf32> to vector<8x128xf32>
    %78 = vector.shape_cast %75 : vector<8x128xf32> to vector<1x8x128xf32>
    tpu.vector_store %arg14[%c3, %c0_64, %c0_65], %78 {strides = array<i32>} : memref<8x128x128xf32, #tpu.memory_space<vmem>>, vector<1x8x128xf32>,
    %79 = vector.extract_strided_slice %39 {offsets = [0, 3, 0], sizes = [8, 1, 128], strides = [1, 1, 1]} : vector<8x8x128xf32> to vector<8x1x128xf32>
    %80 = vector.shape_cast %79 : vector<8x1x128xf32> to vector<8x128xf32>
    %c3_66 = arith.constant 3 : index
    %c0_67 = arith.constant 0 : index
    %c0_68 = arith.constant 0 : index
    %81 = vector.load %arg15[%c3_66, %c0_67, %c0_68] : memref<8x128x128xf32, #tpu.memory_space<vmem>>, vector<1x8x128xf32>
    %82 = vector.shape_cast %81 : vector<1x8x128xf32> to vector<8x128xf32>
    %83 = vector.shape_cast %80 : vector<8x128xf32> to vector<1x8x128xf32>
    tpu.vector_store %arg15[%c3_66, %c0_67, %c0_68], %83 {strides = array<i32>} : memref<8x128x128xf32, #tpu.memory_space<vmem>>, vector<1x8x128xf32>,
    %84 = vector.extract_strided_slice %31 {offsets = [0, 4, 0], sizes = [8, 1, 128], strides = [1, 1, 1]} : vector<8x8x128xf32> to vector<8x1x128xf32>
    %85 = vector.shape_cast %84 : vector<8x1x128xf32> to vector<8x128xf32>
    %c4 = arith.constant 4 : index
    %c0_69 = arith.constant 0 : index
    %c0_70 = arith.constant 0 : index
    %86 = vector.load %arg14[%c4, %c0_69, %c0_70] : memref<8x128x128xf32, #tpu.memory_space<vmem>>, vector<1x8x128xf32>
    %87 = vector.shape_cast %86 : vector<1x8x128xf32> to vector<8x128xf32>
    %88 = vector.shape_cast %85 : vector<8x128xf32> to vector<1x8x128xf32>
    tpu.vector_store %arg14[%c4, %c0_69, %c0_70], %88 {strides = array<i32>} : memref<8x128x128xf32, #tpu.memory_space<vmem>>, vector<1x8x128xf32>,
    %89 = vector.extract_strided_slice %39 {offsets = [0, 4, 0], sizes = [8, 1, 128], strides = [1, 1, 1]} : vector<8x8x128xf32> to vector<8x1x128xf32>
    %90 = vector.shape_cast %89 : vector<8x1x128xf32> to vector<8x128xf32>
    %c4_71 = arith.constant 4 : index
    %c0_72 = arith.constant 0 : index
    %c0_73 = arith.constant 0 : index
    %91 = vector.load %arg15[%c4_71, %c0_72, %c0_73] : memref<8x128x128xf32, #tpu.memory_space<vmem>>, vector<1x8x128xf32>
    %92 = vector.shape_cast %91 : vector<1x8x128xf32> to vector<8x128xf32>
    %93 = vector.shape_cast %90 : vector<8x128xf32> to vector<1x8x128xf32>
    tpu.vector_store %arg15[%c4_71, %c0_72, %c0_73], %93 {strides = array<i32>} : memref<8x128x128xf32, #tpu.memory_space<vmem>>, vector<1x8x128xf32>,
    %94 = vector.extract_strided_slice %31 {offsets = [0, 5, 0], sizes = [8, 1, 128], strides = [1, 1, 1]} : vector<8x8x128xf32> to vector<8x1x128xf32>
    %95 = vector.shape_cast %94 : vector<8x1x128xf32> to vector<8x128xf32>
    %c5 = arith.constant 5 : index
    %c0_74 = arith.constant 0 : index
    %c0_75 = arith.constant 0 : index
    %96 = vector.load %arg14[%c5, %c0_74, %c0_75] : memref<8x128x128xf32, #tpu.memory_space<vmem>>, vector<1x8x128xf32>
    %97 = vector.shape_cast %96 : vector<1x8x128xf32> to vector<8x128xf32>
    %98 = vector.shape_cast %95 : vector<8x128xf32> to vector<1x8x128xf32>
    tpu.vector_store %arg14[%c5, %c0_74, %c0_75], %98 {strides = array<i32>} : memref<8x128x128xf32, #tpu.memory_space<vmem>>, vector<1x8x128xf32>,
    %99 = vector.extract_strided_slice %39 {offsets = [0, 5, 0], sizes = [8, 1, 128], strides = [1, 1, 1]} : vector<8x8x128xf32> to vector<8x1x128xf32>
    %100 = vector.shape_cast %99 : vector<8x1x128xf32> to vector<8x128xf32>
    %c5_76 = arith.constant 5 : index
    %c0_77 = arith.constant 0 : index
    %c0_78 = arith.constant 0 : index
    %101 = vector.load %arg15[%c5_76, %c0_77, %c0_78] : memref<8x128x128xf32, #tpu.memory_space<vmem>>, vector<1x8x128xf32>
    %102 = vector.shape_cast %101 : vector<1x8x128xf32> to vector<8x128xf32>
    %103 = vector.shape_cast %100 : vector<8x128xf32> to vector<1x8x128xf32>
    tpu.vector_store %arg15[%c5_76, %c0_77, %c0_78], %103 {strides = array<i32>} : memref<8x128x128xf32, #tpu.memory_space<vmem>>, vector<1x8x128xf32>,
    %104 = vector.extract_strided_slice %31 {offsets = [0, 6, 0], sizes = [8, 1, 128], strides = [1, 1, 1]} : vector<8x8x128xf32> to vector<8x1x128xf32>
    %105 = vector.shape_cast %104 : vector<8x1x128xf32> to vector<8x128xf32>
    %c6 = arith.constant 6 : index
    %c0_79 = arith.constant 0 : index
    %c0_80 = arith.constant 0 : index
    %106 = vector.load %arg14[%c6, %c0_79, %c0_80] : memref<8x128x128xf32, #tpu.memory_space<vmem>>, vector<1x8x128xf32>
    %107 = vector.shape_cast %106 : vector<1x8x128xf32> to vector<8x128xf32>
    %108 = vector.shape_cast %105 : vector<8x128xf32> to vector<1x8x128xf32>
    tpu.vector_store %arg14[%c6, %c0_79, %c0_80], %108 {strides = array<i32>} : memref<8x128x128xf32, #tpu.memory_space<vmem>>, vector<1x8x128xf32>,
    %109 = vector.extract_strided_slice %39 {offsets = [0, 6, 0], sizes = [8, 1, 128], strides = [1, 1, 1]} : vector<8x8x128xf32> to vector<8x1x128xf32>
    %110 = vector.shape_cast %109 : vector<8x1x128xf32> to vector<8x128xf32>
    %c6_81 = arith.constant 6 : index
    %c0_82 = arith.constant 0 : index
    %c0_83 = arith.constant 0 : index
    %111 = vector.load %arg15[%c6_81, %c0_82, %c0_83] : memref<8x128x128xf32, #tpu.memory_space<vmem>>, vector<1x8x128xf32>
    %112 = vector.shape_cast %111 : vector<1x8x128xf32> to vector<8x128xf32>
    %113 = vector.shape_cast %110 : vector<8x128xf32> to vector<1x8x128xf32>
    tpu.vector_store %arg15[%c6_81, %c0_82, %c0_83], %113 {strides = array<i32>} : memref<8x128x128xf32, #tpu.memory_space<vmem>>, vector<1x8x128xf32>,
    %114 = vector.extract_strided_slice %31 {offsets = [0, 7, 0], sizes = [8, 1, 128], strides = [1, 1, 1]} : vector<8x8x128xf32> to vector<8x1x128xf32>
    %115 = vector.shape_cast %114 : vector<8x1x128xf32> to vector<8x128xf32>
    %c7 = arith.constant 7 : index
    %c0_84 = arith.constant 0 : index
    %c0_85 = arith.constant 0 : index
    %116 = vector.load %arg14[%c7, %c0_84, %c0_85] : memref<8x128x128xf32, #tpu.memory_space<vmem>>, vector<1x8x128xf32>
    %117 = vector.shape_cast %116 : vector<1x8x128xf32> to vector<8x128xf32>
    %118 = vector.shape_cast %115 : vector<8x128xf32> to vector<1x8x128xf32>
    tpu.vector_store %arg14[%c7, %c0_84, %c0_85], %118 {strides = array<i32>} : memref<8x128x128xf32, #tpu.memory_space<vmem>>, vector<1x8x128xf32>,
    %119 = vector.extract_strided_slice %39 {offsets = [0, 7, 0], sizes = [8, 1, 128], strides = [1, 1, 1]} : vector<8x8x128xf32> to vector<8x1x128xf32>
    %120 = vector.shape_cast %119 : vector<8x1x128xf32> to vector<8x128xf32>
    %c7_86 = arith.constant 7 : index
    %c0_87 = arith.constant 0 : index
    %c0_88 = arith.constant 0 : index
    %121 = vector.load %arg15[%c7_86, %c0_87, %c0_88] : memref<8x128x128xf32, #tpu.memory_space<vmem>>, vector<1x8x128xf32>
    %122 = vector.shape_cast %121 : vector<1x8x128xf32> to vector<8x128xf32>
    %123 = vector.shape_cast %120 : vector<8x128xf32> to vector<1x8x128xf32>
    tpu.vector_store %arg15[%c7_86, %c0_87, %c0_88], %123 {strides = array<i32>} : memref<8x128x128xf32, #tpu.memory_space<vmem>>, vector<1x8x128xf32>,
    return
  }
}

</mosaic_0001>

<bundles_post_ra>
// kernel: tpu_custom_call.1
= control target key start
LH: loop header
LB: loop body
LE: loop exit
PB: predicated region body
PF: predicated region fallthrough
CT: control target
= control target key end

     0   :  { %s3894_s0 = inlined_call_operand.hbm [shape: f32[8,8,128], index: 0, kind: input, shape index: {}]   ;;  %s3895_s1 = inlined_call_operand.vmem [shape: f32[8,8,1], index: 1, kind: input, shape index: {}]   ;;  %s3896_s2 = inlined_call_operand.hbm [shape: f32[8,8,128], index: 2, kind: input, shape index: {}]   ;;  %s3897_s3 = inlined_call_operand.vmem [shape: f32[8,8,1], index: 3, kind: input, shape index: {}]   ;;  %s3898_s4 = inlined_call_operand.hbm [shape: f32[128,512], index: 4, kind: input, shape index: {}]   ;;  %s3899_s5 = inlined_call_operand.hbm [shape: f32[128,512], index: 5, kind: input, shape index: {}]   ;;  %s3900_s6 = inlined_call_operand.vmem [shape: f32[1,512], index: 6, kind: input, shape index: {}]   ;;  %s3901_s7 = inlined_call_operand.vmem [shape: f32[128,128], index: 7, kind: input, shape index: {}]   ;;  %s3902_s8 = inlined_call_operand.vmem [shape: f32[1,128], index: 8, kind: input, shape index: {}]   ;;  %s3903_s9 = inlined_call_operand.hbm [shape: f32[128,512], index: 9, kind: input, shape index: {}]   ;;  %s3904_s10 = inlined_call_operand.hbm [shape: f32[128,512], index: 10, kind: input, shape index: {}]   ;;  %s3905_s11 = inlined_call_operand.vmem [shape: f32[1,512], index: 11, kind: input, shape index: {}]   ;;  %s3906_s12 = inlined_call_operand.hbm [shape: f32[128,128], index: 12, kind: input, shape index: {}]   ;;  %s3907_s13 = inlined_call_operand.vmem [shape: f32[1,128], index: 13, kind: input, shape index: {}]   ;;  %s3908_s14 = inlined_call_operand.hbm [shape: f32[8,128,128], index: 14, kind: output, shape index: {0}]   ;;  %s3909_s15 = inlined_call_operand.hbm [shape: f32[8,128,128], index: 15, kind: output, shape index: {1}]  }
   0x1   :  { %3911 = sst [smem:[#allocation27_spill]] %s3909_s15 }
   0x2   :  { %21 = vsyncpa [#allocation7], 0 }
   0x3   :  { %22 = vsyncpa [#allocation10], 0 }
   0x4   :  { %23 = vsyncpa [#allocation13], 0 }
   0x5   :  { %24 = vsyncpa [#allocation16], 0 }
   0x6   :  { %25 = vsyncpa [#allocation8], 0 }
   0x7   :  { %26 = vsyncpa [#allocation20], 0  ;;  %s2974_s18 = smov [#allocation9]   ;;  %s2724_s22 = scalar_lea.hbm %s3896_s2, 1024 }
   0x8   :  { %s46_s19 = sshll.u32 %s2974_s18, 4  ;;  %p2725_p0 = scmp.ne.s32.totalorder %s3896_s2, %s2724_s22  ;;  %s47_s19 = int_to_ptr.vmem [resolvable:$true] %s46_s19 }
   0x9   :  { %p2728_p1 = scmp.lt.u32.totalorder %s2724_s22, %s3896_s2 }
   0xb   :  { %p2730_p2 = pnand %p2728_p1, %p2725_p0 }
   0xd   :  { %2733 = shalt.err (!%p2730_p2)
}
   0xe   :  { %s2734_s27 = scalar_lea.vmem %s47_s19, 1024  ;;  %p2739_p4 = scmp.lt.s32.totalorder %s47_s19, %s47_s19 }
   0xf   :  { %p2735_p3 = scmp.ne.s32.totalorder %s47_s19, %s2734_s27  ;;  %p2740_p5 = scmp.lt.s32.totalorder %s2734_s27, %s2734_s27 }
  0x11   :  { %p2741_p6 = por %p2740_p5, %p2739_p4 }
  0x13   :  { %p2742_p7 = pnand %p2741_p6, %p2735_p3 }
  0x15   :  { %2745 = shalt.err (!%p2742_p7)
}
  0x16   :  { %s2975_s28 = smov 128   ;;  %s2976_s29 = smov 8  }
  0x17   :  { %52 = dma.hbm_to_vmem [thread:$0]  %s3896_s2, 1024, %s47_s19, [#allocation10], %s2975_s28, %s2975_s28, %s2976_s29  }
  0x18   :  { %s2977_s17 = smov [#allocation12]   ;;  %s2978_s20 = smov [#allocation15]  }
  0x19   :  { %s72_s18 = sshll.u32 %s2977_s17, 4  ;;  %s102_s21 = sshll.u32 %s2978_s20, 4  ;;  %s73_s18 = int_to_ptr.vmem [resolvable:$true] %s72_s18  ;;  %s103_s21 = int_to_ptr.vmem [resolvable:$true] %s102_s21 }
  0x1a   :  { %s2746_s24 = scalar_lea.hbm %s3899_s5, 8192 }
  0x1b   :  { %p2747_p8 = scmp.ne.s32.totalorder %s3899_s5, %s2746_s24  ;;  %p2750_p9 = scmp.lt.u32.totalorder %s2746_s24, %s3899_s5 }
  0x1d   :  { %p2752_p10 = pnand %p2750_p9, %p2747_p8 }
  0x1f   :  { %2755 = shalt.err (!%p2752_p10)
}
  0x20   :  { %s2756_s2 = scalar_lea.vmem %s73_s18, 8192  ;;  %p2761_p12 = scmp.lt.s32.totalorder %s73_s18, %s73_s18 }
  0x21   :  { %p2757_p11 = scmp.ne.s32.totalorder %s73_s18, %s2756_s2  ;;  %p2762_p13 = scmp.lt.s32.totalorder %s2756_s2, %s2756_s2 }
  0x23   :  { %p2763_p0 = por %p2762_p13, %p2761_p12 }
  0x25   :  { %p2764_p1 = pnand %p2763_p0, %p2757_p11 }
  0x27   :  { %2767 = shalt.err (!%p2764_p1)
}
  0x28   :  { %s2979_s19 = smov 512   ;;  %s2980_s30 = smov 32  }
  0x29   :  { %78 = dma.hbm_to_vmem [thread:$0]  %s3899_s5, 8192, %s73_s18, [#allocation13], %s2979_s19, %s2979_s19, %s2980_s30  }
  0x2a   :  { %s2768_s22 = scalar_lea.hbm %s3904_s10, 8192 }
  0x2b   :  { %p2769_p2 = scmp.ne.s32.totalorder %s3904_s10, %s2768_s22  ;;  %p2772_p3 = scmp.lt.u32.totalorder %s2768_s22, %s3904_s10 }
  0x2d   :  { %p2774_p4 = pnand %p2772_p3, %p2769_p2 }
  0x2f   :  { %2777 = shalt.err (!%p2774_p4)
}
  0x30   :  { %s2778_s27 = scalar_lea.vmem %s103_s21, 8192  ;;  %p2783_p6 = scmp.lt.s32.totalorder %s103_s21, %s103_s21 }
  0x31   :  { %p2779_p5 = scmp.ne.s32.totalorder %s103_s21, %s2778_s27  ;;  %p2784_p7 = scmp.lt.s32.totalorder %s2778_s27, %s2778_s27 }
  0x33   :  { %p2785_p8 = por %p2784_p7, %p2783_p6 }
  0x35   :  { %p2786_p9 = pnand %p2785_p8, %p2779_p5 }
  0x37   :  { %2789 = shalt.err (!%p2786_p9)
}
  0x38   :  { %108 = dma.hbm_to_vmem [thread:$0]  %s3904_s10, 8192, %s103_s21, [#allocation16], %s2979_s19, %s2979_s19, %s2980_s30  }
  0x39   :  { %s2981_s2 = smov [#allocation6]   ;;  %s2982_s17 = smov [#allocation11]  }
  0x3a   :  { %s32_s16 = sshll.u32 %s2981_s2, 4  ;;  %s60_s15 = sshll.u32 %s2982_s17, 4  ;;  %s33_s16 = int_to_ptr.vmem [resolvable:$true] %s32_s16  ;;  %s61_s15 = int_to_ptr.vmem [resolvable:$true] %s60_s15 }
  0x3b   :  { %s2790_s23 = scalar_lea.hbm %s3894_s0, 1024 }
  0x3c   :  { %p2791_p10 = scmp.ne.s32.totalorder %s3894_s0, %s2790_s23  ;;  %p2794_p11 = scmp.lt.u32.totalorder %s2790_s23, %s3894_s0 }
  0x3e   :  { %p2796_p12 = pnand %p2794_p11, %p2791_p10 }
  0x40   :  { %2799 = shalt.err (!%p2796_p12)
}
  0x41   :  { %s2800_s10 = scalar_lea.vmem %s33_s16, 1024  ;;  %p2805_p0 = scmp.lt.s32.totalorder %s33_s16, %s33_s16 }
  0x42   :  { %p2801_p13 = scmp.ne.s32.totalorder %s33_s16, %s2800_s10  ;;  %p2806_p1 = scmp.lt.s32.totalorder %s2800_s10, %s2800_s10 }
  0x44   :  { %p2807_p2 = por %p2806_p1, %p2805_p0 }
  0x46   :  { %p2808_p3 = pnand %p2807_p2, %p2801_p13 }
  0x48   :  { %2811 = shalt.err (!%p2808_p3)
}
  0x49   :  { %38 = dma.hbm_to_vmem [thread:$0]  %s3894_s0, 1024, %s33_s16, [#allocation7], %s2975_s28, %s2975_s28, %s2976_s29  }
  0x4a   :  { %s2812_s17 = scalar_lea.hbm %s3898_s4, 8192 }
  0x4b   :  { %p2813_p4 = scmp.ne.s32.totalorder %s3898_s4, %s2812_s17  ;;  %p2816_p5 = scmp.lt.u32.totalorder %s2812_s17, %s3898_s4 }
  0x4d   :  { %p2818_p6 = pnand %p2816_p5, %p2813_p4 }
  0x4f   :  { %2821 = shalt.err (!%p2818_p6)
}
  0x50   :  { %s2822_s25 = scalar_lea.vmem %s61_s15, 8192  ;;  %p2827_p8 = scmp.lt.s32.totalorder %s61_s15, %s61_s15 }
  0x51   :  { %p2823_p7 = scmp.ne.s32.totalorder %s61_s15, %s2822_s25  ;;  %p2828_p9 = scmp.lt.s32.totalorder %s2822_s25, %s2822_s25 }
  0x53   :  { %p2829_p10 = por %p2828_p9, %p2827_p8 }
  0x55   :  { %p2830_p11 = pnand %p2829_p10, %p2823_p7 }
  0x57   :  { %2833 = shalt.err (!%p2830_p11)
}
  0x58   :  { %66 = dma.hbm_to_vmem [thread:$0]  %s3898_s4, 8192, %s61_s15, [#allocation10], %s2979_s19, %s2979_s19, %s2980_s30  }
  0x59   :  { %s2983_s26 = smov [#allocation14]   ;;  %s2984_s10 = smov [#allocation17]  }
  0x5a   :  { %s90_s27 = sshll.u32 %s2983_s26, 4  ;;  %s116_s21 = sshll.u32 %s2984_s10, 4  ;;  %s91_s27 = int_to_ptr.vmem [resolvable:$true] %s90_s27  ;;  %s117_s21 = int_to_ptr.vmem [resolvable:$true] %s116_s21 }
  0x5b   :  { %s2834_s2 = scalar_lea.hbm %s3903_s9, 8192 }
  0x5c   :  { %p2835_p12 = scmp.ne.s32.totalorder %s3903_s9, %s2834_s2  ;;  %p2838_p13 = scmp.lt.u32.totalorder %s2834_s2, %s3903_s9 }
  0x5e   :  { %p2840_p0 = pnand %p2838_p13, %p2835_p12 }
  0x60   :  { %2843 = shalt.err (!%p2840_p0)
}
  0x61   :  { %s2844_s4 = scalar_lea.vmem %s91_s27, 8192  ;;  %p2849_p2 = scmp.lt.s32.totalorder %s91_s27, %s91_s27 }
  0x62   :  { %p2845_p1 = scmp.ne.s32.totalorder %s91_s27, %s2844_s4  ;;  %p2850_p3 = scmp.lt.s32.totalorder %s2844_s4, %s2844_s4 }
  0x64   :  { %p2851_p4 = por %p2850_p3, %p2849_p2 }
  0x66   :  { %p2852_p5 = pnand %p2851_p4, %p2845_p1 }
  0x68   :  { %2855 = shalt.err (!%p2852_p5)
}
  0x69   :  { %96 = dma.hbm_to_vmem [thread:$0]  %s3903_s9, 8192, %s91_s27, [#allocation13], %s2979_s19, %s2979_s19, %s2980_s30  }
  0x6a   :  { %s2856_s16 = scalar_lea.hbm %s3906_s12, 2048 }
  0x6b   :  { %p2857_p6 = scmp.ne.s32.totalorder %s3906_s12, %s2856_s16  ;;  %p2860_p7 = scmp.lt.u32.totalorder %s2856_s16, %s3906_s12 }
  0x6d   :  { %p2862_p8 = pnand %p2860_p7, %p2857_p6 }
  0x6f   :  { %2865 = shalt.err (!%p2862_p8)
}
  0x70   :  { %s2866_s2 = scalar_lea.vmem %s117_s21, 2048  ;;  %p2871_p10 = scmp.lt.s32.totalorder %s117_s21, %s117_s21 }
  0x71   :  { %p2867_p9 = scmp.ne.s32.totalorder %s117_s21, %s2866_s2  ;;  %p2872_p11 = scmp.lt.s32.totalorder %s2866_s2, %s2866_s2 }
  0x73   :  { %p2873_p12 = por %p2872_p11, %p2871_p10 }
  0x75   :  { %p2874_p13 = pnand %p2873_p12, %p2867_p9 }
  0x77   :  { %2877 = shalt.err (!%p2874_p13)
}
  0x78   :  { %122 = dma.hbm_to_vmem [thread:$0]  %s3906_s12, 2048, %s117_s21, [#allocation16], %s2975_s28, %s2975_s28, %s2976_s29  }
  0x79   :  { %2942 = dma.done.wait [#allocation7], 1024  }
  0x7a   :  { %2943 = vsyncadd [#allocation7], 4294966272 }
  0x7b   :  { %2944 = dma.done.wait [#allocation10], 9216  }
  0x7c   :  { %2945 = vsyncadd [#allocation10], 4294958080 }
  0x7d   :  { %2946 = dma.done.wait [#allocation13], 16384  }
  0x7e   :  { %2947 = vsyncadd [#allocation13], 4294950912 }
  0x7f   :  { %2948 = dma.done.wait [#allocation16], 10240  }
  0x80   :  { %2949 = vsyncadd [#allocation16], 4294957056  ;;  %v2985_v0 = vmov 0.0   ;;  %v155_v1 = vld [vmem:[#allocation11 + $0x8] sm:$0xff]  ;;  %v157_v3 = vld [vmem:[#allocation11 + $0x18] sm:$0xff] }
  0x81   :  { %304 = vmatprep.mubr.f32.mxu0 %v2985_v0  ;;  %417 = vmatprep.mubr.f32.mxu1 %v2985_v0  ;;  %v159_v2 = vld [vmem:[#allocation11 + $0x28] sm:$0xff]  ;;  %v161_v5 = vld [vmem:[#allocation11 + $0x38] sm:$0xff]  ;;  %v154_v6 = vld [vmem:[#allocation11] sm:$0xff] }
  0x82   :  { %v2314_v4 = vpack.c.bf16 %v159_v2, %v155_v1  ;;  %v158_v7 = vld [vmem:[#allocation11 + $0x20] sm:$0xff]  ;;  %v2346_v8 = vpack.c.bf16 %v161_v5, %v157_v3  ;;  %v156_v10 = vld [vmem:[#allocation11 + $0x10] sm:$0xff]  ;;  %v163_v12 = vld [vmem:[#allocation11 + $0x48] sm:$0xff] }
  0x83   :  { %v2316_v9 = vpack.c.bf16 %v158_v7, %v154_v6  ;;  %v160_v11 = vld [vmem:[#allocation11 + $0x30] sm:$0xff]  ;;  %v167_v14 = vld [vmem:[#allocation11 + $0x68] sm:$0xff]  ;;  %v165_v15 = vld [vmem:[#allocation11 + $0x58] sm:$0xff] }
  0x84   :  { %2315 = vmatprep.subr.bf16.mxu0 %v2314_v4  ;;  %v2348_v13 = vpack.c.bf16 %v160_v11, %v156_v10  ;;  %v169_v16 = vld [vmem:[#allocation11 + $0x78] sm:$0xff]  ;;  %2347 = vmatprep.subr.bf16.mxu1 %v2346_v8  ;;  %v2318_v17 = vpack.c.bf16 %v167_v14, %v163_v12  ;;  %v162_v19 = vld [vmem:[#allocation11 + $0x40] sm:$0xff]  ;;  %v164_v21 = vld [vmem:[#allocation11 + $0x50] sm:$0xff] }
  0x85   :  { %2317 = vmatpush1.bf16.msra.mxu0 %v2316_v9  ;;  %v2350_v18 = vpack.c.bf16 %v169_v16, %v165_v15  ;;  %v166_v20 = vld [vmem:[#allocation11 + $0x60] sm:$0xff]  ;;  %v168_v23 = vld [vmem:[#allocation11 + $0x70] sm:$0xff]  ;;  %v171_v24 = vld [vmem:[#allocation11 + $0x88] sm:$0xff] }
  0x86   :  { %2349 = vmatpush1.bf16.msra.mxu1 %v2348_v13  ;;  %v2320_v22 = vpack.c.bf16 %v166_v20, %v162_v19  ;;  %v175_v25 = vld [vmem:[#allocation11 + $0xa8] sm:$0xff]  ;;  %2319 = vmatprep.subr.bf16.mxu0 %v2318_v17  ;;  %v2352_v26 = vpack.c.bf16 %v168_v23, %v164_v21  ;;  %v173_v28 = vld [vmem:[#allocation11 + $0x98] sm:$0xff]  ;;  %v170_v30 = vld [vmem:[#allocation11 + $0x80] sm:$0xff] }
  0x87   :  { %2351 = vmatprep.subr.bf16.mxu1 %v2350_v18  ;;  %v2322_v27 = vpack.c.bf16 %v175_v25, %v171_v24  ;;  %v177_v29 = vld [vmem:[#allocation11 + $0xb8] sm:$0xff]  ;;  %v174_v32 = vld [vmem:[#allocation11 + $0xa0] sm:$0xff]  ;;  %v172_v33 = vld [vmem:[#allocation11 + $0x90] sm:$0xff] }
  0x88   :  { %v2354_v31 = vpack.c.bf16 %v177_v29, %v173_v28  ;;  %v176_v34 = vld [vmem:[#allocation11 + $0xb0] sm:$0xff]  ;;  %v2324_v35 = vpack.c.bf16 %v174_v32, %v170_v30  ;;  %v179_v36 = vld [vmem:[#allocation11 + $0xc8] sm:$0xff]  ;;  %v181_v38 = vld [vmem:[#allocation11 + $0xd8] sm:$0xff] }
  0x89   :  { %2321 = vmatpush1.bf16.msra.mxu0 %v2320_v22  ;;  %v183_v37 = vld [vmem:[#allocation11 + $0xe8] sm:$0xff]  ;;  %v2356_v39 = vpack.c.bf16 %v176_v34, %v172_v33  ;;  %v185_v41 = vld [vmem:[#allocation11 + $0xf8] sm:$0xff]  ;;  %v178_v42 = vld [vmem:[#allocation11 + $0xc0] sm:$0xff] }
  0x8a   :  { %2353 = vmatpush1.bf16.msra.mxu1 %v2352_v26  ;;  %2323 = vmatprep.subr.bf16.mxu0 %v2322_v27  ;;  %v2326_v40 = vpack.c.bf16 %v183_v37, %v179_v36  ;;  %v182_v43 = vld [vmem:[#allocation11 + $0xe0] sm:$0xff]  ;;  %v2358_v44 = vpack.c.bf16 %v185_v41, %v181_v38  ;;  %v180_v45 = vld [vmem:[#allocation11 + $0xd0] sm:$0xff]  ;;  %v187_v47 = vld [vmem:[#allocation11 + $0x108] sm:$0xff] }
  0x8b   :  { %2355 = vmatprep.subr.bf16.mxu1 %v2354_v31  ;;  %v184_v46 = vld [vmem:[#allocation11 + $0xf0] sm:$0xff]  ;;  %v191_v48 = vld [vmem:[#allocation11 + $0x128] sm:$0xff]  ;;  %v189_v49 = vld [vmem:[#allocation11 + $0x118] sm:$0xff]  ;;  %v2328_v51 = vpack.c.bf16 %v182_v43, %v178_v42 }
  0x8c   :  { %v193_v50 = vld [vmem:[#allocation11 + $0x138] sm:$0xff]  ;;  %v2360_v52 = vpack.c.bf16 %v184_v46, %v180_v45  ;;  %v2330_v53 = vpack.c.bf16 %v191_v48, %v187_v47  ;;  %v186_v54 = vld [vmem:[#allocation11 + $0x100] sm:$0xff]  ;;  %v188_v56 = vld [vmem:[#allocation11 + $0x110] sm:$0xff] }
  0x8d   :  { %2325 = vmatpush1.bf16.msra.mxu0 %v2324_v35  ;;  %v190_v55 = vld [vmem:[#allocation11 + $0x120] sm:$0xff]  ;;  %v2362_v57 = vpack.c.bf16 %v193_v50, %v189_v49  ;;  %v192_v58 = vld [vmem:[#allocation11 + $0x130] sm:$0xff]  ;;  %v195_v59 = vld [vmem:[#allocation11 + $0x148] sm:$0xff] }
  0x8e   :  { %2357 = vmatpush1.bf16.msra.mxu1 %v2356_v39  ;;  %2327 = vmatprep.subr.bf16.mxu0 %v2326_v40  ;;  %v199_v60 = vld [vmem:[#allocation11 + $0x168] sm:$0xff]  ;;  %v197_v61 = vld [vmem:[#allocation11 + $0x158] sm:$0xff]  ;;  %v2332_v63 = vpack.c.bf16 %v190_v55, %v186_v54  ;;  %v2364_v1 = vpack.c.bf16 %v192_v58, %v188_v56  ;;  %v194_v3 = vld [vmem:[#allocation11 + $0x140] sm:$0xff] }
  0x8f   :  { %2359 = vmatprep.subr.bf16.mxu1 %v2358_v44  ;;  %v201_v62 = vld [vmem:[#allocation11 + $0x178] sm:$0xff]  ;;  %v2334_v2 = vpack.c.bf16 %v199_v60, %v195_v59  ;;  %v198_v4 = vld [vmem:[#allocation11 + $0x160] sm:$0xff]  ;;  %v196_v5 = vld [vmem:[#allocation11 + $0x150] sm:$0xff] }
  0x90   :  { %v2366_v6 = vpack.c.bf16 %v201_v62, %v197_v61  ;;  %v200_v7 = vld [vmem:[#allocation11 + $0x170] sm:$0xff]  ;;  %v203_v8 = vld [vmem:[#allocation11 + $0x188] sm:$0xff]  ;;  %v205_v10 = vld [vmem:[#allocation11 + $0x198] sm:$0xff]  ;;  %v2336_v12 = vpack.c.bf16 %v198_v4, %v194_v3 }
  0x91   :  { %2329 = vmatpush1.bf16.msra.mxu0 %v2328_v51  ;;  %v207_v9 = vld [vmem:[#allocation11 + $0x1a8] sm:$0xff]  ;;  %v209_v11 = vld [vmem:[#allocation11 + $0x1b8] sm:$0xff]  ;;  %v2368_v13 = vpack.c.bf16 %v200_v7, %v196_v5  ;;  %v202_v15 = vld [vmem:[#allocation11 + $0x180] sm:$0xff] }
  0x92   :  { %2361 = vmatpush1.bf16.msra.mxu1 %v2360_v52  ;;  %2331 = vmatprep.subr.bf16.mxu0 %v2330_v53  ;;  %v2338_v14 = vpack.c.bf16 %v207_v9, %v203_v8  ;;  %v206_v16 = vld [vmem:[#allocation11 + $0x1a0] sm:$0xff]  ;;  %v204_v17 = vld [vmem:[#allocation11 + $0x190] sm:$0xff]  ;;  %v2370_v18 = vpack.c.bf16 %v209_v11, %v205_v10  ;;  %v211_v20 = vld [vmem:[#allocation11 + $0x1c8] sm:$0xff] }
  0x93   :  { %2363 = vmatprep.subr.bf16.mxu1 %v2362_v57  ;;  %v208_v19 = vld [vmem:[#allocation11 + $0x1b0] sm:$0xff]  ;;  %v215_v21 = vld [vmem:[#allocation11 + $0x1e8] sm:$0xff]  ;;  %v213_v22 = vld [vmem:[#allocation11 + $0x1d8] sm:$0xff]  ;;  %v2340_v24 = vpack.c.bf16 %v206_v16, %v202_v15 }
  0x94   :  { %v217_v23 = vld [vmem:[#allocation11 + $0x1f8] sm:$0xff]  ;;  %v2372_v25 = vpack.c.bf16 %v208_v19, %v204_v17  ;;  %v2342_v26 = vpack.c.bf16 %v215_v21, %v211_v20  ;;  %v210_v27 = vld [vmem:[#allocation11 + $0x1c0] sm:$0xff]  ;;  %v212_v29 = vld [vmem:[#allocation11 + $0x1d0] sm:$0xff] }
  0x95   :  { %2333 = vmatpush1.bf16.msra.mxu0 %v2332_v63  ;;  %v214_v28 = vld [vmem:[#allocation11 + $0x1e0] sm:$0xff]  ;;  %v2374_v30 = vpack.c.bf16 %v217_v23, %v213_v22  ;;  %v216_v31 = vld [vmem:[#allocation11 + $0x1f0] sm:$0xff]  ;;  %v507_v32 = vld [vmem:[#allocation14 + $0x8] sm:$0xff] }
  0x96   :  { %2365 = vmatpush1.bf16.msra.mxu1 %v2364_v1  ;;  %2335 = vmatprep.subr.bf16.mxu0 %v2334_v2  ;;  %v511_v33 = vld [vmem:[#allocation14 + $0x28] sm:$0xff]  ;;  %v509_v34 = vld [vmem:[#allocation14 + $0x18] sm:$0xff]  ;;  %v2344_v36 = vpack.c.bf16 %v214_v28, %v210_v27  ;;  %v2376_v37 = vpack.c.bf16 %v216_v31, %v212_v29  ;;  %v506_v39 = vld [vmem:[#allocation14] sm:$0xff] }
  0x97   :  { %2367 = vmatprep.subr.bf16.mxu1 %v2366_v6  ;;  %v513_v35 = vld [vmem:[#allocation14 + $0x38] sm:$0xff]  ;;  %v2378_v38 = vpack.c.bf16 %v511_v33, %v507_v32  ;;  %v510_v40 = vld [vmem:[#allocation14 + $0x20] sm:$0xff]  ;;  %v508_v42 = vld [vmem:[#allocation14 + $0x10] sm:$0xff] }
  0x98   :  { %v2410_v41 = vpack.c.bf16 %v513_v35, %v509_v34  ;;  %v512_v43 = vld [vmem:[#allocation14 + $0x30] sm:$0xff]  ;;  %v515_v44 = vld [vmem:[#allocation14 + $0x48] sm:$0xff]  ;;  %v146_v46 = vld [vmem:[#allocation6] sm:$0xff]  ;;  %v2380_v47 = vpack.c.bf16 %v510_v40, %v506_v39 }
  0x99   :  { %2337 = vmatpush1.bf16.msra.mxu0 %v2336_v12  ;;  %v519_v45 = vld [vmem:[#allocation14 + $0x68] sm:$0xff]  ;;  %v517_v48 = vld [vmem:[#allocation14 + $0x58] sm:$0xff]  ;;  %v2412_v50 = vpack.c.bf16 %v512_v43, %v508_v42  ;;  %v514_v51 = vld [vmem:[#allocation14 + $0x40] sm:$0xff] }
  0x9a   :  { %2369 = vmatpush1.bf16.msra.mxu1 %v2368_v13  ;;  %2339 = vmatprep.subr.bf16.mxu0 %v2338_v14  ;;  %v521_v49 = vld [vmem:[#allocation14 + $0x78] sm:$0xff]  ;;  %v518_v52 = vld [vmem:[#allocation14 + $0x60] sm:$0xff]  ;;  %v2382_v53 = vpack.c.bf16 %v519_v45, %v515_v44  ;;  %v516_v54 = vld [vmem:[#allocation14 + $0x50] sm:$0xff] }
  0x9b   :  { %2371 = vmatprep.subr.bf16.mxu1 %v2370_v18  ;;  %v520_v55 = vld [vmem:[#allocation14 + $0x70] sm:$0xff]  ;;  %v2414_v56 = vpack.c.bf16 %v521_v49, %v517_v48  ;;  %v523_v57 = vld [vmem:[#allocation14 + $0x88] sm:$0xff]  ;;  %v2384_v60 = vpack.c.bf16 %v518_v52, %v514_v51  ;;  %v525_v61 = vld [vmem:[#allocation14 + $0x98] sm:$0xff] }
  0x9c   :  { %v527_v58 = vld [vmem:[#allocation14 + $0xa8] sm:$0xff]  ;;  %v529_v62 = vld [vmem:[#allocation14 + $0xb8] sm:$0xff]  ;;  %v2416_v63 = vpack.c.bf16 %v520_v55, %v516_v54  ;;  %v522_v1 = vld [vmem:[#allocation14 + $0x80] sm:$0xff] }
  0x9d   :  { %2341 = vmatpush1.bf16.msra.mxu0 %v2340_v24  ;;  %v147_v59 = vld [vmem:[#allocation6 + $0x8] sm:$0xff]  ;;  %v526_v2 = vld [vmem:[#allocation14 + $0xa0] sm:$0xff]  ;;  %v2386_v3 = vpack.c.bf16 %v527_v58, %v523_v57  ;;  %v524_v4 = vld [vmem:[#allocation14 + $0x90] sm:$0xff]  ;;  %v2418_v6 = vpack.c.bf16 %v529_v62, %v525_v61 }
  0x9e   :  { %2373 = vmatpush1.bf16.msra.mxu1 %v2372_v25  ;;  %2343 = vmatprep.subr.bf16.mxu0 %v2342_v26  ;;  %v528_v5 = vld [vmem:[#allocation14 + $0xb0] sm:$0xff]  ;;  %v531_v7 = vld [vmem:[#allocation14 + $0xc8] sm:$0xff]  ;;  %v2388_v10 = vpack.c.bf16 %v526_v2, %v522_v1  ;;  %v533_v11 = vld [vmem:[#allocation14 + $0xd8] sm:$0xff] }
  0x9f   :  { %2375 = vmatprep.subr.bf16.mxu1 %v2374_v30  ;;  %v535_v8 = vld [vmem:[#allocation14 + $0xe8] sm:$0xff]  ;;  %v148_v9 = vld [vmem:[#allocation6 + $0x10] sm:$0xff]  ;;  %v537_v12 = vld [vmem:[#allocation14 + $0xf8] sm:$0xff]  ;;  %v2420_v13 = vpack.c.bf16 %v528_v5, %v524_v4 }
  0xa0   :  { %v530_v14 = vld [vmem:[#allocation14 + $0xc0] sm:$0xff]  ;;  %v2390_v16 = vpack.c.bf16 %v535_v8, %v531_v7  ;;  %v532_v17 = vld [vmem:[#allocation14 + $0xd0] sm:$0xff]  ;;  %v2422_v19 = vpack.c.bf16 %v537_v12, %v533_v11  ;;  %v539_v20 = vld [vmem:[#allocation14 + $0x108] sm:$0xff] }
  0xa1   :  { %2345 = vmatpush1.bf16.msra.mxu0 %v2344_v36  ;;  %v534_v15 = vld [vmem:[#allocation14 + $0xe0] sm:$0xff]  ;;  %v536_v18 = vld [vmem:[#allocation14 + $0xf0] sm:$0xff]  ;;  %v543_v21 = vld [vmem:[#allocation14 + $0x128] sm:$0xff] }
  0xa2   :  { %2377 = vmatpush1.bf16.msra.mxu1 %v2376_v37  ;;  %2379 = vmatprep.subr.bf16.mxu0 %v2378_v38  ;;  %v149_v22 = vld [vmem:[#allocation6 + $0x18] sm:$0xff]  ;;  %v2392_v23 = vpack.c.bf16 %v534_v15, %v530_v14  ;;  %v2424_v26 = vpack.c.bf16 %v536_v18, %v532_v17  ;;  %v538_v27 = vld [vmem:[#allocation14 + $0x100] sm:$0xff]  ;;  %v2394_v29 = vpack.c.bf16 %v543_v21, %v539_v20  ;;  %v540_v30 = vld [vmem:[#allocation14 + $0x110] sm:$0xff]  ;;  %v220_v20 = vlaneseq }
  0xa3   :  { %2411 = vmatprep.subr.bf16.mxu1 %v2410_v41  ;;  %v541_v24 = vld [vmem:[#allocation14 + $0x118] sm:$0xff]  ;;  %v542_v28 = vld [vmem:[#allocation14 + $0x120] sm:$0xff]  ;;  %v544_v31 = vld [vmem:[#allocation14 + $0x130] sm:$0xff] }
  0xa4   :  { %305 = vmatmul.mubr.f32.vlgmr.msra.gmra.mrb[0].mxu0 %v146_v46  ;;  %v545_v25 = vld [vmem:[#allocation14 + $0x138] sm:$0xff]  ;;  %v547_v33 = vld [vmem:[#allocation14 + $0x148] sm:$0xff]  ;;  %v150_v35 = vld [vmem:[#allocation6 + $0x20] sm:$0xff]  ;;  %v2396_v36 = vpack.c.bf16 %v542_v28, %v538_v27  ;;  %v2428_v39 = vpack.c.bf16 %v544_v31, %v540_v30  ;;  %v3207_v21 = vshrl.u32 %v220_v20, 7 }
  0xa5   :  { %418 = vmatmul.mubr.f32.vlgmr.msra.gmra.mrb[0].mxu1 %v146_v46  ;;  %2381 = vmatpush1.bf16.msra.mxu0 %v2380_v47  ;;  %v2426_v32 = vpack.c.bf16 %v545_v25, %v541_v24  ;;  %v551_v34 = vld [vmem:[#allocation14 + $0x168] sm:$0xff]  ;;  %v549_v37 = vld [vmem:[#allocation14 + $0x158] sm:$0xff]  ;;  %v546_v40 = vld [vmem:[#allocation14 + $0x140] sm:$0xff] }
  0xa6   :  { %2413 = vmatpush1.bf16.msra.mxu1 %v2412_v50  ;;  %310 = vmatprep.mubr.f32.mxu0 %v2985_v0  ;;  %v553_v38 = vld [vmem:[#allocation14 + $0x178] sm:$0xff]  ;;  %v550_v41 = vld [vmem:[#allocation14 + $0x160] sm:$0xff]  ;;  %v2398_v42 = vpack.c.bf16 %v551_v34, %v547_v33  ;;  %v548_v43 = vld [vmem:[#allocation14 + $0x150] sm:$0xff]  ;;  %v230_v24 = vsub.s32 2, %v3207_v21  ;;  %v226_v25 = vsub.s32 1, %v3207_v21 }
  0xa7   :  { %423 = vmatprep.mubr.f32.mxu1 %v2985_v0  ;;  %2383 = vmatprep.subr.bf16.mxu0 %v2382_v53  ;;  %v552_v44 = vld [vmem:[#allocation14 + $0x170] sm:$0xff]  ;;  %v2430_v45 = vpack.c.bf16 %v553_v38, %v549_v37  ;;  %v555_v46 = vld [vmem:[#allocation14 + $0x188] sm:$0xff]  ;;  %v2400_v49 = vpack.c.bf16 %v550_v41, %v546_v40  ;;  %v557_v50 = vld [vmem:[#allocation14 + $0x198] sm:$0xff] }
  0xa8   :  { %311 = vmatmul.mubr.f32.gmra.mrb[2].mxu0 %v147_v59  ;;  %2415 = vmatprep.subr.bf16.mxu1 %v2414_v56  ;;  %v559_v47 = vld [vmem:[#allocation14 + $0x1a8] sm:$0xff]  ;;  %v561_v51 = vld [vmem:[#allocation14 + $0x1b8] sm:$0xff]  ;;  %v2432_v52 = vpack.c.bf16 %v552_v44, %v548_v43  ;;  %v554_v53 = vld [vmem:[#allocation14 + $0x180] sm:$0xff] }
  0xa9   :  { %424 = vmatmul.mubr.f32.gmra.mrb[2].mxu1 %v147_v59  ;;  %2385 = vmatpush1.bf16.msra.mxu0 %v2384_v60  ;;  %v151_v48 = vld [vmem:[#allocation6 + $0x28] sm:$0xff]  ;;  %v558_v54 = vld [vmem:[#allocation14 + $0x1a0] sm:$0xff]  ;;  %v2402_v55 = vpack.c.bf16 %v559_v47, %v555_v46  ;;  %v556_v56 = vld [vmem:[#allocation14 + $0x190] sm:$0xff]  ;;  %v2434_v58 = vpack.c.bf16 %v561_v51, %v557_v50 }
  0xaa   :  { %2417 = vmatpush1.bf16.msra.mxu1 %v2416_v63  ;;  %316 = vmatprep.mubr.f32.mxu0 %v2985_v0  ;;  %v560_v57 = vld [vmem:[#allocation14 + $0x1b0] sm:$0xff]  ;;  %v563_v59 = vld [vmem:[#allocation14 + $0x1c8] sm:$0xff]  ;;  %v2404_v62 = vpack.c.bf16 %v558_v54, %v554_v53  ;;  %v565_v63 = vld [vmem:[#allocation14 + $0x1d8] sm:$0xff] }
  0xab   :  { %429 = vmatprep.mubr.f32.mxu1 %v2985_v0  ;;  %2387 = vmatprep.subr.bf16.mxu0 %v2386_v3  ;;  %v567_v60 = vld [vmem:[#allocation14 + $0x1e8] sm:$0xff]  ;;  %v152_v61 = vld [vmem:[#allocation6 + $0x30] sm:$0xff]  ;;  %v569_v1 = vld [vmem:[#allocation14 + $0x1f8] sm:$0xff]  ;;  %v2436_v2 = vpack.c.bf16 %v560_v57, %v556_v56 }
  0xac   :  { %317 = vmatmul.mubr.f32.gmra.mrb[4].mxu0 %v148_v9  ;;  %2419 = vmatprep.subr.bf16.mxu1 %v2418_v6  ;;  %v562_v3 = vld [vmem:[#allocation14 + $0x1c0] sm:$0xff]  ;;  %v2406_v5 = vpack.c.bf16 %v567_v60, %v563_v59  ;;  %v564_v6 = vld [vmem:[#allocation14 + $0x1d0] sm:$0xff]  ;;  %v2438_v8 = vpack.c.bf16 %v569_v1, %v565_v63  ;;  %v501_v15 = vld [vmem:[#allocation9 + $0x18] sm:$0xff] }
  0xad   :  { %430 = vmatmul.mubr.f32.gmra.mrb[4].mxu1 %v148_v9  ;;  %2389 = vmatpush1.bf16.msra.mxu0 %v2388_v10  ;;  %v566_v4 = vld [vmem:[#allocation14 + $0x1e0] sm:$0xff]  ;;  %v568_v7 = vld [vmem:[#allocation14 + $0x1f0] sm:$0xff]  ;;  %v153_v9 = vld [vmem:[#allocation6 + $0x38] sm:$0xff] }
  0xae   :  { %2421 = vmatpush1.bf16.msra.mxu1 %v2420_v13  ;;  %322 = vmatprep.mubr.f32.mxu0 %v2985_v0  ;;  %v2408_v10 = vpack.c.bf16 %v566_v4, %v562_v3  ;;  %v2440_v11 = vpack.c.bf16 %v568_v7, %v564_v6  ;;  %v498_v12 = vld [vmem:[#allocation9] sm:$0xff]  ;;  %v499_v13 = vld [vmem:[#allocation9 + $0x8] sm:$0xff]  ;;  %v500_v14 = vld [vmem:[#allocation9 + $0x10] sm:$0xff] }
  0xaf   :  { %435 = vmatprep.mubr.f32.mxu1 %v2985_v0  ;;  %2391 = vmatprep.subr.bf16.mxu0 %v2390_v16  ;;  %v502_v16 = vld [vmem:[#allocation9 + $0x20] sm:$0xff]  ;;  %v503_v17 = vld [vmem:[#allocation9 + $0x28] sm:$0xff]  ;;  %v504_v18 = vld [vmem:[#allocation9 + $0x30] sm:$0xff] }
  0xb0   :  { %323 = vmatmul.mubr.f32.gmra.mrb[6].mxu0 %v149_v22  ;;  %2423 = vmatprep.subr.bf16.mxu1 %v2422_v19  ;;  %v505_v19 = vld [vmem:[#allocation9 + $0x38] sm:$0xff] }
  0xb1   :  { %436 = vmatmul.mubr.f32.gmra.mrb[6].mxu1 %v149_v22  ;;  %2393 = vmatpush1.bf16.msra.mxu0 %v2392_v23  ;;  %v222_v22 = vsub.s32 0, %v3207_v21  ;;  %v218_v23 = vld [vmem:[%s3900_s6] sm:$0xf] }
  0xb2   :  { %2425 = vmatpush1.bf16.msra.mxu1 %v2424_v26  ;;  %328 = vmatprep.mubr.f32.mxu0 %v2985_v0  ;;  %v234_v26 = vsub.s32 3, %v3207_v21  ;;  %v3222_v28 = vrot.slane %v218_v23, %v230_v24 }
  0xb3   :  { %441 = vmatprep.mubr.f32.mxu1 %v2985_v0  ;;  %2395 = vmatprep.subr.bf16.mxu0 %v2394_v29  ;;  %v3218_v27 = vrot.slane %v218_v23, %v222_v22  ;;  %v3226_v29 = vrot.slane %v218_v23, %v226_v25 }
  0xb4   :  { %329 = vmatmul.mubr.f32.gmra.mrb[8].mxu0 %v150_v35  ;;  %2427 = vmatprep.subr.bf16.mxu1 %v2426_v32  ;;  %v3230_v30 = vrot.slane %v218_v23, %v234_v26 }
  0xb5   :  { %442 = vmatmul.mubr.f32.gmra.mrb[8].mxu1 %v150_v35  ;;  %2397 = vmatpush1.bf16.msra.mxu0 %v2396_v36 }
  0xb6   :  { %2429 = vmatpush1.bf16.msra.mxu1 %v2428_v39  ;;  %334 = vmatprep.mubr.f32.mxu0 %v2985_v0 }
  0xb7   :  { %447 = vmatprep.mubr.f32.mxu1 %v2985_v0  ;;  %2399 = vmatprep.subr.bf16.mxu0 %v2398_v42 }
  0xb8   :  { %335 = vmatmul.mubr.f32.gmra.mrb[10].mxu0 %v151_v48  ;;  %2431 = vmatprep.subr.bf16.mxu1 %v2430_v45 }
  0xb9   :  { %448 = vmatmul.mubr.f32.gmra.mrb[10].mxu1 %v151_v48  ;;  %2401 = vmatpush1.bf16.msra.mxu0 %v2400_v49 }
  0xba   :  { %2433 = vmatpush1.bf16.msra.mxu1 %v2432_v52  ;;  %340 = vmatprep.mubr.f32.mxu0 %v2985_v0 }
  0xbb   :  { %453 = vmatprep.mubr.f32.mxu1 %v2985_v0  ;;  %2403 = vmatprep.subr.bf16.mxu0 %v2402_v55 }
  0xbc   :  { %341 = vmatmul.mubr.f32.gmra.mrb[12].mxu0 %v152_v61  ;;  %2435 = vmatprep.subr.bf16.mxu1 %v2434_v58 }
  0xbd   :  { %454 = vmatmul.mubr.f32.gmra.mrb[12].mxu1 %v152_v61  ;;  %2405 = vmatpush1.bf16.msra.mxu0 %v2404_v62 }
  0xbe   :  { %2437 = vmatpush1.bf16.msra.mxu1 %v2436_v2  ;;  %346 = vmatprep.mubr.f32.mxu0 %v2985_v0 }
  0xbf   :  { %459 = vmatprep.mubr.f32.mxu1 %v2985_v0  ;;  %2407 = vmatprep.subr.bf16.mxu0 %v2406_v5 }
  0xc0   :  { %347 = vmatmul.mubr.f32.gmra.mrb[14].mxu0 %v153_v9  ;;  %2439 = vmatprep.subr.bf16.mxu1 %v2438_v8 }
  0xc1   :  { %460 = vmatmul.mubr.f32.gmra.mrb[14].mxu1 %v153_v9  ;;  %2409 = vmatpush1.bf16.msra.mxu0 %v2408_v10 }
  0xc2   :  { %2441 = vmatpush1.bf16.msra.mxu1 %v2440_v11  ;;  %656 = vmatprep.mubr.f32.mxu0 %v2985_v0 }
  0xc3   :  { %769 = vmatprep.mubr.f32.mxu1 %v2985_v0 }
  0xc4   :  { %657 = vmatmul.mubr.f32.vlgmr.msra.gmra.mrb[16].mxu0 %v498_v12 }
  0xc5   :  { %770 = vmatmul.mubr.f32.vlgmr.msra.gmra.mrb[16].mxu1 %v498_v12  ;;  %662 = vmatprep.mubr.f32.mxu0 %v2985_v0 }
  0xc6   :  { %775 = vmatprep.mubr.f32.mxu1 %v2985_v0 }
  0xc8   :  { %663 = vmatmul.mubr.f32.gmra.mrb[18].mxu0 %v499_v13 }
  0xc9   :  { %776 = vmatmul.mubr.f32.gmra.mrb[18].mxu1 %v499_v13  ;;  %668 = vmatprep.mubr.f32.mxu0 %v2985_v0 }
  0xca   :  { %781 = vmatprep.mubr.f32.mxu1 %v2985_v0 }
  0xcc   :  { %669 = vmatmul.mubr.f32.gmra.mrb[20].mxu0 %v500_v14 }
  0xcd   :  { %782 = vmatmul.mubr.f32.gmra.mrb[20].mxu1 %v500_v14  ;;  %674 = vmatprep.mubr.f32.mxu0 %v2985_v0 }
  0xce   :  { %787 = vmatprep.mubr.f32.mxu1 %v2985_v0 }
  0xd0   :  { %675 = vmatmul.mubr.f32.gmra.mrb[22].mxu0 %v501_v15 }
  0xd1   :  { %788 = vmatmul.mubr.f32.gmra.mrb[22].mxu1 %v501_v15  ;;  %680 = vmatprep.mubr.f32.mxu0 %v2985_v0 }
  0xd2   :  { %793 = vmatprep.mubr.f32.mxu1 %v2985_v0 }
  0xd4   :  { %681 = vmatmul.mubr.f32.gmra.mrb[24].mxu0 %v502_v16 }
  0xd5   :  { %794 = vmatmul.mubr.f32.gmra.mrb[24].mxu1 %v502_v16  ;;  %686 = vmatprep.mubr.f32.mxu0 %v2985_v0 }
  0xd6   :  { %799 = vmatprep.mubr.f32.mxu1 %v2985_v0 }
  0xd8   :  { %687 = vmatmul.mubr.f32.gmra.mrb[26].mxu0 %v503_v17 }
  0xd9   :  { %800 = vmatmul.mubr.f32.gmra.mrb[26].mxu1 %v503_v17  ;;  %692 = vmatprep.mubr.f32.mxu0 %v2985_v0 }
  0xda   :  { %805 = vmatprep.mubr.f32.mxu1 %v2985_v0 }
  0xdc   :  { %693 = vmatmul.mubr.f32.gmra.mrb[28].mxu0 %v504_v18 }
  0xdd   :  { %806 = vmatmul.mubr.f32.gmra.mrb[28].mxu1 %v504_v18  ;;  %698 = vmatprep.mubr.f32.mxu0 %v2985_v0 }
  0xde   :  { %811 = vmatprep.mubr.f32.mxu1 %v2985_v0 }
  0xe0   :  { %699 = vmatmul.mubr.f32.gmra.mrb[30].mxu0 %v505_v19 }
  0xe1   :  { %812 = vmatmul.mubr.f32.gmra.mrb[30].mxu1 %v505_v19 }
 0x177   :  { %v306_v31 = vpop.f32.mrb[0].mxu0 }
 0x178   :  { %v307_v32 = vadd.f32 %v306_v31, %v3218_v27  ;;  %v419_v33 = vpop.f32.mrb[0].mxu1  ;;  %v308_v34 = vpop.f32.mrb[1].mxu0 }
 0x179   :  { %v420_v35 = vadd.f32 %v419_v33, %v3222_v28  ;;  %v309_v36 = vadd.f32 %v308_v34, %v3226_v29  ;;  %v421_v37 = vpop.f32.mrb[1].mxu1 }
 0x17a   :  { %466 = vst [vmem:[#allocation2] sm:$0xff] %v307_v32  ;;  %v422_v38 = vadd.f32 %v421_v37, %v3230_v30  ;;  %v570_v32 = vld [vmem:[%s3905_s11] sm:$0xf]  ;;  %s3323_s11 = smov 0  }
 0x17b   :  { %468 = vst [vmem:[#allocation2 + $0x10] sm:$0xff] %v420_v35  ;;  %467 = vst [vmem:[#allocation2 + $0x8] sm:$0xff] %v309_v36  ;;  %v312_v39 = vpop.f32.mrb[2].mxu0 }
 0x17c   :  { %469 = vst [vmem:[#allocation2 + $0x18] sm:$0xff] %v422_v38  ;;  %v313_v40 = vadd.f32 %v312_v39, %v3218_v27  ;;  %v425_v41 = vpop.f32.mrb[2].mxu1  ;;  %v314_v42 = vpop.f32.mrb[3].mxu0  ;;  %v3266_v38 = vrot.slane %v570_v32, %v222_v22  ;;  %v3281_v22 = vrot.slane %v570_v32, %v234_v26 }
 0x17d   :  { %v426_v43 = vadd.f32 %v425_v41, %v3222_v28  ;;  %v315_v44 = vadd.f32 %v314_v42, %v3226_v29  ;;  %v427_v45 = vpop.f32.mrb[3].mxu1  ;;  %v3272_v42 = vrot.slane %v570_v32, %v230_v24 }
 0x17e   :  { %470 = vst [vmem:[#allocation2 + $0x20] sm:$0xff] %v313_v40  ;;  %v428_v46 = vadd.f32 %v427_v45, %v3230_v30 }
 0x17f   :  { %472 = vst [vmem:[#allocation2 + $0x30] sm:$0xff] %v426_v43  ;;  %471 = vst [vmem:[#allocation2 + $0x28] sm:$0xff] %v315_v44  ;;  %v318_v47 = vpop.f32.mrb[4].mxu0  ;;  %v3276_v43 = vrot.slane %v570_v32, %v226_v25 }
 0x180   :  { %473 = vst [vmem:[#allocation2 + $0x38] sm:$0xff] %v428_v46  ;;  %v319_v48 = vadd.f32 %v318_v47, %v3218_v27  ;;  %v431_v49 = vpop.f32.mrb[4].mxu1  ;;  %v320_v50 = vpop.f32.mrb[5].mxu0 }
 0x181   :  { %v432_v51 = vadd.f32 %v431_v49, %v3222_v28  ;;  %v321_v52 = vadd.f32 %v320_v50, %v3226_v29  ;;  %v433_v53 = vpop.f32.mrb[5].mxu1 }
 0x182   :  { %474 = vst [vmem:[#allocation2 + $0x40] sm:$0xff] %v319_v48  ;;  %v434_v54 = vadd.f32 %v433_v53, %v3230_v30 }
 0x183   :  { %476 = vst [vmem:[#allocation2 + $0x50] sm:$0xff] %v432_v51  ;;  %475 = vst [vmem:[#allocation2 + $0x48] sm:$0xff] %v321_v52  ;;  %v324_v55 = vpop.f32.mrb[6].mxu0 }
 0x184   :  { %477 = vst [vmem:[#allocation2 + $0x58] sm:$0xff] %v434_v54  ;;  %v325_v56 = vadd.f32 %v324_v55, %v3218_v27  ;;  %v437_v57 = vpop.f32.mrb[6].mxu1  ;;  %v326_v58 = vpop.f32.mrb[7].mxu0 }
 0x185   :  { %v438_v59 = vadd.f32 %v437_v57, %v3222_v28  ;;  %v327_v60 = vadd.f32 %v326_v58, %v3226_v29  ;;  %v439_v61 = vpop.f32.mrb[7].mxu1 }
 0x186   :  { %478 = vst [vmem:[#allocation2 + $0x60] sm:$0xff] %v325_v56  ;;  %v440_v62 = vadd.f32 %v439_v61, %v3230_v30 }
 0x187   :  { %480 = vst [vmem:[#allocation2 + $0x70] sm:$0xff] %v438_v59  ;;  %479 = vst [vmem:[#allocation2 + $0x68] sm:$0xff] %v327_v60  ;;  %v330_v63 = vpop.f32.mrb[8].mxu0 }
 0x188   :  { %481 = vst [vmem:[#allocation2 + $0x78] sm:$0xff] %v440_v62  ;;  %v331_v1 = vadd.f32 %v330_v63, %v3218_v27  ;;  %v443_v2 = vpop.f32.mrb[8].mxu1  ;;  %v332_v3 = vpop.f32.mrb[9].mxu0 }
 0x189   :  { %v444_v4 = vadd.f32 %v443_v2, %v3222_v28  ;;  %v333_v5 = vadd.f32 %v332_v3, %v3226_v29  ;;  %v445_v6 = vpop.f32.mrb[9].mxu1 }
 0x18a   :  { %482 = vst [vmem:[#allocation2 + $0x80] sm:$0xff] %v331_v1  ;;  %v446_v7 = vadd.f32 %v445_v6, %v3230_v30 }
 0x18b   :  { %484 = vst [vmem:[#allocation2 + $0x90] sm:$0xff] %v444_v4  ;;  %483 = vst [vmem:[#allocation2 + $0x88] sm:$0xff] %v333_v5  ;;  %v336_v8 = vpop.f32.mrb[10].mxu0 }
 0x18c   :  { %485 = vst [vmem:[#allocation2 + $0x98] sm:$0xff] %v446_v7  ;;  %v337_v9 = vadd.f32 %v336_v8, %v3218_v27  ;;  %v449_v10 = vpop.f32.mrb[10].mxu1  ;;  %v338_v11 = vpop.f32.mrb[11].mxu0 }
 0x18d   :  { %v450_v12 = vadd.f32 %v449_v10, %v3222_v28  ;;  %v339_v13 = vadd.f32 %v338_v11, %v3226_v29  ;;  %v451_v14 = vpop.f32.mrb[11].mxu1 }
 0x18e   :  { %486 = vst [vmem:[#allocation2 + $0xa0] sm:$0xff] %v337_v9  ;;  %v452_v15 = vadd.f32 %v451_v14, %v3230_v30 }
 0x18f   :  { %488 = vst [vmem:[#allocation2 + $0xb0] sm:$0xff] %v450_v12  ;;  %487 = vst [vmem:[#allocation2 + $0xa8] sm:$0xff] %v339_v13  ;;  %v342_v16 = vpop.f32.mrb[12].mxu0 }
 0x190   :  { %489 = vst [vmem:[#allocation2 + $0xb8] sm:$0xff] %v452_v15  ;;  %v343_v17 = vadd.f32 %v342_v16, %v3218_v27  ;;  %v455_v18 = vpop.f32.mrb[12].mxu1  ;;  %v344_v19 = vpop.f32.mrb[13].mxu0 }
 0x191   :  { %v456_v20 = vadd.f32 %v455_v18, %v3222_v28  ;;  %v345_v23 = vadd.f32 %v344_v19, %v3226_v29  ;;  %v457_v31 = vpop.f32.mrb[13].mxu1 }
 0x192   :  { %490 = vst [vmem:[#allocation2 + $0xc0] sm:$0xff] %v343_v17  ;;  %v458_v33 = vadd.f32 %v457_v31, %v3230_v30 }
 0x193   :  { %492 = vst [vmem:[#allocation2 + $0xd0] sm:$0xff] %v456_v20  ;;  %491 = vst [vmem:[#allocation2 + $0xc8] sm:$0xff] %v345_v23  ;;  %v348_v34 = vpop.f32.mrb[14].mxu0 }
 0x194   :  { %493 = vst [vmem:[#allocation2 + $0xd8] sm:$0xff] %v458_v33  ;;  %v349_v35 = vadd.f32 %v348_v34, %v3218_v27  ;;  %v461_v36 = vpop.f32.mrb[14].mxu1  ;;  %v350_v37 = vpop.f32.mrb[15].mxu0 }
 0x195   :  { %v462_v39 = vadd.f32 %v461_v36, %v3222_v28  ;;  %v351_v40 = vadd.f32 %v350_v37, %v3226_v29  ;;  %v463_v41 = vpop.f32.mrb[15].mxu1 }
 0x196   :  { %494 = vst [vmem:[#allocation2 + $0xe0] sm:$0xff] %v349_v35  ;;  %v464_v27 = vadd.f32 %v463_v41, %v3230_v30 }
 0x197   :  { %496 = vst [vmem:[#allocation2 + $0xf0] sm:$0xff] %v462_v39  ;;  %495 = vst [vmem:[#allocation2 + $0xe8] sm:$0xff] %v351_v40  ;;  %v658_v28 = vpop.f32.mrb[16].mxu0 }
 0x198   :  { %497 = vst [vmem:[#allocation2 + $0xf8] sm:$0xff] %v464_v27  ;;  %v659_v29 = vadd.f32 %v658_v28, %v3266_v38  ;;  %v771_v44 = vpop.f32.mrb[16].mxu1  ;;  %v660_v24 = vpop.f32.mrb[17].mxu0 }
 0x199   :  { %v772_v45 = vadd.f32 %v771_v44, %v3272_v42  ;;  %v661_v25 = vadd.f32 %v660_v24, %v3276_v43  ;;  %v773_v46 = vpop.f32.mrb[17].mxu1 }
 0x19a   :  { %818 = vst [vmem:[#allocation3] sm:$0xff] %v659_v29  ;;  %v774_v30 = vadd.f32 %v773_v46, %v3281_v22  ;;  %v3317_v46 = vmov 0.0  }
 0x19b   :  { %820 = vst [vmem:[#allocation3 + $0x10] sm:$0xff] %v772_v45  ;;  %819 = vst [vmem:[#allocation3 + $0x8] sm:$0xff] %v661_v25  ;;  %v664_v21 = vpop.f32.mrb[18].mxu0  ;;  %v3315_v25 = vmov 0.0  }
 0x19c   :  { %821 = vst [vmem:[#allocation3 + $0x18] sm:$0xff] %v774_v30  ;;  %v665_v26 = vadd.f32 %v664_v21, %v3266_v38  ;;  %v777_v47 = vpop.f32.mrb[18].mxu1  ;;  %v666_v48 = vpop.f32.mrb[19].mxu0  ;;  %v3319_v30 = vmov 0.0  }
 0x19d   :  { %v778_v49 = vadd.f32 %v777_v47, %v3272_v42  ;;  %v667_v50 = vadd.f32 %v666_v48, %v3276_v43  ;;  %v779_v51 = vpop.f32.mrb[19].mxu1 }
 0x19e   :  { %822 = vst [vmem:[#allocation3 + $0x20] sm:$0xff] %v665_v26  ;;  %v780_v52 = vadd.f32 %v779_v51, %v3281_v22 }
 0x19f   :  { %824 = vst [vmem:[#allocation3 + $0x30] sm:$0xff] %v778_v49  ;;  %823 = vst [vmem:[#allocation3 + $0x28] sm:$0xff] %v667_v50  ;;  %v670_v53 = vpop.f32.mrb[20].mxu0 }
 0x1a0   :  { %825 = vst [vmem:[#allocation3 + $0x38] sm:$0xff] %v780_v52  ;;  %v671_v54 = vadd.f32 %v670_v53, %v3266_v38  ;;  %v783_v55 = vpop.f32.mrb[20].mxu1  ;;  %v672_v56 = vpop.f32.mrb[21].mxu0 }
 0x1a1   :  { %v784_v57 = vadd.f32 %v783_v55, %v3272_v42  ;;  %v673_v58 = vadd.f32 %v672_v56, %v3276_v43  ;;  %v785_v59 = vpop.f32.mrb[21].mxu1 }
 0x1a2   :  { %826 = vst [vmem:[#allocation3 + $0x40] sm:$0xff] %v671_v54  ;;  %v786_v60 = vadd.f32 %v785_v59, %v3281_v22 }
 0x1a3   :  { %828 = vst [vmem:[#allocation3 + $0x50] sm:$0xff] %v784_v57  ;;  %827 = vst [vmem:[#allocation3 + $0x48] sm:$0xff] %v673_v58  ;;  %v676_v61 = vpop.f32.mrb[22].mxu0 }
 0x1a4   :  { %829 = vst [vmem:[#allocation3 + $0x58] sm:$0xff] %v786_v60  ;;  %v677_v62 = vadd.f32 %v676_v61, %v3266_v38  ;;  %v789_v63 = vpop.f32.mrb[22].mxu1  ;;  %v678_v1 = vpop.f32.mrb[23].mxu0 }
 0x1a5   :  { %v790_v2 = vadd.f32 %v789_v63, %v3272_v42  ;;  %v679_v3 = vadd.f32 %v678_v1, %v3276_v43  ;;  %v791_v4 = vpop.f32.mrb[23].mxu1 }
 0x1a6   :  { %830 = vst [vmem:[#allocation3 + $0x60] sm:$0xff] %v677_v62  ;;  %v792_v5 = vadd.f32 %v791_v4, %v3281_v22 }
 0x1a7   :  { %832 = vst [vmem:[#allocation3 + $0x70] sm:$0xff] %v790_v2  ;;  %831 = vst [vmem:[#allocation3 + $0x68] sm:$0xff] %v679_v3  ;;  %v682_v6 = vpop.f32.mrb[24].mxu0 }
 0x1a8   :  { %833 = vst [vmem:[#allocation3 + $0x78] sm:$0xff] %v792_v5  ;;  %v683_v7 = vadd.f32 %v682_v6, %v3266_v38  ;;  %v795_v8 = vpop.f32.mrb[24].mxu1  ;;  %v684_v9 = vpop.f32.mrb[25].mxu0 }
 0x1a9   :  { %v796_v10 = vadd.f32 %v795_v8, %v3272_v42  ;;  %v685_v11 = vadd.f32 %v684_v9, %v3276_v43  ;;  %v797_v12 = vpop.f32.mrb[25].mxu1 }
 0x1aa   :  { %834 = vst [vmem:[#allocation3 + $0x80] sm:$0xff] %v683_v7  ;;  %v798_v13 = vadd.f32 %v797_v12, %v3281_v22 }
 0x1ab   :  { %836 = vst [vmem:[#allocation3 + $0x90] sm:$0xff] %v796_v10  ;;  %835 = vst [vmem:[#allocation3 + $0x88] sm:$0xff] %v685_v11  ;;  %v688_v14 = vpop.f32.mrb[26].mxu0 }
 0x1ac   :  { %837 = vst [vmem:[#allocation3 + $0x98] sm:$0xff] %v798_v13  ;;  %v689_v15 = vadd.f32 %v688_v14, %v3266_v38  ;;  %v801_v16 = vpop.f32.mrb[26].mxu1  ;;  %v690_v17 = vpop.f32.mrb[27].mxu0 }
 0x1ad   :  { %v802_v18 = vadd.f32 %v801_v16, %v3272_v42  ;;  %v691_v19 = vadd.f32 %v690_v17, %v3276_v43  ;;  %v803_v20 = vpop.f32.mrb[27].mxu1 }
 0x1ae   :  { %838 = vst [vmem:[#allocation3 + $0xa0] sm:$0xff] %v689_v15  ;;  %v804_v23 = vadd.f32 %v803_v20, %v3281_v22 }
 0x1af   :  { %840 = vst [vmem:[#allocation3 + $0xb0] sm:$0xff] %v802_v18  ;;  %839 = vst [vmem:[#allocation3 + $0xa8] sm:$0xff] %v691_v19  ;;  %v694_v31 = vpop.f32.mrb[28].mxu0 }
 0x1b0   :  { %841 = vst [vmem:[#allocation3 + $0xb8] sm:$0xff] %v804_v23  ;;  %v695_v32 = vadd.f32 %v694_v31, %v3266_v38  ;;  %v807_v33 = vpop.f32.mrb[28].mxu1  ;;  %v696_v34 = vpop.f32.mrb[29].mxu0 }
 0x1b1   :  { %v808_v35 = vadd.f32 %v807_v33, %v3272_v42  ;;  %v697_v36 = vadd.f32 %v696_v34, %v3276_v43  ;;  %v809_v37 = vpop.f32.mrb[29].mxu1 }
 0x1b2   :  { %842 = vst [vmem:[#allocation3 + $0xc0] sm:$0xff] %v695_v32  ;;  %v810_v39 = vadd.f32 %v809_v37, %v3281_v22 }
 0x1b3   :  { %844 = vst [vmem:[#allocation3 + $0xd0] sm:$0xff] %v808_v35  ;;  %843 = vst [vmem:[#allocation3 + $0xc8] sm:$0xff] %v697_v36  ;;  %v700_v40 = vpop.f32.mrb[30].mxu0 }
 0x1b4   :  { %845 = vst [vmem:[#allocation3 + $0xd8] sm:$0xff] %v810_v39  ;;  %v701_v41 = vadd.f32 %v700_v40, %v3266_v38  ;;  %v813_v27 = vpop.f32.mrb[30].mxu1  ;;  %v702_v28 = vpop.f32.mrb[31].mxu0  ;;  %v3321_v38 = vmov 0.0  }
 0x1b5   :  { %v814_v29 = vadd.f32 %v813_v27, %v3272_v42  ;;  %v703_v44 = vadd.f32 %v702_v28, %v3276_v43  ;;  %v815_v24 = vpop.f32.mrb[31].mxu1 }
 0x1b6   :  { %846 = vst [vmem:[#allocation3 + $0xe0] sm:$0xff] %v701_v41  ;;  %v816_v45 = vadd.f32 %v815_v24, %v3281_v22 }
 0x1b7   :  { %848 = vst [vmem:[#allocation3 + $0xf0] sm:$0xff] %v814_v29  ;;  %847 = vst [vmem:[#allocation3 + $0xe8] sm:$0xff] %v703_v44 }
 0x1b8   :  { %849 = vst [vmem:[#allocation3 + $0xf8] sm:$0xff] %v816_v45 }
 0x1b9 LB: > { %v871_v42 = vld [vmem:[#allocation12 + $0x8] sm:$0xff]  ;;  %v870_v22 = vld [vmem:[#allocation12] sm:$0xff]  ;;  %v2986_v49 = vmov 0.0   ;;  %v2987_v55 = vmov 0   ;;  %v873_v62 = vld [vmem:[#allocation12 + $0x18] sm:$0xff]  ;;  %s3345_s21 = sshll.u32 %s2972_s11, 3  ;;  %s2972_s11 = sphi %s3323_s11, %s855_s11   ;;  %v2968_v38 = vphi %v3321_v38, %v1119_v38   ;;  %v2964_v30 = vphi %v3319_v30, %v1122_v30   ;;  %v2960_v46 = vphi %v3317_v46, %v1380_v46   ;;  %v2956_v25 = vphi %v3315_v25, %v1383_v25  }
 0x1ba   : > { %v875_v43 = vld [vmem:[#allocation12 + $0x28] sm:$0xff]  ;;  %v874_v26 = vld [vmem:[#allocation12 + $0x20] sm:$0xff]  ;;  %998 = vmatprep.mubr.f32.mxu0 %v2986_v49  ;;  %1069 = vmatprep.mubr.f32.mxu1 %v2986_v49  ;;  %v877_v63 = vld [vmem:[#allocation12 + $0x38] sm:$0xff]  ;;  %s861_s22 = scalar_lea.vmem %s3895_s1, %s3345_s21  ;;  %s1123_s15 = scalar_lea.vmem %s3897_s3, %s3345_s21 }
 0x1bb   : > { %v2442_v21 = vpack.c.bf16 %v875_v43, %v871_v42  ;;  %v879_v47 = vld [vmem:[#allocation12 + $0x48] sm:$0xff]  ;;  %v2444_v50 = vpack.c.bf16 %v874_v26, %v870_v22  ;;  %v878_v52 = vld [vmem:[#allocation12 + $0x40] sm:$0xff]  ;;  %2690 = vset.pattern.permute.xlu0 %v2987_v55  ;;  %2691 = vset.pattern.permute.xlu1 %v2987_v55  ;;  %v2474_v2 = vpack.c.bf16 %v877_v63, %v873_v62  ;;  %v872_v3 = vld [vmem:[#allocation12 + $0x10] sm:$0xff]  ;;  %s2176_s24 = sshll.u32 %s2972_s11, 5  ;;  %s1110_s16 = scalar_lea.vmem [#allocation4], %s3345_s21 }
 0x1bc   : > { %v883_v48 = vld [vmem:[#allocation12 + $0x68] sm:$0xff]  ;;  %v882_v53 = vld [vmem:[#allocation12 + $0x60] sm:$0xff]  ;;  %v876_v4 = vld [vmem:[#allocation12 + $0x30] sm:$0xff]  ;;  %s865_s25 = scalar_lea.vmem [#allocation2], %s2176_s24  ;;  %s1126_s0 = scalar_lea.vmem [#allocation3], %s2176_s24 }
 0x1bd   : > { %v2446_v51 = vpack.c.bf16 %v883_v48, %v879_v47  ;;  %v887_v54 = vld [vmem:[#allocation12 + $0x88] sm:$0xff]  ;;  %2443 = vmatprep.subr.bf16.mxu0 %v2442_v21  ;;  %v2448_v57 = vpack.c.bf16 %v882_v53, %v878_v52  ;;  %v886_v58 = vld [vmem:[#allocation12 + $0x80] sm:$0xff]  ;;  %v2476_v5 = vpack.c.bf16 %v876_v4, %v872_v3  ;;  %2475 = vmatprep.subr.bf16.mxu1 %v2474_v2  ;;  %v881_v7 = vld [vmem:[#allocation12 + $0x58] sm:$0xff]  ;;  %s1371_s26 = scalar_lea.vmem [#allocation5], %s3345_s21  ;;  %s855_s11 = sadd.s32 1, %s2972_s11  }
 0x1be   : > { %v891_v56 = vld [vmem:[#allocation12 + $0xa8] sm:$0xff]  ;;  %2445 = vmatpush1.bf16.msra.mxu0 %v2444_v50  ;;  %v890_v59 = vld [vmem:[#allocation12 + $0xa0] sm:$0xff]  ;;  %v885_v8 = vld [vmem:[#allocation12 + $0x78] sm:$0xff]  ;;  %p852_p0 = scmp.ge.s32.totalorder %s855_s11, 8  }
 0x1bf   : > { %2447 = vmatprep.subr.bf16.mxu0 %v2446_v51  ;;  %v2450_v60 = vpack.c.bf16 %v891_v56, %v887_v54  ;;  %v895_v61 = vld [vmem:[#allocation12 + $0xc8] sm:$0xff]  ;;  %v2452_v6 = vpack.c.bf16 %v890_v59, %v886_v58  ;;  %v880_v9 = vld [vmem:[#allocation12 + $0x50] sm:$0xff]  ;;  %v894_v11 = vld [vmem:[#allocation12 + $0xc0] sm:$0xff]  ;;  %2477 = vmatpush1.bf16.msra.mxu1 %v2476_v5  ;;  %v2478_v13 = vpack.c.bf16 %v885_v8, %v881_v7  ;;  %vm1905_vm0 = vcmask (%p852_p0), 1041409   ;;  %s2989_s6 = smov (%p852_p0), [#allocation19]  }
 0x1c0   : > { %v899_v1 = vld [vmem:[#allocation12 + $0xe8] sm:$0xff]  ;;  %v898_v12 = vld [vmem:[#allocation12 + $0xe0] sm:$0xff]  ;;  %v884_v14 = vld [vmem:[#allocation12 + $0x70] sm:$0xff]  ;;  %1656 = vst [vmem:[#allocation18 + $0x8] sm:$0xff] (%p852_p0), %v2985_v0  ;;  %vm1908_vm1 = vcmask (%p852_p0), 1042434   ;;  %vm1911_vm2 = vcmask (%p852_p0), 1043459  }
 0x1c1   : > { %v2454_v10 = vpack.c.bf16 %v899_v1, %v895_v61  ;;  %v903_v15 = vld [vmem:[#allocation12 + $0x108] sm:$0xff]  ;;  %v2480_v17 = vpack.c.bf16 %v884_v14, %v880_v9  ;;  %v889_v18 = vld [vmem:[#allocation12 + $0x98] sm:$0xff]  ;;  %2479 = vmatprep.subr.bf16.mxu1 %v2478_v13  ;;  %v888_v20 = vld [vmem:[#allocation12 + $0x90] sm:$0xff]  ;;  %v2456_v31 = vpack.c.bf16 %v898_v12, %v894_v11  ;;  %1657 = vst [vmem:[#allocation18 + $0x10] sm:$0xff] (%p852_p0), %v2985_v0  ;;  %vm1914_vm3 = vcmask (%p852_p0), 1044484   ;;  %s2122_s27 = sshll.u32 (%p852_p0), %s2989_s6, 4  ;;  %s2123_s27 = int_to_ptr.vmem [resolvable:$true] %s2122_s27 }
 0x1c2   : > { %2449 = vmatpush1.bf16.msra.mxu0 %v2448_v57  ;;  %v907_v16 = vld [vmem:[#allocation12 + $0x128] sm:$0xff]  ;;  %v893_v19 = vld [vmem:[#allocation12 + $0xb8] sm:$0xff]  ;;  %v892_v23 = vld [vmem:[#allocation12 + $0xb0] sm:$0xff]  ;;  %1658 = vst [vmem:[#allocation18 + $0x18] sm:$0xff] (%p852_p0), %v2985_v0  ;;  %vm1917_vm4 = vcmask (%p852_p0), 1045509   ;;  %vm1920_vm5 = vcmask (%p852_p0), 1046534  }
 0x1c3   : > { %2451 = vmatprep.subr.bf16.mxu0 %v2450_v60  ;;  %v902_v32 = vld [vmem:[#allocation12 + $0x100] sm:$0xff]  ;;  %v2482_v34 = vpack.c.bf16 %v893_v19, %v889_v18  ;;  %v2458_v35 = vpack.c.bf16 %v907_v16, %v903_v15  ;;  %2481 = vmatpush1.bf16.msra.mxu1 %v2480_v17  ;;  %v911_v36 = vld [vmem:[#allocation12 + $0x148] sm:$0xff]  ;;  %v2484_v37 = vpack.c.bf16 %v892_v23, %v888_v20  ;;  %v897_v39 = vld [vmem:[#allocation12 + $0xd8] sm:$0xff]  ;;  %vm1923_vm6 = vcmask (%p852_p0), 1047559  }
 0x1c4   : > { %v906_v33 = vld [vmem:[#allocation12 + $0x120] sm:$0xff]  ;;  %v901_v40 = vld [vmem:[#allocation12 + $0xf8] sm:$0xff]  ;;  %v915_v41 = vld [vmem:[#allocation12 + $0x168] sm:$0xff]  ;;  %1659 = vst [vmem:[#allocation18 + $0x20] sm:$0xff] (%p852_p0), %v2985_v0 }
 0x1c5   : > { %2483 = vmatprep.subr.bf16.mxu1 %v2482_v34  ;;  %v2486_v27 = vpack.c.bf16 %v901_v40, %v897_v39  ;;  %v896_v28 = vld [vmem:[#allocation12 + $0xd0] sm:$0xff]  ;;  %v2460_v44 = vpack.c.bf16 %v906_v33, %v902_v32  ;;  %v905_v24 = vld [vmem:[#allocation12 + $0x118] sm:$0xff]  ;;  %v2462_v42 = vpack.c.bf16 %v915_v41, %v911_v36  ;;  %v910_v43 = vld [vmem:[#allocation12 + $0x140] sm:$0xff]  ;;  %1660 = vst [vmem:[#allocation18 + $0x28] sm:$0xff] (%p852_p0), %v2985_v0 }
 0x1c6   : > { %2453 = vmatpush1.bf16.msra.mxu0 %v2452_v6  ;;  %v900_v29 = vld [vmem:[#allocation12 + $0xf0] sm:$0xff]  ;;  %v909_v45 = vld [vmem:[#allocation12 + $0x138] sm:$0xff]  ;;  %v914_v22 = vld [vmem:[#allocation12 + $0x160] sm:$0xff]  ;;  %1661 = vst [vmem:[#allocation18 + $0x30] sm:$0xff] (%p852_p0), %v2985_v0 }
 0x1c7   : > { %2455 = vmatprep.subr.bf16.mxu0 %v2454_v10  ;;  %2485 = vmatpush1.bf16.msra.mxu1 %v2484_v37  ;;  %v919_v21 = vld [vmem:[#allocation12 + $0x188] sm:$0xff]  ;;  %v2488_v26 = vpack.c.bf16 %v900_v29, %v896_v28  ;;  %v2490_v48 = vpack.c.bf16 %v909_v45, %v905_v24  ;;  %v904_v50 = vld [vmem:[#allocation12 + $0x110] sm:$0xff]  ;;  %v913_v52 = vld [vmem:[#allocation12 + $0x158] sm:$0xff]  ;;  %v2464_v54 = vpack.c.bf16 %v914_v22, %v910_v43 }
 0x1c8   : > { %v923_v47 = vld [vmem:[#allocation12 + $0x1a8] sm:$0xff]  ;;  %2487 = vmatprep.subr.bf16.mxu1 %v2486_v27  ;;  %v908_v51 = vld [vmem:[#allocation12 + $0x130] sm:$0xff]  ;;  %v917_v53 = vld [vmem:[#allocation12 + $0x178] sm:$0xff]  ;;  %1662 = vst [vmem:[#allocation18 + $0x38] sm:$0xff] (%p852_p0), %v2985_v0 }
 0x1c9   : > { %v2466_v55 = vpack.c.bf16 %v923_v47, %v919_v21  ;;  %v918_v56 = vld [vmem:[#allocation12 + $0x180] sm:$0xff]  ;;  %v927_v58 = vld [vmem:[#allocation12 + $0x1c8] sm:$0xff]  ;;  %v2492_v59 = vpack.c.bf16 %v908_v51, %v904_v50  ;;  %v2494_v61 = vpack.c.bf16 %v917_v53, %v913_v52  ;;  %v912_v62 = vld [vmem:[#allocation12 + $0x150] sm:$0xff]  ;;  %1663 = vst [vmem:[#allocation18 + $0x40] sm:$0xff] (%p852_p0), %v2985_v0 }
 0x1ca   : > { %2457 = vmatpush1.bf16.msra.mxu0 %v2456_v31  ;;  %v922_v57 = vld [vmem:[#allocation12 + $0x1a0] sm:$0xff]  ;;  %v931_v60 = vld [vmem:[#allocation12 + $0x1e8] sm:$0xff]  ;;  %v916_v63 = vld [vmem:[#allocation12 + $0x170] sm:$0xff]  ;;  %1664 = vst [vmem:[#allocation18 + $0x48] sm:$0xff] (%p852_p0), %v2985_v0 }
 0x1cb   : > { %2459 = vmatprep.subr.bf16.mxu0 %v2458_v35  ;;  %2489 = vmatpush1.bf16.msra.mxu1 %v2488_v26  ;;  %v921_v1 = vld [vmem:[#allocation12 + $0x198] sm:$0xff]  ;;  %v2468_v3 = vpack.c.bf16 %v922_v57, %v918_v56  ;;  %v2470_v4 = vpack.c.bf16 %v931_v60, %v927_v58  ;;  %v926_v5 = vld [vmem:[#allocation12 + $0x1c0] sm:$0xff]  ;;  %v1132_v7 = vld [vmem:[#allocation15 + $0x8] sm:$0xff]  ;;  %v2496_v8 = vpack.c.bf16 %v916_v63, %v912_v62 }
 0x1cc   : > { %2491 = vmatprep.subr.bf16.mxu1 %v2490_v48  ;;  %v925_v2 = vld [vmem:[#allocation12 + $0x1b8] sm:$0xff]  ;;  %v930_v6 = vld [vmem:[#allocation12 + $0x1e0] sm:$0xff]  ;;  %v1136_v9 = vld [vmem:[#allocation15 + $0x28] sm:$0xff]  ;;  %1665 = vst [vmem:[#allocation18 + $0x50] sm:$0xff] (%p852_p0), %v2985_v0 }
 0x1cd   : > { %v2498_v10 = vpack.c.bf16 %v925_v2, %v921_v1  ;;  %v920_v11 = vld [vmem:[#allocation12 + $0x190] sm:$0xff]  ;;  %v929_v13 = vld [vmem:[#allocation12 + $0x1d8] sm:$0xff]  ;;  %v2472_v15 = vpack.c.bf16 %v930_v6, %v926_v5  ;;  %v2506_v16 = vpack.c.bf16 %v1136_v9, %v1132_v7  ;;  %v1131_v17 = vld [vmem:[#allocation15] sm:$0xff]  ;;  %1666 = vst [vmem:[#allocation18 + $0x58] sm:$0xff] (%p852_p0), %v2985_v0 }
 0x1ce   : > { %2461 = vmatpush1.bf16.msra.mxu0 %v2460_v44  ;;  %v924_v12 = vld [vmem:[#allocation12 + $0x1b0] sm:$0xff]  ;;  %v933_v14 = vld [vmem:[#allocation12 + $0x1f8] sm:$0xff]  ;;  %v1135_v18 = vld [vmem:[#allocation15 + $0x20] sm:$0xff]  ;;  %1667 = vst [vmem:[#allocation18 + $0x60] sm:$0xff] (%p852_p0), %v2985_v0 }
 0x1cf   : > { %2463 = vmatprep.subr.bf16.mxu0 %v2462_v42  ;;  %2493 = vmatpush1.bf16.msra.mxu1 %v2492_v59  ;;  %v1140_v19 = vld [vmem:[#allocation15 + $0x48] sm:$0xff]  ;;  %v2500_v20 = vpack.c.bf16 %v924_v12, %v920_v11  ;;  %v2502_v31 = vpack.c.bf16 %v933_v14, %v929_v13  ;;  %v928_v32 = vld [vmem:[#allocation12 + $0x1d0] sm:$0xff]  ;;  %v1134_v34 = vld [vmem:[#allocation15 + $0x18] sm:$0xff]  ;;  %v2508_v36 = vpack.c.bf16 %v1135_v18, %v1131_v17 }
 0x1d0   : > { %2495 = vmatprep.subr.bf16.mxu1 %v2494_v61  ;;  %v1144_v23 = vld [vmem:[#allocation15 + $0x68] sm:$0xff]  ;;  %v932_v33 = vld [vmem:[#allocation12 + $0x1f0] sm:$0xff]  ;;  %v1138_v35 = vld [vmem:[#allocation15 + $0x38] sm:$0xff]  ;;  %1668 = vst [vmem:[#allocation18 + $0x68] sm:$0xff] (%p852_p0), %v2985_v0 }
 0x1d1   : > { %v2510_v37 = vpack.c.bf16 %v1144_v23, %v1140_v19  ;;  %v1139_v39 = vld [vmem:[#allocation15 + $0x40] sm:$0xff]  ;;  %v1148_v41 = vld [vmem:[#allocation15 + $0x88] sm:$0xff]  ;;  %v2504_v27 = vpack.c.bf16 %v932_v33, %v928_v32  ;;  %v2538_v29 = vpack.c.bf16 %v1138_v35, %v1134_v34  ;;  %v1133_v44 = vld [vmem:[#allocation15 + $0x10] sm:$0xff]  ;;  %1669 = vst [vmem:[#allocation18 + $0x70] sm:$0xff] (%p852_p0), %v2985_v0 }
 0x1d2   : > { %2465 = vmatpush1.bf16.msra.mxu0 %v2464_v54  ;;  %v1143_v40 = vld [vmem:[#allocation15 + $0x60] sm:$0xff]  ;;  %v1152_v28 = vld [vmem:[#allocation15 + $0xa8] sm:$0xff]  ;;  %v1137_v24 = vld [vmem:[#allocation15 + $0x30] sm:$0xff]  ;;  %1670 = vst [vmem:[#allocation18 + $0x78] sm:$0xff] (%p852_p0), %v2985_v0 }
 0x1d3   : > { %2467 = vmatprep.subr.bf16.mxu0 %v2466_v55  ;;  %2497 = vmatpush1.bf16.msra.mxu1 %v2496_v8  ;;  %v1142_v45 = vld [vmem:[#allocation15 + $0x58] sm:$0xff]  ;;  %v2512_v43 = vpack.c.bf16 %v1143_v40, %v1139_v39  ;;  %v2514_v22 = vpack.c.bf16 %v1152_v28, %v1148_v41  ;;  %v1147_v21 = vld [vmem:[#allocation15 + $0x80] sm:$0xff]  ;;  %v1156_v47 = vld [vmem:[#allocation15 + $0xc8] sm:$0xff]  ;;  %v2540_v48 = vpack.c.bf16 %v1137_v24, %v1133_v44 }
 0x1d4   : > { %2499 = vmatprep.subr.bf16.mxu1 %v2498_v10  ;;  %v1146_v42 = vld [vmem:[#allocation15 + $0x78] sm:$0xff]  ;;  %v1151_v26 = vld [vmem:[#allocation15 + $0xa0] sm:$0xff]  ;;  %v1160_v50 = vld [vmem:[#allocation15 + $0xe8] sm:$0xff]  ;;  %1671 = vst [vmem:[#allocation18 + $0x88] sm:$0xff] (%p852_p0), %v2985_v0 }
 0x1d5   : > { %v2542_v51 = vpack.c.bf16 %v1146_v42, %v1142_v45  ;;  %v1141_v52 = vld [vmem:[#allocation15 + $0x50] sm:$0xff]  ;;  %v1150_v54 = vld [vmem:[#allocation15 + $0x98] sm:$0xff]  ;;  %v2516_v56 = vpack.c.bf16 %v1151_v26, %v1147_v21  ;;  %v1155_v57 = vld [vmem:[#allocation15 + $0xc0] sm:$0xff]  ;;  %v2518_v58 = vpack.c.bf16 %v1160_v50, %v1156_v47  ;;  %1672 = vst [vmem:[#allocation18 + $0x90] sm:$0xff] (%p852_p0), %v2985_v0 }
 0x1d6   : > { %2469 = vmatpush1.bf16.msra.mxu0 %v2468_v3  ;;  %v1145_v53 = vld [vmem:[#allocation15 + $0x70] sm:$0xff]  ;;  %v1154_v55 = vld [vmem:[#allocation15 + $0xb8] sm:$0xff]  ;;  %v1159_v59 = vld [vmem:[#allocation15 + $0xe0] sm:$0xff]  ;;  %1673 = vst [vmem:[#allocation18 + $0x98] sm:$0xff] (%p852_p0), %v2985_v0 }
 0x1d7   : > { %2471 = vmatprep.subr.bf16.mxu0 %v2470_v4  ;;  %2501 = vmatpush1.bf16.msra.mxu1 %v2500_v20  ;;  %v1164_v60 = vld [vmem:[#allocation15 + $0x108] sm:$0xff]  ;;  %v2544_v62 = vpack.c.bf16 %v1145_v53, %v1141_v52  ;;  %v2546_v63 = vpack.c.bf16 %v1154_v55, %v1150_v54  ;;  %v1149_v1 = vld [vmem:[#allocation15 + $0x90] sm:$0xff]  ;;  %v862_v3 = vld [vmem:[%s861_s22] sm:$0xff]  ;;  %v2520_v8 = vpack.c.bf16 %v1159_v59, %v1155_v57 }
 0x1d8   : > { %2503 = vmatprep.subr.bf16.mxu1 %v2502_v31  ;;  %v1168_v61 = vld [vmem:[#allocation15 + $0x128] sm:$0xff]  ;;  %v1153_v2 = vld [vmem:[#allocation15 + $0xb0] sm:$0xff]  ;;  %v1158_v4 = vld [vmem:[#allocation15 + $0xd8] sm:$0xff]  ;;  %1106 = vperm.xlu0 %2690, %v862_v3   ;;  %v1112_v6 = vsub.f32 1.0, %v862_v3  ;;  %1674 = vst [vmem:[#allocation18 + $0xa0] sm:$0xff] (%p852_p0), %v2985_v0 }
 0x1d9   : > { %v1162_v5 = vld [vmem:[#allocation15 + $0xf8] sm:$0xff]  ;;  %v1124_v7 = vld [vmem:[%s1123_s15] sm:$0xff]  ;;  %v2522_v10 = vpack.c.bf16 %v1168_v61, %v1164_v60  ;;  %v1172_v13 = vld [vmem:[#allocation15 + $0x148] sm:$0xff]  ;;  %v2548_v14 = vpack.c.bf16 %v1153_v2, %v1149_v1  ;;  %1675 = vst [vmem:[#allocation18 + $0xa8] sm:$0xff] (%p852_p0), %v2985_v0 }
 0x1da   : > { %2473 = vmatpush1.bf16.msra.mxu0 %v2472_v15  ;;  %1367 = vperm.xlu1 %2691, %v1124_v7   ;;  %v1373_v9 = vsub.f32 1.0, %v1124_v7  ;;  %v1163_v11 = vld [vmem:[#allocation15 + $0x100] sm:$0xff]  ;;  %v1176_v15 = vld [vmem:[#allocation15 + $0x168] sm:$0xff]  ;;  %v1161_v17 = vld [vmem:[#allocation15 + $0xf0] sm:$0xff]  ;;  %1676 = vst [vmem:[#allocation18 + $0xb0] sm:$0xff] (%p852_p0), %v2985_v0 }
 0x1db   : > { %2507 = vmatprep.subr.bf16.mxu0 %v2506_v16  ;;  %2505 = vmatpush1.bf16.msra.mxu1 %v2504_v27  ;;  %v1167_v12 = vld [vmem:[#allocation15 + $0x120] sm:$0xff]  ;;  %v1157_v16 = vld [vmem:[#allocation15 + $0xd0] sm:$0xff]  ;;  %v1166_v18 = vld [vmem:[#allocation15 + $0x118] sm:$0xff]  ;;  %v2526_v23 = vpack.c.bf16 %v1176_v15, %v1172_v13  ;;  %1677 = vst [vmem:[#allocation18 + $0xb8] sm:$0xff] (%p852_p0), %v2985_v0 }
 0x1dc   : > { %2539 = vmatprep.subr.bf16.mxu1 %v2538_v29  ;;  %v1170_v19 = vld [vmem:[#allocation15 + $0x138] sm:$0xff]  ;;  %1115 = vperm.xlu0 %2690, %v1112_v6   ;;  %v2524_v20 = vpack.c.bf16 %v1167_v12, %v1163_v11  ;;  %v1171_v31 = vld [vmem:[#allocation15 + $0x140] sm:$0xff]  ;;  %v1180_v33 = vld [vmem:[#allocation15 + $0x188] sm:$0xff]  ;;  %v2552_v34 = vpack.c.bf16 %v1161_v17, %v1157_v16  ;;  %1678 = vst [vmem:[#allocation18 + $0xc0] sm:$0xff] (%p852_p0), %v2985_v0 }
 0x1dd   : > { %999 = vmatmul.mubr.f32.vlgmr.msra.gmra.mrb[0].mxu0 %v2968_v38  ;;  %v1175_v32 = vld [vmem:[#allocation15 + $0x160] sm:$0xff]  ;;  %v1184_v35 = vld [vmem:[#allocation15 + $0x1a8] sm:$0xff]  ;;  %v1169_v39 = vld [vmem:[#allocation15 + $0x130] sm:$0xff]  ;;  %1679 = vst [vmem:[#allocation18 + $0xc8] sm:$0xff] (%p852_p0), %v2985_v0 }
 0x1de   : > { %2509 = vmatpush1.bf16.msra.mxu0 %v2508_v36  ;;  %1259 = vmatprep.mubr.f32.mxu0 %v2986_v49  ;;  %v2554_v36 = vpack.c.bf16 %v1170_v19, %v1166_v18  ;;  %v1174_v40 = vld [vmem:[#allocation15 + $0x158] sm:$0xff]  ;;  %v2528_v27 = vpack.c.bf16 %v1175_v32, %v1171_v31  ;;  %v2530_v28 = vpack.c.bf16 %v1184_v35, %v1180_v33  ;;  %v1179_v29 = vld [vmem:[#allocation15 + $0x180] sm:$0xff]  ;;  %v1188_v24 = vld [vmem:[#allocation15 + $0x1c8] sm:$0xff] }
 0x1df   : > { %2511 = vmatprep.subr.bf16.mxu0 %v2510_v37  ;;  %1070 = vmatmul.mubr.f32.vlgmr.msra.gmra.mrb[0].mxu1 %v2968_v38  ;;  %v1165_v37 = vld [vmem:[#allocation15 + $0x110] sm:$0xff]  ;;  %v1178_v41 = vld [vmem:[#allocation15 + $0x178] sm:$0xff]  ;;  %v1183_v44 = vld [vmem:[#allocation15 + $0x1a0] sm:$0xff]  ;;  %1680 = vst [vmem:[#allocation18 + $0xd0] sm:$0xff] (%p852_p0), %v2985_v0 }
 0x1e0   : > { %2541 = vmatpush1.bf16.msra.mxu1 %v2540_v48  ;;  %1330 = vmatprep.mubr.f32.mxu1 %v2986_v49  ;;  %v2550_v49 = vpack.c.bf16 %v1162_v5, %v1158_v4  ;;  %v2556_v45 = vpack.c.bf16 %v1169_v39, %v1165_v37  ;;  %v1192_v42 = vld [vmem:[#allocation15 + $0x1e8] sm:$0xff]  ;;  %v1177_v21 = vld [vmem:[#allocation15 + $0x170] sm:$0xff]  ;;  %v1182_v26 = vld [vmem:[#allocation15 + $0x198] sm:$0xff]  ;;  %v2532_v48 = vpack.c.bf16 %v1183_v44, %v1179_v29 }
 0x1e1   : > { %2543 = vmatprep.subr.bf16.mxu1 %v2542_v51  ;;  %1376 = vperm.xlu1 %2691, %v1373_v9   ;;  %v1186_v47 = vld [vmem:[#allocation15 + $0x1b8] sm:$0xff]  ;;  %v2534_v50 = vpack.c.bf16 %v1192_v42, %v1188_v24  ;;  %v1187_v51 = vld [vmem:[#allocation15 + $0x1c0] sm:$0xff]  ;;  %v1181_v55 = vld [vmem:[#allocation15 + $0x190] sm:$0xff]  ;;  %1681 = vst [vmem:[#allocation18 + $0xd8] sm:$0xff] (%p852_p0), %v2985_v0 }
 0x1e2   : > { %2513 = vmatpush1.bf16.msra.mxu0 %v2512_v43  ;;  %v2558_v43 = vpack.c.bf16 %v1178_v41, %v1174_v40  ;;  %v1191_v52 = vld [vmem:[#allocation15 + $0x1e0] sm:$0xff]  ;;  %v2562_v54 = vpack.c.bf16 %v1186_v47, %v1182_v26  ;;  %v1190_v57 = vld [vmem:[#allocation15 + $0x1d8] sm:$0xff]  ;;  %v867_v3 = vld [vmem:[%s865_s25 + $0x8] sm:$0xff]  ;;  %1682 = vst [vmem:[#allocation18 + $0xe0] sm:$0xff] (%p852_p0), %v2985_v0 }
 0x1e3   : > { %2515 = vmatprep.subr.bf16.mxu0 %v2514_v22  ;;  %v1173_v22 = vld [vmem:[#allocation15 + $0x150] sm:$0xff]  ;;  %v2536_v59 = vpack.c.bf16 %v1191_v52, %v1187_v51  ;;  %v866_v2 = vld [vmem:[%s865_s25] sm:$0xff]  ;;  %v869_v11 = vld [vmem:[%s865_s25 + $0x18] sm:$0xff]  ;;  %1683 = vst [vmem:[#allocation18 + $0xe8] sm:$0xff] (%p852_p0), %v2985_v0 }
 0x1e4   : > { %2545 = vmatpush1.bf16.msra.mxu1 %v2544_v62  ;;  %v2560_v53 = vpack.c.bf16 %v1177_v21, %v1173_v22  ;;  %v1189_v62 = vld [vmem:[#allocation15 + $0x1d0] sm:$0xff]  ;;  %v1127_v37 = vld [vmem:[%s1126_s0] sm:$0xff]  ;;  %v1128_v40 = vld [vmem:[%s1126_s0 + $0x8] sm:$0xff]  ;;  %1684 = vst [vmem:[#allocation18 + $0xf0] sm:$0xff] (%p852_p0), %v2985_v0 }
 0x1e5   : > { %2547 = vmatprep.subr.bf16.mxu1 %v2546_v63  ;;  %v1193_v63 = vld [vmem:[#allocation15 + $0x1f0] sm:$0xff]  ;;  %1685 = vst [vmem:[#allocation18 + $0xf8] sm:$0xff] (%p852_p0), %v2985_v0  ;;  %1686 = vst [vmem:[#allocation18 + $0x108] sm:$0xff] (%p852_p0), %v2985_v0 }
 0x1e6   : > { %2517 = vmatpush1.bf16.msra.mxu0 %v2516_v56  ;;  %v1185_v56 = vld [vmem:[#allocation15 + $0x1b0] sm:$0xff]  ;;  %v2568_v1 = vpack.c.bf16 %v1193_v63, %v1189_v62  ;;  %1687 = vst [vmem:[#allocation18 + $0x110] sm:$0xff] (%p852_p0), %v2985_v0  ;;  %1688 = vst [vmem:[#allocation18 + $0x118] sm:$0xff] (%p852_p0), %v2985_v0 }
 0x1e7   : > { %2519 = vmatprep.subr.bf16.mxu0 %v2518_v58  ;;  %v1194_v58 = vld [vmem:[#allocation15 + $0x1f8] sm:$0xff]  ;;  %v2564_v60 = vpack.c.bf16 %v1185_v56, %v1181_v55  ;;  %v868_v9 = vld [vmem:[%s865_s25 + $0x10] sm:$0xff]  ;;  %1689 = vst [vmem:[#allocation18 + $0x120] sm:$0xff] (%p852_p0), %v2985_v0  ;;  %1690 = vst [vmem:[#allocation18 + $0x128] sm:$0xff] (%p852_p0), %v2985_v0 }
 0x1e8   : > { %2549 = vmatpush1.bf16.msra.mxu1 %v2548_v14  ;;  %v2566_v61 = vpack.c.bf16 %v1194_v58, %v1190_v57  ;;  %v1129_v21 = vld [vmem:[%s1126_s0 + $0x10] sm:$0xff]  ;;  %1691 = vst [vmem:[#allocation18 + $0x130] sm:$0xff] (%p852_p0), %v2985_v0  ;;  %1692 = vst [vmem:[#allocation18 + $0x138] sm:$0xff] (%p852_p0), %v2985_v0 }
 0x1e9   : > { %2551 = vmatprep.subr.bf16.mxu1 %v2550_v49  ;;  %1693 = vst [vmem:[#allocation18 + $0x140] sm:$0xff] (%p852_p0), %v2985_v0  ;;  %1694 = vst [vmem:[#allocation18 + $0x148] sm:$0xff] (%p852_p0), %v2985_v0 }
 0x1ea   : > { %2521 = vmatpush1.bf16.msra.mxu0 %v2520_v8  ;;  %1695 = vst [vmem:[#allocation18 + $0x150] sm:$0xff] (%p852_p0), %v2985_v0  ;;  %1696 = vst [vmem:[#allocation18 + $0x158] sm:$0xff] (%p852_p0), %v2985_v0 }
 0x1eb   : > { %2523 = vmatprep.subr.bf16.mxu0 %v2522_v10  ;;  %1697 = vst [vmem:[#allocation18 + $0x160] sm:$0xff] (%p852_p0), %v2985_v0  ;;  %1698 = vst [vmem:[#allocation18 + $0x168] sm:$0xff] (%p852_p0), %v2985_v0 }
 0x1ec   : > { %2553 = vmatpush1.bf16.msra.mxu1 %v2552_v34  ;;  %1699 = vst [vmem:[#allocation18 + $0x170] sm:$0xff] (%p852_p0), %v2985_v0  ;;  %1700 = vst [vmem:[#allocation18 + $0x178] sm:$0xff] (%p852_p0), %v2985_v0 }
 0x1ed   : > { %2555 = vmatprep.subr.bf16.mxu1 %v2554_v36  ;;  %1701 = vst [vmem:[#allocation18 + $0x188] sm:$0xff] (%p852_p0), %v2985_v0  ;;  %1702 = vst [vmem:[#allocation18 + $0x190] sm:$0xff] (%p852_p0), %v2985_v0 }
 0x1ee   : > { %2525 = vmatpush1.bf16.msra.mxu0 %v2524_v20  ;;  %1703 = vst [vmem:[#allocation18 + $0x198] sm:$0xff] (%p852_p0), %v2985_v0  ;;  %1704 = vst [vmem:[#allocation18 + $0x1a0] sm:$0xff] (%p852_p0), %v2985_v0 }
 0x1ef   : > { %2527 = vmatprep.subr.bf16.mxu0 %v2526_v23  ;;  %1705 = vst [vmem:[#allocation18 + $0x1a8] sm:$0xff] (%p852_p0), %v2985_v0  ;;  %1706 = vst [vmem:[#allocation18 + $0x1b0] sm:$0xff] (%p852_p0), %v2985_v0 }
 0x1f0   : > { %2557 = vmatpush1.bf16.msra.mxu1 %v2556_v45  ;;  %1707 = vst [vmem:[#allocation18 + $0x1b8] sm:$0xff] (%p852_p0), %v2985_v0  ;;  %1708 = vst [vmem:[#allocation18 + $0x1c0] sm:$0xff] (%p852_p0), %v2985_v0 }
 0x1f1   : > { %2559 = vmatprep.subr.bf16.mxu1 %v2558_v43  ;;  %1709 = vst [vmem:[#allocation18 + $0x1c8] sm:$0xff] (%p852_p0), %v2985_v0  ;;  %1710 = vst [vmem:[#allocation18 + $0x1d0] sm:$0xff] (%p852_p0), %v2985_v0 }
 0x1f2   : > { %2529 = vmatpush1.bf16.msra.mxu0 %v2528_v27  ;;  %1711 = vst [vmem:[#allocation18 + $0x1d8] sm:$0xff] (%p852_p0), %v2985_v0  ;;  %1712 = vst [vmem:[#allocation18 + $0x1e0] sm:$0xff] (%p852_p0), %v2985_v0 }
 0x1f3   : > { %2531 = vmatprep.subr.bf16.mxu0 %v2530_v28  ;;  %1713 = vst [vmem:[#allocation18 + $0x1e8] sm:$0xff] (%p852_p0), %v2985_v0  ;;  %1714 = vst [vmem:[#allocation18 + $0x1f0] sm:$0xff] (%p852_p0), %v2985_v0 }
 0x1f4   : > { %2561 = vmatpush1.bf16.msra.mxu1 %v2560_v53  ;;  %1715 = vst [vmem:[#allocation18 + $0x1f8] sm:$0xff] (%p852_p0), %v2985_v0  ;;  %1716 = vst [vmem:[#allocation18 + $0x208] sm:$0xff] (%p852_p0), %v2985_v0 }
 0x1f5   : > { %2563 = vmatprep.subr.bf16.mxu1 %v2562_v54  ;;  %1717 = vst [vmem:[#allocation18 + $0x210] sm:$0xff] (%p852_p0), %v2985_v0  ;;  %1718 = vst [vmem:[#allocation18 + $0x218] sm:$0xff] (%p852_p0), %v2985_v0 }
 0x1f6   : > { %2533 = vmatpush1.bf16.msra.mxu0 %v2532_v48  ;;  %v1130_v48 = vld [vmem:[%s1126_s0 + $0x18] sm:$0xff]  ;;  %1719 = vst [vmem:[#allocation18 + $0x220] sm:$0xff] (%p852_p0), %v2985_v0  ;;  %1720 = vst [vmem:[#allocation18 + $0x228] sm:$0xff] (%p852_p0), %v2985_v0 }
 0x1f7   : > { %2535 = vmatprep.subr.bf16.mxu0 %v2534_v50  ;;  %1721 = vst [vmem:[#allocation18 + $0x230] sm:$0xff] (%p852_p0), %v2985_v0  ;;  %1722 = vst [vmem:[#allocation18 + $0x238] sm:$0xff] (%p852_p0), %v2985_v0 }
 0x1f8   : > { %2565 = vmatpush1.bf16.msra.mxu1 %v2564_v60  ;;  %1723 = vst [vmem:[#allocation18 + $0x240] sm:$0xff] (%p852_p0), %v2985_v0  ;;  %1724 = vst [vmem:[#allocation18 + $0x248] sm:$0xff] (%p852_p0), %v2985_v0 }
 0x1f9   : > { %2567 = vmatprep.subr.bf16.mxu1 %v2566_v61  ;;  %1725 = vst [vmem:[#allocation18 + $0x250] sm:$0xff] (%p852_p0), %v2985_v0  ;;  %1726 = vst [vmem:[#allocation18 + $0x258] sm:$0xff] (%p852_p0), %v2985_v0 }
 0x1fa   : > { %2537 = vmatpush1.bf16.msra.mxu0 %v2536_v59  ;;  %1727 = vst [vmem:[#allocation18 + $0x260] sm:$0xff] (%p852_p0), %v2985_v0  ;;  %1728 = vst [vmem:[#allocation18 + $0x268] sm:$0xff] (%p852_p0), %v2985_v0 }
 0x1fb   :  { %1729 = vst [vmem:[#allocation18 + $0x270] sm:$0xff] (%p852_p0), %v2985_v0  ;;  %1730 = vst [vmem:[#allocation18 + $0x278] sm:$0xff] (%p852_p0), %v2985_v0 }
 0x1fc   : > { %2569 = vmatpush1.bf16.msra.mxu1 %v2568_v1  ;;  %1731 = vst [vmem:[#allocation18 + $0x288] sm:$0xff] (%p852_p0), %v2985_v0  ;;  %1732 = vst [vmem:[#allocation18 + $0x290] sm:$0xff] (%p852_p0), %v2985_v0 }
 0x1fd   : > { %1260 = vmatmul.mubr.f32.vlgmr.msra.gmra.mrb[2].mxu0 %v2960_v46  ;;  %1733 = vst [vmem:[#allocation18 + $0x298] sm:$0xff] (%p852_p0), %v2985_v0  ;;  %1734 = vst [vmem:[#allocation18 + $0x2a0] sm:$0xff] (%p852_p0), %v2985_v0 }
 0x1fe   :  { %1735 = vst [vmem:[#allocation18 + $0x2a8] sm:$0xff] (%p852_p0), %v2985_v0  ;;  %1736 = vst [vmem:[#allocation18 + $0x2b0] sm:$0xff] (%p852_p0), %v2985_v0 }
 0x1ff   : > { %1331 = vmatmul.mubr.f32.vlgmr.msra.gmra.mrb[2].mxu1 %v2960_v46  ;;  %1737 = vst [vmem:[#allocation18 + $0x2b8] sm:$0xff] (%p852_p0), %v2985_v0  ;;  %1738 = vst [vmem:[#allocation18 + $0x2c0] sm:$0xff] (%p852_p0), %v2985_v0 }
 0x200   :  { %1739 = vst [vmem:[#allocation18 + $0x2c8] sm:$0xff] (%p852_p0), %v2985_v0  ;;  %1740 = vst [vmem:[#allocation18 + $0x2d0] sm:$0xff] (%p852_p0), %v2985_v0 }
 0x201   :  { %1741 = vst [vmem:[#allocation18 + $0x2d8] sm:$0xff] (%p852_p0), %v2985_v0  ;;  %1742 = vst [vmem:[#allocation18 + $0x2e0] sm:$0xff] (%p852_p0), %v2985_v0 }
 0x202   :  { %1743 = vst [vmem:[#allocation18 + $0x2e8] sm:$0xff] (%p852_p0), %v2985_v0  ;;  %1744 = vst [vmem:[#allocation18 + $0x2f0] sm:$0xff] (%p852_p0), %v2985_v0 }
 0x203   :  { %1745 = vst [vmem:[#allocation18 + $0x2f8] sm:$0xff] (%p852_p0), %v2985_v0  ;;  %1746 = vst [vmem:[#allocation18 + $0x308] sm:$0xff] (%p852_p0), %v2985_v0 }
 0x204   :  { %1747 = vst [vmem:[#allocation18 + $0x310] sm:$0xff] (%p852_p0), %v2985_v0  ;;  %1748 = vst [vmem:[#allocation18 + $0x318] sm:$0xff] (%p852_p0), %v2985_v0 }
 0x205   :  { %1749 = vst [vmem:[#allocation18 + $0x320] sm:$0xff] (%p852_p0), %v2985_v0  ;;  %1750 = vst [vmem:[#allocation18 + $0x328] sm:$0xff] (%p852_p0), %v2985_v0 }
 0x206   :  { %1751 = vst [vmem:[#allocation18 + $0x330] sm:$0xff] (%p852_p0), %v2985_v0  ;;  %1752 = vst [vmem:[#allocation18 + $0x338] sm:$0xff] (%p852_p0), %v2985_v0 }
 0x207   :  { %1753 = vst [vmem:[#allocation18 + $0x340] sm:$0xff] (%p852_p0), %v2985_v0  ;;  %1754 = vst [vmem:[#allocation18 + $0x348] sm:$0xff] (%p852_p0), %v2985_v0 }
 0x208   :  { %1755 = vst [vmem:[#allocation18 + $0x350] sm:$0xff] (%p852_p0), %v2985_v0  ;;  %1756 = vst [vmem:[#allocation18 + $0x358] sm:$0xff] (%p852_p0), %v2985_v0 }
 0x209   :  { %1757 = vst [vmem:[#allocation18 + $0x360] sm:$0xff] (%p852_p0), %v2985_v0  ;;  %1758 = vst [vmem:[#allocation18 + $0x368] sm:$0xff] (%p852_p0), %v2985_v0 }
 0x20a   :  { %1759 = vst [vmem:[#allocation18 + $0x370] sm:$0xff] (%p852_p0), %v2985_v0  ;;  %1760 = vst [vmem:[#allocation18 + $0x378] sm:$0xff] (%p852_p0), %v2985_v0 }
 0x20b   :  { %1761 = vst [vmem:[#allocation18 + $0x388] sm:$0xff] (%p852_p0), %v2985_v0  ;;  %1762 = vst [vmem:[#allocation18 + $0x390] sm:$0xff] (%p852_p0), %v2985_v0 }
 0x20c   :  { %1763 = vst [vmem:[#allocation18 + $0x398] sm:$0xff] (%p852_p0), %v2985_v0  ;;  %1764 = vst [vmem:[#allocation18 + $0x3a0] sm:$0xff] (%p852_p0), %v2985_v0 }
 0x20d   :  { %1765 = vst [vmem:[#allocation18 + $0x3a8] sm:$0xff] (%p852_p0), %v2985_v0  ;;  %1766 = vst [vmem:[#allocation18 + $0x3b0] sm:$0xff] (%p852_p0), %v2985_v0 }
 0x20e   :  { %1767 = vst [vmem:[#allocation18 + $0x3b8] sm:$0xff] (%p852_p0), %v2985_v0  ;;  %1768 = vst [vmem:[#allocation18 + $0x3c0] sm:$0xff] (%p852_p0), %v2985_v0 }
 0x20f   :  { %1769 = vst [vmem:[#allocation18 + $0x3c8] sm:$0xff] (%p852_p0), %v2985_v0  ;;  %1770 = vst [vmem:[#allocation18 + $0x3d0] sm:$0xff] (%p852_p0), %v2985_v0 }
 0x210   :  { %1771 = vst [vmem:[#allocation18 + $0x3d8] sm:$0xff] (%p852_p0), %v2985_v0  ;;  %1772 = vst [vmem:[#allocation18 + $0x3e0] sm:$0xff] (%p852_p0), %v2985_v0 }
 0x211   :  { %1773 = vst [vmem:[#allocation18 + $0x3e8] sm:$0xff] (%p852_p0), %v2985_v0  ;;  %1774 = vst [vmem:[#allocation18 + $0x3f0] sm:$0xff] (%p852_p0), %v2985_v0 }
 0x212   :  { %1775 = vst [vmem:[#allocation18 + $0x3f8] sm:$0xff] (%p852_p0), %v2985_v0  ;;  %1776 = vst [vmem:[#allocation19 + $0x8] sm:$0xff] (%p852_p0), %v2985_v0 }
 0x213   :  { %1777 = vst [vmem:[#allocation19 + $0x10] sm:$0xff] (%p852_p0), %v2985_v0  ;;  %1778 = vst [vmem:[#allocation19 + $0x18] sm:$0xff] (%p852_p0), %v2985_v0 }
 0x214   :  { %1779 = vst [vmem:[#allocation19 + $0x20] sm:$0xff] (%p852_p0), %v2985_v0  ;;  %1780 = vst [vmem:[#allocation19 + $0x28] sm:$0xff] (%p852_p0), %v2985_v0 }
 0x215   :  { %1781 = vst [vmem:[#allocation19 + $0x30] sm:$0xff] (%p852_p0), %v2985_v0  ;;  %1782 = vst [vmem:[#allocation19 + $0x38] sm:$0xff] (%p852_p0), %v2985_v0 }
 0x216   :  { %1783 = vst [vmem:[#allocation19 + $0x40] sm:$0xff] (%p852_p0), %v2985_v0  ;;  %1784 = vst [vmem:[#allocation19 + $0x48] sm:$0xff] (%p852_p0), %v2985_v0 }
 0x217   :  { %1785 = vst [vmem:[#allocation19 + $0x50] sm:$0xff] (%p852_p0), %v2985_v0  ;;  %1786 = vst [vmem:[#allocation19 + $0x58] sm:$0xff] (%p852_p0), %v2985_v0 }
 0x218   :  { %1787 = vst [vmem:[#allocation19 + $0x60] sm:$0xff] (%p852_p0), %v2985_v0  ;;  %1788 = vst [vmem:[#allocation19 + $0x68] sm:$0xff] (%p852_p0), %v2985_v0 }
 0x219   :  { %1789 = vst [vmem:[#allocation19 + $0x70] sm:$0xff] (%p852_p0), %v2985_v0  ;;  %1790 = vst [vmem:[#allocation19 + $0x78] sm:$0xff] (%p852_p0), %v2985_v0 }
 0x21a   :  { %1791 = vst [vmem:[#allocation19 + $0x88] sm:$0xff] (%p852_p0), %v2985_v0  ;;  %1792 = vst [vmem:[#allocation19 + $0x90] sm:$0xff] (%p852_p0), %v2985_v0 }
 0x21b   :  { %1793 = vst [vmem:[#allocation19 + $0x98] sm:$0xff] (%p852_p0), %v2985_v0  ;;  %1794 = vst [vmem:[#allocation19 + $0xa0] sm:$0xff] (%p852_p0), %v2985_v0 }
 0x21c   :  { %1795 = vst [vmem:[#allocation19 + $0xa8] sm:$0xff] (%p852_p0), %v2985_v0  ;;  %1796 = vst [vmem:[#allocation19 + $0xb0] sm:$0xff] (%p852_p0), %v2985_v0 }
 0x21d   :  { %1797 = vst [vmem:[#allocation19 + $0xb8] sm:$0xff] (%p852_p0), %v2985_v0  ;;  %1798 = vst [vmem:[#allocation19 + $0xc0] sm:$0xff] (%p852_p0), %v2985_v0 }
 0x21e   :  { %1799 = vst [vmem:[#allocation19 + $0xc8] sm:$0xff] (%p852_p0), %v2985_v0  ;;  %1800 = vst [vmem:[#allocation19 + $0xd0] sm:$0xff] (%p852_p0), %v2985_v0 }
 0x21f   :  { %1801 = vst [vmem:[#allocation19 + $0xd8] sm:$0xff] (%p852_p0), %v2985_v0  ;;  %1802 = vst [vmem:[#allocation19 + $0xe0] sm:$0xff] (%p852_p0), %v2985_v0 }
 0x220   :  { %1803 = vst [vmem:[#allocation19 + $0xe8] sm:$0xff] (%p852_p0), %v2985_v0  ;;  %1804 = vst [vmem:[#allocation19 + $0xf0] sm:$0xff] (%p852_p0), %v2985_v0 }
 0x221   :  { %1805 = vst [vmem:[#allocation19 + $0xf8] sm:$0xff] (%p852_p0), %v2985_v0  ;;  %1806 = vst [vmem:[#allocation19 + $0x108] sm:$0xff] (%p852_p0), %v2985_v0 }
 0x222   :  { %1807 = vst [vmem:[#allocation19 + $0x110] sm:$0xff] (%p852_p0), %v2985_v0  ;;  %1808 = vst [vmem:[#allocation19 + $0x118] sm:$0xff] (%p852_p0), %v2985_v0 }
 0x223   :  { %1809 = vst [vmem:[#allocation19 + $0x120] sm:$0xff] (%p852_p0), %v2985_v0  ;;  %1810 = vst [vmem:[#allocation19 + $0x128] sm:$0xff] (%p852_p0), %v2985_v0 }
 0x224   :  { %1811 = vst [vmem:[#allocation19 + $0x130] sm:$0xff] (%p852_p0), %v2985_v0  ;;  %1812 = vst [vmem:[#allocation19 + $0x138] sm:$0xff] (%p852_p0), %v2985_v0 }
 0x225   :  { %1813 = vst [vmem:[#allocation19 + $0x140] sm:$0xff] (%p852_p0), %v2985_v0  ;;  %1814 = vst [vmem:[#allocation19 + $0x148] sm:$0xff] (%p852_p0), %v2985_v0 }
 0x226   :  { %1815 = vst [vmem:[#allocation19 + $0x150] sm:$0xff] (%p852_p0), %v2985_v0  ;;  %1816 = vst [vmem:[#allocation19 + $0x158] sm:$0xff] (%p852_p0), %v2985_v0 }
 0x227   :  { %1817 = vst [vmem:[#allocation19 + $0x160] sm:$0xff] (%p852_p0), %v2985_v0  ;;  %1818 = vst [vmem:[#allocation19 + $0x168] sm:$0xff] (%p852_p0), %v2985_v0 }
 0x228   :  { %1819 = vst [vmem:[#allocation19 + $0x170] sm:$0xff] (%p852_p0), %v2985_v0  ;;  %1820 = vst [vmem:[#allocation19 + $0x178] sm:$0xff] (%p852_p0), %v2985_v0 }
 0x229   :  { %1821 = vst [vmem:[#allocation19 + $0x188] sm:$0xff] (%p852_p0), %v2985_v0  ;;  %1822 = vst [vmem:[#allocation19 + $0x190] sm:$0xff] (%p852_p0), %v2985_v0 }
 0x22a   :  { %1823 = vst [vmem:[#allocation19 + $0x198] sm:$0xff] (%p852_p0), %v2985_v0  ;;  %1824 = vst [vmem:[#allocation19 + $0x1a0] sm:$0xff] (%p852_p0), %v2985_v0 }
 0x22b   :  { %1825 = vst [vmem:[#allocation19 + $0x1a8] sm:$0xff] (%p852_p0), %v2985_v0  ;;  %1826 = vst [vmem:[#allocation19 + $0x1b0] sm:$0xff] (%p852_p0), %v2985_v0 }
 0x22c   :  { %1827 = vst [vmem:[#allocation19 + $0x1b8] sm:$0xff] (%p852_p0), %v2985_v0  ;;  %1828 = vst [vmem:[#allocation19 + $0x1c0] sm:$0xff] (%p852_p0), %v2985_v0 }
 0x22d   :  { %1829 = vst [vmem:[#allocation19 + $0x1c8] sm:$0xff] (%p852_p0), %v2985_v0  ;;  %1830 = vst [vmem:[#allocation19 + $0x1d0] sm:$0xff] (%p852_p0), %v2985_v0 }
 0x22e   :  { %1831 = vst [vmem:[#allocation19 + $0x1d8] sm:$0xff] (%p852_p0), %v2985_v0  ;;  %1832 = vst [vmem:[#allocation19 + $0x1e0] sm:$0xff] (%p852_p0), %v2985_v0 }
 0x22f   :  { %1833 = vst [vmem:[#allocation19 + $0x1e8] sm:$0xff] (%p852_p0), %v2985_v0  ;;  %1834 = vst [vmem:[#allocation19 + $0x1f0] sm:$0xff] (%p852_p0), %v2985_v0 }
 0x230   :  { %1835 = vst [vmem:[#allocation19 + $0x1f8] sm:$0xff] (%p852_p0), %v2985_v0  ;;  %1836 = vst [vmem:[#allocation19 + $0x208] sm:$0xff] (%p852_p0), %v2985_v0 }
 0x231   :  { %1837 = vst [vmem:[#allocation19 + $0x210] sm:$0xff] (%p852_p0), %v2985_v0  ;;  %1838 = vst [vmem:[#allocation19 + $0x218] sm:$0xff] (%p852_p0), %v2985_v0 }
 0x232   :  { %1839 = vst [vmem:[#allocation19 + $0x220] sm:$0xff] (%p852_p0), %v2985_v0  ;;  %1840 = vst [vmem:[#allocation19 + $0x228] sm:$0xff] (%p852_p0), %v2985_v0 }
 0x233   :  { %1841 = vst [vmem:[#allocation19 + $0x230] sm:$0xff] (%p852_p0), %v2985_v0  ;;  %1842 = vst [vmem:[#allocation19 + $0x238] sm:$0xff] (%p852_p0), %v2985_v0 }
 0x234   :  { %1843 = vst [vmem:[#allocation19 + $0x240] sm:$0xff] (%p852_p0), %v2985_v0  ;;  %1844 = vst [vmem:[#allocation19 + $0x248] sm:$0xff] (%p852_p0), %v2985_v0 }
 0x235   :  { %1845 = vst [vmem:[#allocation19 + $0x250] sm:$0xff] (%p852_p0), %v2985_v0  ;;  %1846 = vst [vmem:[#allocation19 + $0x258] sm:$0xff] (%p852_p0), %v2985_v0 }
 0x236   :  { %1847 = vst [vmem:[#allocation19 + $0x260] sm:$0xff] (%p852_p0), %v2985_v0  ;;  %1848 = vst [vmem:[#allocation19 + $0x268] sm:$0xff] (%p852_p0), %v2985_v0 }
 0x237   :  { %1849 = vst [vmem:[#allocation19 + $0x270] sm:$0xff] (%p852_p0), %v2985_v0  ;;  %1850 = vst [vmem:[#allocation19 + $0x278] sm:$0xff] (%p852_p0), %v2985_v0 }
 0x238   :  { %1851 = vst [vmem:[#allocation19 + $0x288] sm:$0xff] (%p852_p0), %v2985_v0  ;;  %1852 = vst [vmem:[#allocation19 + $0x290] sm:$0xff] (%p852_p0), %v2985_v0 }
 0x239   :  { %1853 = vst [vmem:[#allocation19 + $0x298] sm:$0xff] (%p852_p0), %v2985_v0  ;;  %1854 = vst [vmem:[#allocation19 + $0x2a0] sm:$0xff] (%p852_p0), %v2985_v0 }
 0x23a   :  { %1855 = vst [vmem:[#allocation19 + $0x2a8] sm:$0xff] (%p852_p0), %v2985_v0  ;;  %1856 = vst [vmem:[#allocation19 + $0x2b0] sm:$0xff] (%p852_p0), %v2985_v0 }
 0x23b   :  { %1857 = vst [vmem:[#allocation19 + $0x2b8] sm:$0xff] (%p852_p0), %v2985_v0  ;;  %1858 = vst [vmem:[#allocation19 + $0x2c0] sm:$0xff] (%p852_p0), %v2985_v0 }
 0x23c   :  { %1859 = vst [vmem:[#allocation19 + $0x2c8] sm:$0xff] (%p852_p0), %v2985_v0  ;;  %1860 = vst [vmem:[#allocation19 + $0x2d0] sm:$0xff] (%p852_p0), %v2985_v0 }
 0x23d   :  { %1861 = vst [vmem:[#allocation19 + $0x2d8] sm:$0xff] (%p852_p0), %v2985_v0  ;;  %1862 = vst [vmem:[#allocation19 + $0x2e0] sm:$0xff] (%p852_p0), %v2985_v0 }
 0x23e   :  { %1863 = vst [vmem:[#allocation19 + $0x2e8] sm:$0xff] (%p852_p0), %v2985_v0  ;;  %1864 = vst [vmem:[#allocation19 + $0x2f0] sm:$0xff] (%p852_p0), %v2985_v0 }
 0x23f   :  { %1865 = vst [vmem:[#allocation19 + $0x2f8] sm:$0xff] (%p852_p0), %v2985_v0  ;;  %1866 = vst [vmem:[#allocation19 + $0x308] sm:$0xff] (%p852_p0), %v2985_v0 }
 0x240   :  { %1867 = vst [vmem:[#allocation19 + $0x310] sm:$0xff] (%p852_p0), %v2985_v0  ;;  %1868 = vst [vmem:[#allocation19 + $0x318] sm:$0xff] (%p852_p0), %v2985_v0 }
 0x241   :  { %1869 = vst [vmem:[#allocation19 + $0x320] sm:$0xff] (%p852_p0), %v2985_v0  ;;  %1870 = vst [vmem:[#allocation19 + $0x328] sm:$0xff] (%p852_p0), %v2985_v0 }
 0x242   :  { %1871 = vst [vmem:[#allocation19 + $0x330] sm:$0xff] (%p852_p0), %v2985_v0  ;;  %1872 = vst [vmem:[#allocation19 + $0x338] sm:$0xff] (%p852_p0), %v2985_v0 }
 0x243   :  { %1873 = vst [vmem:[#allocation19 + $0x340] sm:$0xff] (%p852_p0), %v2985_v0  ;;  %1874 = vst [vmem:[#allocation19 + $0x348] sm:$0xff] (%p852_p0), %v2985_v0 }
 0x244   :  { %1875 = vst [vmem:[#allocation19 + $0x350] sm:$0xff] (%p852_p0), %v2985_v0  ;;  %1876 = vst [vmem:[#allocation19 + $0x358] sm:$0xff] (%p852_p0), %v2985_v0 }
 0x245   :  { %1877 = vst [vmem:[#allocation19 + $0x360] sm:$0xff] (%p852_p0), %v2985_v0  ;;  %1878 = vst [vmem:[#allocation19 + $0x368] sm:$0xff] (%p852_p0), %v2985_v0 }
 0x246   :  { %1879 = vst [vmem:[#allocation19 + $0x370] sm:$0xff] (%p852_p0), %v2985_v0  ;;  %1880 = vst [vmem:[#allocation19 + $0x378] sm:$0xff] (%p852_p0), %v2985_v0 }
 0x247   :  { %1881 = vst [vmem:[#allocation19 + $0x388] sm:$0xff] (%p852_p0), %v2985_v0  ;;  %1882 = vst [vmem:[#allocation19 + $0x390] sm:$0xff] (%p852_p0), %v2985_v0 }
 0x248   :  { %1883 = vst [vmem:[#allocation19 + $0x398] sm:$0xff] (%p852_p0), %v2985_v0  ;;  %1884 = vst [vmem:[#allocation19 + $0x3a0] sm:$0xff] (%p852_p0), %v2985_v0 }
 0x249   :  { %1885 = vst [vmem:[#allocation19 + $0x3a8] sm:$0xff] (%p852_p0), %v2985_v0  ;;  %1886 = vst [vmem:[#allocation19 + $0x3b0] sm:$0xff] (%p852_p0), %v2985_v0 }
 0x24a   :  { %1887 = vst [vmem:[#allocation19 + $0x3b8] sm:$0xff] (%p852_p0), %v2985_v0  ;;  %1888 = vst [vmem:[#allocation19 + $0x3c0] sm:$0xff] (%p852_p0), %v2985_v0 }
 0x24b   :  { %1889 = vst [vmem:[#allocation19 + $0x3c8] sm:$0xff] (%p852_p0), %v2985_v0  ;;  %1890 = vst [vmem:[#allocation19 + $0x3d0] sm:$0xff] (%p852_p0), %v2985_v0 }
 0x24c   :  { %1891 = vst [vmem:[#allocation19 + $0x3d8] sm:$0xff] (%p852_p0), %v2985_v0  ;;  %1892 = vst [vmem:[#allocation19 + $0x3e0] sm:$0xff] (%p852_p0), %v2985_v0 }
 0x24d   :  { %1893 = vst [vmem:[#allocation19 + $0x3e8] sm:$0xff] (%p852_p0), %v2985_v0  ;;  %1894 = vst [vmem:[#allocation19 + $0x3f0] sm:$0xff] (%p852_p0), %v2985_v0 }
 0x24e   :  { %1895 = vst [vmem:[#allocation19 + $0x3f8] sm:$0xff] (%p852_p0), %v2985_v0  ;;  %v1396_v0 = vld [vmem:[%s3901_s7 + $0x20] sm:$0xff] (%p852_p0) }
 0x257   : > { %v1107_v32 = vpop.permute.xlu0 %1106 }
 0x25b   : > { %v1116_v41 = vpop.permute.xlu0 %1115 }
 0x25c   : > { %v1121_v43 = vmul.f32 %v2964_v30, %v1116_v41  ;;  %v1118_v61 = vmul.f32 %v2968_v38, %v1116_v41 }
 0x2b0   : > { %v1000_v4 = vpop.f32.mrb[0].mxu0 }
 0x2b1   : > { %v1076_v5 = vadd.f32 %v1000_v4, %v866_v2  ;;  %v1002_v6 = vpop.f32.mrb[1].mxu0  ;;  %v1368_v4 = vpop.permute.xlu1 %1367 }
 0x2b2   : > { %v1077_v7 = vadd.f32 %v1002_v6, %v867_v3  ;;  %v1071_v13 = vpop.f32.mrb[0].mxu1 }
 0x2b3   : > { %v1080_v8 = vsub.f32 0.0, %v1076_v5  ;;  %v1078_v15 = vadd.f32 %v1071_v13, %v868_v9  ;;  %v1073_v49 = vpop.f32.mrb[1].mxu1 }
 0x2b4   : > { %v1086_v10 = vsub.f32 0.0, %v1077_v7  ;;  %v1079_v16 = vadd.f32 %v1073_v49, %v869_v11 }
 0x2b5   : > { %v1081_v12 = vmul.f32 1.442695, %v1080_v8 }
 0x2b6   : > { %v1087_v14 = vmul.f32 1.442695, %v1086_v10  ;;  %v1093_v17 = vsub.f32 0.0, %v1079_v16  ;;  %v1377_v10 = vpop.permute.xlu1 %1376 }
 0x2b7   : > { %2692 = vpow2.f32 %v1081_v12 }
 0x2b8   : > { %2694 = vpow2.f32 %v1087_v14  ;;  %v1094_v18 = vmul.f32 1.442695, %v1093_v17  ;;  %v1382_v14 = vmul.f32 %v2956_v25, %v1377_v10 }
 0x2ba   : > { %2696 = vpow2.f32 %v1094_v18 }
 0x2bb   : > { %2698 = vtanh.f32 %v1078_v15 }
 0x2c1   : > { %v2693_v19 = vpop.eup %2692 }
 0x2c2   : > { %v2695_v20 = vpop.eup %2694  ;;  %v1083_v23 = vadd.f32 1.0, %v2693_v19  ;;  %v1379_v19 = vmul.f32 %v2960_v46, %v1377_v10 }
 0x2c3   : > { %v1089_v31 = vadd.f32 1.0, %v2695_v20  ;;  %v3386_v20 = vld [vmem:[%s3901_s7] sm:$0xff] (%p852_p0) }
 0x2c4   : > { %2700 = vrcp.f32 %v1083_v23  ;;  %v2697_v33 = vpop.eup %2696  ;;  %v3391_v23 = vld [vmem:[%s3901_s7 + $0x8] sm:$0xff] (%p852_p0) }
 0x2c5   : > { %2702 = vrcp.f32 %v1089_v31  ;;  %v2699_v34 = vpop.eup %2698  ;;  %v1096_v36 = vadd.f32 1.0, %v2697_v33  ;;  %v3393_v31 = vld [vmem:[#allocation17] sm:$0xff] (%p852_p0) }
 0x2c7   : > { %2704 = vrcp.f32 %v1096_v36 }
 0x2ce   : > { %v2701_v35 = vpop.eup %2700 }
 0x2cf   : > { %v2703_v39 = vpop.eup %2702  ;;  %v1100_v27 = vmul.f32 %v2701_v35, %v2699_v34  ;;  %v1530_v34 = vld [vmem:[#allocation17 + $0x10] sm:$0xff] (%p852_p0)  ;;  %v1531_v35 = vld [vmem:[#allocation17 + $0x18] sm:$0xff] (%p852_p0) }
 0x2d0   : > { %v1261_v28 = vpop.f32.mrb[2].mxu0  ;;  %v1099_v29 = vmul.f32 %v2964_v30, %v2703_v39  ;;  %v2606_v36 = vpack.c.bf16 (%p852_p0), %v1531_v35, %v1530_v34  ;;  %v1532_v39 = vld [vmem:[#allocation17 + $0x20] sm:$0xff] (%p852_p0) }
 0x2d1   : > { %v1337_v44 = vadd.f32 %v1261_v28, %v1127_v37  ;;  %v1263_v24 = vpop.f32.mrb[3].mxu0  ;;  %v2705_v57 = vpop.eup %2704  ;;  %v1397_v37 = vld [vmem:[%s3901_s7 + $0x28] sm:$0xff] (%p852_p0)  ;;  %v1398_v28 = vld [vmem:[%s3901_s7 + $0x30] sm:$0xff] (%p852_p0) }
 0x2d2   : > { %v1338_v45 = vadd.f32 %v1263_v24, %v1128_v40  ;;  %v1101_v42 = vadd.f32 %v1100_v27, %v1099_v29  ;;  %v1332_v51 = vpop.f32.mrb[2].mxu1  ;;  %v1533_v40 = vld [vmem:[#allocation17 + $0x28] sm:$0xff] (%p852_p0)  ;;  %v2578_v41 = vpack.c.bf16 (%p852_p0), %v1397_v37, %v1396_v0  ;;  %v1399_v29 = vld [vmem:[%s3901_s7 + $0x38] sm:$0xff] (%p852_p0) }
 0x2d3   : > { %v1341_v22 = vsub.f32 0.0, %v1337_v44  ;;  %v1339_v53 = vadd.f32 %v1332_v51, %v1129_v21  ;;  %v1334_v54 = vpop.f32.mrb[3].mxu1  ;;  %v2610_v27 = vpack.c.bf16 (%p852_p0), %v1533_v40, %v1532_v39  ;;  %v1534_v44 = vld [vmem:[#allocation17 + $0x30] sm:$0xff] (%p852_p0)  ;;  %v1535_v24 = vld [vmem:[#allocation17 + $0x38] sm:$0xff] (%p852_p0) }
 0x2d4   : > { %v1347_v26 = vsub.f32 0.0, %v1338_v45  ;;  %2706 = vtanh.f32 %v1101_v42  ;;  %v1120_v47 = vmul.f32 %v1107_v32, %v1101_v42  ;;  %v1340_v55 = vadd.f32 %v1334_v54, %v1130_v48  ;;  %v1538_v54 = vld [vmem:[#allocation17 + $0x50] sm:$0xff] (%p852_p0) }
 0x2d5   : > { %v1342_v50 = vmul.f32 1.442695, %v1341_v22  ;;  %v2582_v45 = vpack.c.bf16 (%p852_p0), %v1399_v29, %v1398_v28  ;;  %v2614_v42 = vpack.c.bf16 (%p852_p0), %v1535_v24, %v1534_v44  ;;  %v1401_v22 = vld [vmem:[%s3901_s7 + $0x48] sm:$0xff] (%p852_p0) }
 0x2d6   : > { %v1348_v52 = vmul.f32 1.442695, %v1347_v26  ;;  %v1122_v30 = vadd.f32 %v1121_v43, %v1120_v47   ;;  %v1354_v56 = vsub.f32 0.0, %v1340_v55  ;;  %v1400_v43 = vld [vmem:[%s3901_s7 + $0x40] sm:$0xff] (%p852_p0)  ;;  %v1537_v47 = vld [vmem:[#allocation17 + $0x48] sm:$0xff] (%p852_p0)  ;;  %v1539_v55 = vld [vmem:[#allocation17 + $0x58] sm:$0xff] (%p852_p0) }
 0x2d7   : > { %2708 = vpow2.f32 %v1342_v50  ;;  %v1394_v30 = vld [vmem:[%s3901_s7 + $0x10] sm:$0xff] (%p852_p0)  ;;  %v1536_v26 = vld [vmem:[#allocation17 + $0x40] sm:$0xff] (%p852_p0)  ;;  %v2586_v50 = vpack.c.bf16 (%p852_p0), %v1401_v22, %v1400_v43 }
 0x2d8   : > { %2710 = vpow2.f32 %v1348_v52  ;;  %v1355_v58 = vmul.f32 1.442695, %v1354_v56  ;;  %v2618_v51 = vpack.c.bf16 (%p852_p0), %v1537_v47, %v1536_v26  ;;  %v1402_v52 = vld [vmem:[%s3901_s7 + $0x50] sm:$0xff] (%p852_p0) }
 0x2da   : > { %2712 = vpow2.f32 %v1355_v58  ;;  %v1404_v58 = vld [vmem:[%s3901_s7 + $0x60] sm:$0xff] (%p852_p0) }
 0x2db   : > { %2714 = vtanh.f32 %v1339_v53  ;;  %v1403_v53 = vld [vmem:[%s3901_s7 + $0x58] sm:$0xff] (%p852_p0) }
 0x2dc   :  { %v2590_v56 = vpack.c.bf16 (%p852_p0), %v1403_v53, %v1402_v52 }
 0x2de   : > { %v2707_v59 = vpop.eup %2706 }
 0x2df   : > { %v1103_v60 = vmul.f32 %v2707_v59, %v2705_v57  ;;  %v2622_v57 = vpack.c.bf16 (%p852_p0), %v1539_v55, %v1538_v54  ;;  %v1405_v59 = vld [vmem:[%s3901_s7 + $0x68] sm:$0xff] (%p852_p0) }
 0x2e1   : > { %v2709_v62 = vpop.eup %2708  ;;  %v1109_v63 = vmul.f32 %v1107_v32, %v1103_v60  ;;  %v1540_v60 = vld [vmem:[#allocation17 + $0x60] sm:$0xff] (%p852_p0) }
 0x2e2   : > { %v2711_v1 = vpop.eup %2710  ;;  %v1344_v2 = vadd.f32 1.0, %v2709_v62  ;;  %v2594_v62 = vpack.c.bf16 (%p852_p0), %v1405_v59, %v1404_v58 }
 0x2e3   : > { %v1350_v3 = vadd.f32 1.0, %v2711_v1  ;;  %1111 = vst [vmem:[%s1110_s16] sm:$0xff] %v1109_v63  ;;  %v1119_v38 = vadd.f32 %v1118_v61, %v1109_v63   ;;  %v1541_v61 = vld [vmem:[#allocation17 + $0x68] sm:$0xff] (%p852_p0)  ;;  %v1406_v1 = vld [vmem:[%s3901_s7 + $0x70] sm:$0xff] (%p852_p0) }
 0x2e4   : > { %2716 = vrcp.f32 %v1344_v2  ;;  %v2713_v5 = vpop.eup %2712  ;;  %v1395_v38 = vld [vmem:[%s3901_s7 + $0x18] sm:$0xff] (%p852_p0)  ;;  %v2626_v63 = vpack.c.bf16 (%p852_p0), %v1541_v61, %v1540_v60 }
 0x2e5   : > { %2718 = vrcp.f32 %v1350_v3  ;;  %v2715_v6 = vpop.eup %2714  ;;  %v1357_v8 = vadd.f32 1.0, %v2713_v5  ;;  %v2574_v33 = vpack.c.bf16 (%p852_p0), %v1395_v38, %v1394_v30  ;;  %v1407_v2 = vld [vmem:[%s3901_s7 + $0x78] sm:$0xff] (%p852_p0)  ;;  %v1542_v3 = vld [vmem:[#allocation17 + $0x70] sm:$0xff] (%p852_p0) }
 0x2e6   :  { %v2598_v5 = vpack.c.bf16 (%p852_p0), %v1407_v2, %v1406_v1 }
 0x2e7   : > { %2720 = vrcp.f32 %v1357_v8 }
 0x2ea   :  { %v1384_v21 = vld [vmem:[#allocation4] sm:$0xff] (%p852_p0) }
 0x2eb   :  { %2258 = vmatprep.mubr.f32.mxu0 (%p852_p0), %v1384_v21 }
 0x2ee   : > { %v2717_v7 = vpop.eup %2716 }
 0x2ef   : > { %v2719_v9 = vpop.eup %2718  ;;  %v1361_v11 = vmul.f32 %v2717_v7, %v2715_v6  ;;  %v1385_v7 = vld [vmem:[#allocation4 + $0x8] sm:$0xff] (%p852_p0) }
 0x2f0   : > { %v1360_v12 = vmul.f32 %v2956_v25, %v2719_v9  ;;  %v1386_v9 = vld [vmem:[#allocation4 + $0x10] sm:$0xff] (%p852_p0) }
 0x2f1   : > { %v2721_v49 = vpop.eup %2720 }
 0x2f2   : > { %v1362_v13 = vadd.f32 %v1361_v11, %v1360_v12  ;;  %v1387_v11 = vld [vmem:[#allocation4 + $0x18] sm:$0xff] (%p852_p0) }
 0x2f4   : > { %2722 = vtanh.f32 %v1362_v13  ;;  %v1381_v15 = vmul.f32 %v1368_v4, %v1362_v13  ;;  %v1388_v13 = vld [vmem:[#allocation4 + $0x20] sm:$0xff] (%p852_p0) }
 0x2f6   : > { %v1383_v25 = vadd.f32 %v1382_v14, %v1381_v15   ;;  %v1389_v15 = vld [vmem:[#allocation4 + $0x28] sm:$0xff] (%p852_p0) }
 0x2f7   :  { %v2570_v25 = vpack.c.bf16 (%p852_p0), %v3391_v23, %v3386_v20  ;;  %v3683_v20 = vld [vmem:[%s3902_s8] ss:$0 sm:$0xff] (%p852_p0)  ;;  %s2988_s8 = smov (%p852_p0), [#allocation18]  }
 0x2f8   :  { %v3688_v23 = vld [vmem:[%s3907_s13] ss:$0 sm:$0xff] (%p852_p0)  ;;  %s2110_s13 = sshll.u32 (%p852_p0), %s2988_s8, 4  ;;  %s3832_s13 = int_to_ptr.vmem [resolvable:$true] %s2110_s13 }
 0x2f9   :  { %2571 = vmatprep.subr.bf16.mxu0 (%p852_p0), %v2570_v25  ;;  %s2878_s11 = scalar_lea.vmem (%p852_p0), %s3832_s13, 16384  ;;  %p2883_p2 = scmp.lt.s32.totalorder (%p852_p0), %s3832_s13, %s3832_s13 }
 0x2fa   :  { %2573 = vmatpush3.bf16.msra.mxu0 (%p852_p0), %v2570_v25  ;;  %p2879_p1 = scmp.ne.s32.totalorder (%p852_p0), %s3832_s13, %s2878_s11  ;;  %p2884_p3 = scmp.lt.s32.totalorder (%p852_p0), %s2878_s11, %s2878_s11 }
 0x2fb   :  { %2575 = vmatprep.subr.bf16.mxu0 (%p852_p0), %v2574_v33 }
 0x2fc   :  { %p2885_p4 = por (%p852_p0), %p2884_p3, %p2883_p2 }
 0x2fd   :  { %854 = sbr.rel (!%p852_p0) target bundleno = 441 (0x1b9), region = 139 }
 0x2fe   : > { %v2723_v16 = vpop.eup %2722  ;;  %2577 = vmatpush3.bf16.msra.mxu0 (%p852_p0), %v2574_v33  ;;  %p2886_p5 = pnand (%p852_p0), %p2885_p4, %p2879_p1 }
 0x2ff   : > { %v1364_v17 = vmul.f32 %v2723_v16, %v2721_v49  ;;  %2579 = vmatprep.subr.bf16.mxu0 (%p852_p0), %v2578_v41  ;;  %v1390_v16 = vld [vmem:[#allocation4 + $0x30] sm:$0xff] (%p852_p0) }
 0x301   : > { %v1370_v18 = vmul.f32 %v1368_v4, %v1364_v17  ;;  %v1543_v4 = vld [vmem:[#allocation17 + $0x78] sm:$0xff] (%p852_p0) }
 0x302   :  { %2581 = vmatpush3.bf16.msra.mxu0 (%p852_p0), %v2578_v41  ;;  %v2630_v6 = vpack.c.bf16 (%p852_p0), %v1543_v4, %v1542_v3 }
 0x303   : > { %1372 = vst [vmem:[%s1371_s26] sm:$0xff] %v1370_v18  ;;  %v1380_v46 = vadd.f32 %v1379_v19, %v1370_v18   ;;  %2583 = vmatprep.subr.bf16.mxu0 (%p852_p0), %v2582_v45  ;;  %v1391_v18 = vld [vmem:[#allocation4 + $0x38] sm:$0xff] (%p852_p0) }
 0x304   :  { %v1529_v46 = vld [vmem:[#allocation17 + $0x8] sm:$0xff] }
 0x305   :  { %v2602_v32 = vpack.c.bf16 %v1529_v46, %v3393_v31 }
 0x306   :  { %2585 = vmatpush3.bf16.msra.mxu0 %v2582_v45 }
 0x307   :  { %2603 = vmatprep.subr.bf16.mxu1 %v2602_v32  ;;  %2587 = vmatprep.subr.bf16.mxu0 %v2586_v50 }
 0x308   :  { %2605 = vmatpush3.bf16.msra.mxu1 %v2602_v32 }
 0x309   :  { %2607 = vmatprep.subr.bf16.mxu1 %v2606_v36 }
 0x30a   :  { %v1520_v48 = vld [vmem:[#allocation5] sm:$0xff]  ;;  %2589 = vmatpush3.bf16.msra.mxu0 %v2586_v50  ;;  %v1521_v8 = vld [vmem:[#allocation5 + $0x8] sm:$0xff]  ;;  %v1522_v10 = vld [vmem:[#allocation5 + $0x10] sm:$0xff] }
 0x30b   :  { %2302 = vmatprep.mubr.f32.mxu1 %v1520_v48  ;;  %2591 = vmatprep.subr.bf16.mxu0 %v2590_v56  ;;  %v1523_v12 = vld [vmem:[#allocation5 + $0x18] sm:$0xff]  ;;  %v1524_v14 = vld [vmem:[#allocation5 + $0x20] sm:$0xff]  ;;  %v1525_v49 = vld [vmem:[#allocation5 + $0x28] sm:$0xff] }
 0x30c   :  { %2609 = vmatpush3.bf16.msra.mxu1 %v2606_v36  ;;  %v1526_v17 = vld [vmem:[#allocation5 + $0x30] sm:$0xff]  ;;  %v1527_v19 = vld [vmem:[#allocation5 + $0x38] sm:$0xff] }
 0x30d   :  { %2611 = vmatprep.subr.bf16.mxu1 %v2610_v27 }
 0x30e   :  { %2593 = vmatpush3.bf16.msra.mxu0 %v2590_v56 }
 0x30f   :  { %2595 = vmatprep.subr.bf16.mxu0 %v2594_v62 }
 0x310   :  { %2613 = vmatpush3.bf16.msra.mxu1 %v2610_v27 }
 0x311   :  { %2615 = vmatprep.subr.bf16.mxu1 %v2614_v42 }
 0x312   :  { %2597 = vmatpush3.bf16.msra.mxu0 %v2594_v62 }
 0x313   :  { %2599 = vmatprep.subr.bf16.mxu0 %v2598_v5 }
 0x314   :  { %2617 = vmatpush3.bf16.msra.mxu1 %v2614_v42 }
 0x315   :  { %2619 = vmatprep.subr.bf16.mxu1 %v2618_v51 }
 0x316   :  { %2601 = vmatpush3.bf16.msra.mxu0 %v2598_v5 }
 0x318   :  { %2621 = vmatpush3.bf16.msra.mxu1 %v2618_v51 }
 0x319   :  { %2623 = vmatprep.subr.bf16.mxu1 %v2622_v57  ;;  %2259 = vmatmul.mubr.f32.vlgmr.msra.gmra.mrb[0].mxu0 %v1385_v7 }
 0x31a   :  { %2261 = vmatprep.mubr.f32.mxu0 %v1386_v9 }
 0x31c   :  { %2625 = vmatpush3.bf16.msra.mxu1 %v2622_v57 }
 0x31d   :  { %2627 = vmatprep.subr.bf16.mxu1 %v2626_v63  ;;  %2262 = vmatmul.mubr.f32.gmra.mrb[2].mxu0 %v1387_v11 }
 0x31e   :  { %2264 = vmatprep.mubr.f32.mxu0 %v1388_v13 }
 0x320   :  { %2629 = vmatpush3.bf16.msra.mxu1 %v2626_v63 }
 0x321   :  { %2631 = vmatprep.subr.bf16.mxu1 %v2630_v6  ;;  %2265 = vmatmul.mubr.f32.gmra.mrb[4].mxu0 %v1389_v15 }
 0x322   :  { %2267 = vmatprep.mubr.f32.mxu0 %v1390_v16 }
 0x324   :  { %2633 = vmatpush3.bf16.msra.mxu1 %v2630_v6 }
 0x325   :  { %2268 = vmatmul.mubr.f32.gmra.mrb[6].mxu0 %v1391_v18 }
 0x327   :  { %2303 = vmatmul.mubr.f32.vlgmr.msra.gmra.mrb[0].mxu1 %v1521_v8 }
 0x328   :  { %2305 = vmatprep.mubr.f32.mxu1 %v1522_v10 }
 0x32b   :  { %2306 = vmatmul.mubr.f32.gmra.mrb[2].mxu1 %v1523_v12 }
 0x32c   :  { %2308 = vmatprep.mubr.f32.mxu1 %v1524_v14 }
 0x32f   :  { %2309 = vmatmul.mubr.f32.gmra.mrb[4].mxu1 %v1525_v49 }
 0x330   :  { %2311 = vmatprep.mubr.f32.mxu1 %v1526_v17 }
 0x333   :  { %2312 = vmatmul.mubr.f32.gmra.mrb[6].mxu1 %v1527_v19 }
 0x3ec   :  { %v2260_v31 = vpop.f32.mrb[0].mxu0 }
 0x3ed   :  { %v1487_v25 = vadd.f32 %v2260_v31, %v3683_v20  ;;  %v1481_v30 = vpop.f32.mrb[1].mxu0 }
 0x3ee   :  { %v1482_v32 = vadd.f32 %v3683_v20, %v1481_v30 }
 0x3ef   :  { %v1904_v34 = vrot.slane %v1487_v25, 7 }
 0x3f0   :  { %2092 = vst [vmem:[#allocation18 + $0x379] sm:$0x80] %v1482_v32  ;;  %v2263_v36 = vpop.f32.mrb[2].mxu0 }
 0x3f1   :  { %v1906_v37 = vsel %vm1905_vm0, %v1904_v34, %v1482_v32  ;;  %v1951_v39 = vsel %vm1908_vm1, %v1904_v34, %v1482_v32  ;;  %v1973_v40 = vsel %vm1911_vm2, %v1904_v34, %v1482_v32  ;;  %v1995_v41 = vsel %vm1914_vm3, %v1904_v34, %v1482_v32  ;;  %v1491_v28 = vpop.f32.mrb[3].mxu0 }
 0x3f2   :  { %v2017_v29 = vsel %vm1917_vm4, %v1904_v34, %v1482_v32  ;;  %v2039_v44 = vsel %vm1920_vm5, %v1904_v34, %v1482_v32  ;;  %v2061_v24 = vsel %vm1923_vm6, %v1904_v34, %v1482_v32  ;;  %v1497_v50 = vadd.f32 %v2263_v36, %v3683_v20 }
 0x3f3   :  { %2070 = vst [vmem:[#allocation18 + $0x2fa] sm:$0xc0] %v2061_v24  ;;  %v1492_v53 = vadd.f32 %v3683_v20, %v1491_v28 }
 0x3f4   :  { %v2266_v52 = vpop.f32.mrb[4].mxu0  ;;  %v1910_v58 = vrot.slane %v1497_v50, 5 }
 0x3f5   :  { %v1507_v55 = vadd.f32 %v2266_v52, %v3683_v20  ;;  %v1501_v57 = vpop.f32.mrb[5].mxu0  ;;  %v1907_v63 = vrot.slane %v1492_v53, 6 }
 0x3f6   :  { %v1502_v60 = vadd.f32 %v3683_v20, %v1501_v57 }
 0x3f7   :  { %v3726_v2 = vrot.slane %v1507_v55, 3  ;;  %v1909_v7 = vsel %vm1908_vm1, %v1907_v63, %v1906_v37  ;;  %v1952_v8 = vsel %vm1911_vm2, %v1907_v63, %v1951_v39  ;;  %v1974_v9 = vsel %vm1914_vm3, %v1907_v63, %v1973_v40 }
 0x3f8   :  { %v1913_v4 = vrot.slane %v1502_v60, 4  ;;  %v2269_v6 = vpop.f32.mrb[6].mxu0  ;;  %v1996_v10 = vsel %vm1917_vm4, %v1907_v63, %v1995_v41  ;;  %v2018_v13 = vsel %vm1920_vm5, %v1907_v63, %v2017_v29  ;;  %v2040_v14 = vsel %vm1923_vm6, %v1907_v63, %v2039_v44 }
 0x3f9   :  { %v1511_v12 = vpop.f32.mrb[7].mxu0  ;;  %v2062_v15 = vsel %vm1905_vm0, %v1910_v58, %v1907_v63  ;;  %v2083_v49 = vsel %vm1905_vm0, %v1907_v63, %v1904_v34  ;;  %v2019_v17 = vsel %vm1923_vm6, %v1910_v58, %v2018_v13  ;;  %2048 = vst [vmem:[#allocation18 + $0x27b] sm:$0xe0] %v2040_v14  ;;  %v1912_v34 = vsel %vm1911_vm2, %v1910_v58, %v1909_v7 }
 0x3fa   :  { %v2304_v46 = vpop.f32.mrb[0].mxu1  ;;  %2026 = vst [vmem:[#allocation18 + $0x1fc] sm:$0xf0] %v2019_v17  ;;  %v1915_v36 = vsel %vm1914_vm3, %v1913_v4, %v1912_v34  ;;  %v1975_v39 = vsel %vm1917_vm4, %v1910_v58, %v1974_v9  ;;  %v1997_v40 = vsel %vm1920_vm5, %v1910_v58, %v1996_v10  ;;  %v2041_v28 = vsel %vm1905_vm0, %v1913_v4, %v1910_v58 }
 0x3fb   :  { %v1623_v38 = vadd.f32 %v2304_v46, %v3688_v23  ;;  %v1617_v33 = vpop.f32.mrb[1].mxu1  ;;  %v1976_v41 = vsel %vm1920_vm5, %v1913_v4, %v1975_v39  ;;  %v2063_v44 = vsel %vm1908_vm1, %v1913_v4, %v2062_v15  ;;  %v2084_v24 = vsel %vm1908_vm1, %v1910_v58, %v2083_v49 }
 0x3fc   :  { %v1618_v35 = vadd.f32 %v3688_v23, %v1617_v33  ;;  %v1977_v29 = vsel %vm1923_vm6, %v3726_v2, %v1976_v41  ;;  %v1512_v63 = vadd.f32 %v3683_v20, %v1511_v12 }
 0x3fd   :  { %v3694_v0 = vrot.slane %v1623_v38, 7  ;;  %1982 = vst [vmem:[#allocation18 + $0xfe] sm:$0xfc] %v1977_v29 }
 0x3fe   :  { %2103 = vst [vmem:[#allocation19 + $0x379] sm:$0x80] %v1618_v35  ;;  %v2307_v27 = vpop.f32.mrb[2].mxu1 }
 0x3ff   :  { %v1936_v45 = vsel %vm1905_vm0, %v3694_v0, %v1618_v35  ;;  %v1627_v42 = vpop.f32.mrb[3].mxu1  ;;  %v1962_v43 = vsel %vm1908_vm1, %v3694_v0, %v1618_v35  ;;  %v1984_v22 = vsel %vm1911_vm2, %v3694_v0, %v1618_v35  ;;  %v2006_v21 = vsel %vm1914_vm3, %v3694_v0, %v1618_v35 }
 0x400   :  { %v2028_v26 = vsel %vm1917_vm4, %v3694_v0, %v1618_v35  ;;  %v2050_v47 = vsel %vm1920_vm5, %v3694_v0, %v1618_v35  ;;  %v2072_v48 = vsel %vm1923_vm6, %v3694_v0, %v1618_v35  ;;  %v1633_v51 = vadd.f32 %v2307_v27, %v3688_v23 }
 0x401   :  { %2081 = vst [vmem:[#allocation19 + $0x2fa] sm:$0xc0] %v2072_v48  ;;  %v1628_v54 = vadd.f32 %v3688_v23, %v1627_v42  ;;  %v1953_v35 = vsel %vm1914_vm3, %v1910_v58, %v1952_v8  ;;  %v1998_v27 = vsel %vm1923_vm6, %v1913_v4, %v1997_v40  ;;  %v2085_v42 = vsel %vm1911_vm2, %v1913_v4, %v2084_v24 }
 0x402   :  { %v2310_v56 = vpop.f32.mrb[4].mxu1  ;;  %v3724_v62 = vrot.slane %v1633_v51, 5  ;;  %v1954_v37 = vsel %vm1917_vm4, %v1913_v4, %v1953_v35  ;;  %2004 = vst [vmem:[#allocation18 + $0x17d] sm:$0xf8] %v1998_v27  ;;  %v1517_v48 = vadd.f32 %v2269_v6, %v3683_v20  ;;  %v1919_v6 = vrot.slane %v1512_v63, 2 }
 0x403   :  { %v1643_v59 = vadd.f32 %v2310_v56, %v3688_v23  ;;  %v1637_v61 = vpop.f32.mrb[5].mxu1  ;;  %v1937_v1 = vrot.slane %v1628_v54, 6  ;;  %v2086_v7 = vsel %vm1914_vm3, %v3726_v2, %v2085_v42 }
 0x404   :  { %v1638_v5 = vadd.f32 %v3688_v23, %v1637_v61  ;;  %v1922_v60 = vrot.slane %v1517_v48, 1  ;;  %v1999_v15 = vsel %vm1905_vm0, %v1919_v6, %v3726_v2 }
 0x405   :  { %v3728_v3 = vrot.slane %v1643_v59, 3  ;;  %v1938_v18 = vsel %vm1908_vm1, %v1937_v1, %v1936_v45  ;;  %v1963_v19 = vsel %vm1911_vm2, %v1937_v1, %v1962_v43  ;;  %v1985_v31 = vsel %vm1914_vm3, %v1937_v1, %v1984_v22 }
 0x406   :  { %v2313_v11 = vpop.f32.mrb[6].mxu1  ;;  %v2007_v25 = vsel %vm1917_vm4, %v1937_v1, %v2006_v21  ;;  %v2029_v46 = vsel %vm1920_vm5, %v1937_v1, %v2028_v26  ;;  %v2051_v30 = vsel %vm1923_vm6, %v1937_v1, %v2050_v47  ;;  %v2073_v38 = vsel %vm1905_vm0, %v3724_v62, %v1937_v1  ;;  %1961 = vst [vmem:[#allocation18 + $0x87] sm:$0x1] %v1922_v60 }
 0x407   :  { %v1647_v16 = vpop.f32.mrb[7].mxu1  ;;  %v2030_v32 = vsel %vm1923_vm6, %v3724_v62, %v2029_v46  ;;  %2059 = vst [vmem:[#allocation19 + $0x27b] sm:$0xe0] %v2051_v30  ;;  %v2094_v33 = vsel %vm1905_vm0, %v1937_v1, %v3694_v0  ;;  %v2020_v0 = vsel %vm1905_vm0, %v3726_v2, %v1913_v4  ;;  %v1940_v45 = vsel %vm1911_vm2, %v3724_v62, %v1938_v18 }
 0x408   :  { %2037 = vst [vmem:[#allocation19 + $0x1fc] sm:$0xf0] %v2030_v32  ;;  %v1941_v43 = vrot.slane %v1638_v5, 4  ;;  %v1964_v22 = vsel %vm1914_vm3, %v3724_v62, %v1963_v19  ;;  %v1986_v21 = vsel %vm1917_vm4, %v3724_v62, %v1985_v31  ;;  %v2008_v26 = vsel %vm1920_vm5, %v3724_v62, %v2007_v25 }
 0x409   :  { %v2095_v47 = vsel %vm1908_vm1, %v3724_v62, %v2094_v33  ;;  %v1653_v50 = vadd.f32 %v2313_v11, %v3688_v23  ;;  %v1918_v1 = vsel %vm1917_vm4, %v3726_v2, %v1915_v36  ;;  %v1955_v4 = vsel %vm1920_vm5, %v3726_v2, %v1954_v37 }
 0x40a   :  { %v1942_v51 = vsel %vm1914_vm3, %v1941_v43, %v1940_v45  ;;  %v1965_v52 = vsel %vm1917_vm4, %v1941_v43, %v1964_v22  ;;  %v1987_v53 = vsel %vm1920_vm5, %v1941_v43, %v1986_v21  ;;  %v2009_v54 = vsel %vm1923_vm6, %v1941_v43, %v2008_v26 }
 0x40b   :  { %v1988_v55 = vsel %vm1923_vm6, %v3728_v3, %v1987_v53  ;;  %2015 = vst [vmem:[#allocation19 + $0x17d] sm:$0xf8] %v2009_v54  ;;  %v3788_v56 = vsel %vm1905_vm0, %v3728_v3, %v1941_v43  ;;  %v2052_v57 = vsel %vm1905_vm0, %v1941_v43, %v3724_v62  ;;  %v2074_v58 = vsel %vm1908_vm1, %v1941_v43, %v2073_v38 }
 0x40c   :  { %1993 = vst [vmem:[#allocation19 + $0xfe] sm:$0xfc] %v1988_v55  ;;  %v2096_v59 = vsel %vm1911_vm2, %v1941_v43, %v2095_v47  ;;  %v3794_v61 = vrot.slane %v1653_v50, 1  ;;  %v2042_v5 = vsel %vm1908_vm1, %v3726_v2, %v2041_v28  ;;  %v2064_v62 = vsel %vm1911_vm2, %v3726_v2, %v2063_v44 }
 0x40d   :  { %v1648_v20 = vadd.f32 %v3688_v23, %v1647_v16  ;;  %v1944_v8 = vsel %vm1917_vm4, %v3728_v3, %v1942_v51  ;;  %v1966_v9 = vsel %vm1920_vm5, %v3728_v3, %v1965_v52  ;;  %v2053_v10 = vsel %vm1908_vm1, %v3728_v3, %v2052_v57 }
 0x40e   :  { %1972 = vst [vmem:[#allocation19 + $0x87] sm:$0x1] %v3794_v61  ;;  %v2075_v11 = vsel %vm1911_vm2, %v3728_v3, %v2074_v58  ;;  %v2097_v12 = vsel %vm1914_vm3, %v3728_v3, %v2096_v59  ;;  %v1921_v13 = vsel %vm1920_vm5, %v1919_v6, %v1918_v1  ;;  %v1956_v23 = vsel %vm1923_vm6, %v1919_v6, %v1955_v4 }
 0x40f   :  { %v1978_v14 = vsel %vm1905_vm0, %v1922_v60, %v1919_v6  ;;  %v1924_v49 = vsel %vm1923_vm6, %v1922_v60, %v1921_v13  ;;  %1960 = vst [vmem:[#allocation18 + $0x7f] sm:$0xfe] %v1956_v23  ;;  %v2000_v16 = vsel %vm1908_vm1, %v1922_v60, %v1999_v15  ;;  %v2021_v17 = vsel %vm1908_vm1, %v1919_v6, %v2020_v0 }
 0x410   :  { %1983 = vst [vmem:[#allocation18 + $0x106] sm:$0x3] %v1978_v14  ;;  %v2043_v18 = vsel %vm1911_vm2, %v1919_v6, %v2042_v5  ;;  %1926 = vst [vmem:[#allocation18] sm:$0xff] %v1924_v49  ;;  %v2022_v19 = vsel %vm1911_vm2, %v1922_v60, %v2021_v17  ;;  %v2065_v25 = vsel %vm1914_vm3, %v1919_v6, %v2064_v62  ;;  %v1945_v38 = vrot.slane %v1648_v20, 2 }
 0x411   :  { %2005 = vst [vmem:[#allocation18 + $0x185] sm:$0x7] %v2000_v16  ;;  %v2044_v31 = vsel %vm1914_vm3, %v1922_v60, %v2043_v18  ;;  %v2087_v2 = vsel %vm1917_vm4, %v1919_v6, %v2086_v7  ;;  %2027 = vst [vmem:[#allocation18 + $0x204] sm:$0xf] %v2022_v19  ;;  %v2066_v46 = vsel %vm1917_vm4, %v1922_v60, %v2065_v25 }
 0x412   :  { %2049 = vst [vmem:[#allocation18 + $0x283] sm:$0x1f] %v2044_v31  ;;  %v2088_v30 = vsel %vm1920_vm5, %v1922_v60, %v2087_v2  ;;  %2071 = vst [vmem:[#allocation18 + $0x302] sm:$0x3f] %v2066_v46  ;;  %v1946_v32 = vsel %vm1920_vm5, %v1945_v38, %v1944_v8  ;;  %v1967_v33 = vsel %vm1923_vm6, %v1945_v38, %v1966_v9 }
 0x413   :  { %2093 = vst [vmem:[#allocation18 + $0x381] sm:$0x7f] %v2088_v30  ;;  %v1989_v34 = vsel %vm1905_vm0, %v3794_v61, %v1945_v38  ;;  %v2010_v35 = vsel %vm1905_vm0, %v1945_v38, %v3728_v3 }
 0x414   :  { %2889 = shalt.err (!%p2886_p5)
}
 0x415   :  { %s2890_s20 = scalar_lea.hbm %s3908_s14, 16384 }
 0x416   :  { %p2891_p6 = scmp.ne.s32.totalorder %s3908_s14, %s2890_s20  ;;  %p2894_p7 = scmp.lt.u32.totalorder %s2890_s20, %s3908_s14 }
 0x418   :  { %p2896_p8 = pnand %p2894_p7, %p2891_p6 }
 0x41a   :  { %2899 = shalt.err (!%p2896_p8)
}
 0x41b   :  { %2116 = dma.vmem_to_hbm [thread:$0]  %s3832_s13, 16384, %s3908_s14, [#allocation8], %s2975_s28, %s2975_s28, %s2976_s29   ;;  %v1948_v3 = vsel %vm1923_vm6, %v3794_v61, %v1946_v32  ;;  %1971 = vst [vmem:[#allocation19 + $0x7f] sm:$0xfe] %v1967_v33  ;;  %1994 = vst [vmem:[#allocation19 + $0x106] sm:$0x3] %v1989_v34  ;;  %v2011_v36 = vsel %vm1908_vm1, %v3794_v61, %v2010_v35  ;;  %v2032_v37 = vsel %vm1908_vm1, %v1945_v38, %v3788_v56 }
 0x41c   :  { %v2054_v39 = vsel %vm1911_vm2, %v1945_v38, %v2053_v10  ;;  %1950 = vst [vmem:[#allocation19] sm:$0xff] %v1948_v3  ;;  %2016 = vst [vmem:[#allocation19 + $0x185] sm:$0x7] %v2011_v36  ;;  %v2033_v40 = vsel %vm1911_vm2, %v3794_v61, %v2032_v37  ;;  %v2076_v27 = vsel %vm1914_vm3, %v1945_v38, %v2075_v11  ;;  %s2900_s14 = scalar_lea.vmem %s2123_s27, 16384  ;;  %p2905_p10 = scmp.lt.s32.totalorder %s2123_s27, %s2123_s27 }
 0x41d   :  { %v2055_v41 = vsel %vm1914_vm3, %v3794_v61, %v2054_v39  ;;  %v2098_v0 = vsel %vm1917_vm4, %v1945_v38, %v2097_v12  ;;  %2038 = vst [vmem:[#allocation19 + $0x204] sm:$0xf] %v2033_v40  ;;  %v2077_v28 = vsel %vm1917_vm4, %v3794_v61, %v2076_v27  ;;  %p2901_p9 = scmp.ne.s32.totalorder %s2123_s27, %s2900_s14  ;;  %p2906_p11 = scmp.lt.s32.totalorder %s2900_s14, %s2900_s14 }
 0x41e   :  { %2060 = vst [vmem:[#allocation19 + $0x283] sm:$0x1f] %v2055_v41  ;;  %v2099_v29 = vsel %vm1920_vm5, %v3794_v61, %v2098_v0  ;;  %2082 = vst [vmem:[#allocation19 + $0x302] sm:$0x3f] %v2077_v28 }
 0x41f   :  { %2104 = vst [vmem:[#allocation19 + $0x381] sm:$0x7f] %v2099_v29  ;;  %p2907_p12 = por %p2906_p11, %p2905_p10 }
 0x421   :  { %p2908_p13 = pnand %p2907_p12, %p2901_p9 }
 0x423   :  { %2911 = shalt.err (!%p2908_p13)
}
 0x424   :  { %s3912_s26 = sld [smem:[#allocation27_spill]] }
 0x42a   :  { %s2912_s10 = scalar_lea.hbm %s3912_s26, 16384 }
 0x42b   :  { %p2913_p0 = scmp.ne.s32.totalorder %s3912_s26, %s2912_s10  ;;  %p2916_p1 = scmp.lt.u32.totalorder %s2912_s10, %s3912_s26 }
 0x42d   :  { %p2918_p2 = pnand %p2916_p1, %p2913_p0 }
 0x42f   :  { %2921 = shalt.err (!%p2918_p2)
}
 0x430   :  { %2128 = dma.vmem_to_hbm [thread:$0]  %s2123_s27, 16384, %s3912_s26, [#allocation20], %s2975_s28, %s2975_s28, %s2976_s29  }
 0x431   :  { %2950 = dma.done.wait [#allocation8], 16384  }
 0x432   :  { %2951 = vsyncadd [#allocation8], 4294950912 }
 0x433   :  { %2952 = dma.done.wait [#allocation20], 16384  }
 0x434   :  { %2953 = vsyncadd [#allocation20], 4294950912 }
 0x435   :  { %2135 = vsyncpa [#allocation7], 1 }
 0x436   :  { %2136 = vsyncpa [#allocation10], 1 }
 0x437   :  { %2137 = vsyncpa [#allocation13], 1 }
 0x438   :  { %2138 = vsyncpa [#allocation16], 1 }
 0x439   :  { %2139 = vsyncpa [#allocation8], 1 }
 0x43a   :  { %2140 = vsyncpa [#allocation20], 1 }

</bundles_post_ra>
